<compile_context>
chip_gen: v7x
topology: tpu7x:2x2x1
jax: 0.10.0
libtpu: 0.0.40
codegen_flags: <defaults>
</compile_context>

<pallas_src>
import functools

import numpy as np

import jax
import jax.numpy as jnp
from jax.experimental import pallas as pl
from jax.experimental.pallas import tpu as pltpu

CPAD = 128  # lane-dense channel padding used for every activation / weight


# ----------------------------------------------------------------------------
# Fused kernel: one grid step == BT batch elements, everything VMEM-resident.
# ----------------------------------------------------------------------------

def _net_fused_kernel(xim_ref, w1_ref, b1_ref,
                      w2_ref, b2_ref, w3_ref, b3_ref,
                      p1_ref, p2_ref, avg_ref, wfc_ref, bfc_ref,
                      out_ref, *, n_blocks, bt, hw1, hw2):
    f32, bf16 = jnp.float32, jnp.bfloat16
    cpad = w1_ref.shape[-1]

    def cell(a, b):
        # TODO(synk): stand-in for gnas.modules.CnnSearchModule (search cell).
        return jnp.maximum(a + b, 0.0)

    def repeat_block(x, x_prev):
        for _ in range(n_blocks):
            x, x_prev = cell(x, x_prev), x
        return x, x_prev

    def stage_boundary(x, x_prev, p_ref, w_ref, b_ref, hw_in):
        # 2x2 avg-pool (constant pooling matrix, per batch sub-slab) fused with
        # the 1x1 conv pair as ONE 256-wide block-diagonal matmul (+ folded BN).
        xc = jnp.concatenate([x.astype(bf16), x_prev.astype(bf16)], axis=-1)
        p = p_ref[...]
        pooled = jnp.concatenate(
            [jnp.dot(p, xc[t * hw_in:(t + 1) * hw_in, :],
                     preferred_element_type=f32) for t in range(bt)],
            axis=0)                                           # (bt*hw_out, 2*cpad)
        y = jnp.dot(pooled.astype(bf16), w_ref[...],
                    preferred_element_type=f32) + b_ref[...]
        return y[:, :cpad], y[:, cpad:]                       # aligned lane split

    # --- conv1 (3x3, pad 1, no bias) + folded BN1: single im2col matmul -------
    xim = xim_ref[...].reshape(bt * hw1, xim_ref.shape[-1])   # (bt*H*W, 128) bf16
    x = jnp.dot(xim, w1_ref[...], preferred_element_type=f32) + b1_ref[...]
    x_prev = x

    # --- block_1(x_prev, x_prev) ----------------------------------------------
    x, x_prev = repeat_block(x, x_prev)

    # --- avg-pool + conv2/conv2_prev + folded BN (stage 1 -> 2) ----------------
    x, x_prev = stage_boundary(x, x_prev, p1_ref, w2_ref, b2_ref, hw1)

    # --- block_2(block_2_reduce(x, x_prev), x) ---------------------------------
    x, x_prev = repeat_block(cell(x, x_prev), x)

    # --- avg-pool + conv3/conv3_prev + folded BN (stage 2 -> 3) ----------------
    x, x_prev = stage_boundary(x, x_prev, p2_ref, w3_ref, b3_ref, hw2)

    # --- block_3(block_3_reduce(x, x_prev), x) ---------------------------------
    x, _ = repeat_block(cell(x, x_prev), x)

    # --- global spatial mean, dropout=identity, fc1 = ReLU -> Linear -----------
    feat = jnp.dot(avg_ref[...], x.astype(bf16),
                   preferred_element_type=f32)                # (bt, cpad)
    logits = jnp.dot(jnp.maximum(feat, 0.0).astype(bf16), wfc_ref[...],
                     preferred_element_type=f32) + bfc_ref[...]  # (bt, 128)
    out_ref[...] = logits


# ----------------------------------------------------------------------------
# Host wrapper: one pallas_call, batch-tiled parallel grid.
# ----------------------------------------------------------------------------

def net_forward(x_nchw, params, *, n_blocks, n_classes, bt=4, cpad=CPAD):
    b, cin, h, w = x_nchw.shape
    hw1, hw2, hw3 = h * w, (h // 2) * (w // 2), (h // 4) * (w // 4)
    nb = pl.cdiv(b, bt)
    b_pad = nb * bt

    # Host-side im2col for the 3x3 conv: 9 taps x cin real channels packed into
    # one 128-lane axis (zero padded), bf16 -> conv1 is a single MXU matmul.
    x = jnp.transpose(x_nchw, (0, 2, 3, 1)).astype(jnp.float32)      # NCHW -> NHWC
    xp = jnp.pad(x, ((0, 0), (1, 1), (1, 1), (0, 0)))
    taps = [xp[:, dh:dh + h, dw:dw + w, :] for dh in range(3) for dw in range(3)]
    xim = jnp.concatenate(taps, axis=-1)                              # (B,H,W,9*cin)
    xim = jnp.pad(xim, ((0, b_pad - b), (0, 0), (0, 0), (0, cpad - 9 * cin)))
    xim = xim.reshape(b_pad, hw1, cpad).astype(jnp.bfloat16)

    # Per-batch-tile spatial-mean matrix: feat[t] = mean over the hw3 rows of slab t.
    avg = jnp.asarray(np.kron(np.eye(bt, dtype=np.float32),
                              np.full((1, hw3), 1.0 / hw3, np.float32)),
                      dtype=jnp.bfloat16)                             # (bt, bt*hw3)

    def full(shape):
        return pl.BlockSpec(shape, lambda i, _n=len(shape): (0,) * _n)

    kernel = functools.partial(_net_fused_kernel, n_blocks=n_blocks, bt=bt,
                               hw1=hw1, hw2=hw2)

    # Advisory cost estimate (dominant matmuls + operand bytes).
    flops = int(b_pad * (2 * hw1 * cpad * cpad                 # conv1
                         + 2 * hw2 * hw1 * 2 * cpad            # pool, stage 1->2
                         + 2 * hw2 * (2 * cpad) ** 2           # conv2 / conv2_prev
                         + 2 * hw3 * hw2 * 2 * cpad            # pool, stage 2->3
                         + 2 * hw3 * (2 * cpad) ** 2           # conv3 / conv3_prev
                         + 2 * cpad * cpad))                   # fc1
    bytes_accessed = int(xim.size * xim.dtype.itemsize
                         + avg.size * avg.dtype.itemsize
                         + nb * bt * cpad * 4
                         + sum(v.size * v.dtype.itemsize for v in params.values()))

    out = pl.pallas_call(
        kernel,
        grid=(nb,),
        in_specs=[
            pl.BlockSpec((bt, hw1, cpad), lambda i: (i, 0, 0)),   # im2col'd input
            full((cpad, cpad)), full((1, cpad)),                  # conv1 (BN1 folded) / shift
            full((2 * cpad, 2 * cpad)), full((1, 2 * cpad)),      # blockdiag(conv2, conv2_prev)
            full((2 * cpad, 2 * cpad)), full((1, 2 * cpad)),      # blockdiag(conv3, conv3_prev)
            full((hw2, hw1)),                                     # 2x2 avg-pool matrix, stage 1->2
            full((hw3, hw2)),                                     # 2x2 avg-pool matrix, stage 2->3
            full((bt, bt * hw3)),                                 # per-tile spatial-mean matrix
            full((cpad, cpad)), full((1, cpad)),                  # fc1 weight / bias (lane-dense)
        ],
        out_specs=pl.BlockSpec((None, bt, cpad), lambda i: (i, 0, 0)),
        out_shape=jax.ShapeDtypeStruct((nb, bt, cpad), jnp.float32),
        compiler_params=pltpu.CompilerParams(
            dimension_semantics=("parallel",),
            vmem_limit_bytes=32 * 1024 * 1024),
        cost_estimate=pl.CostEstimate(flops=flops, transcendentals=0,
                                      bytes_accessed=bytes_accessed),
    )(xim, params["w1"], params["b1"],
      params["w2bd"], params["b2bd"], params["w3bd"], params["b3bd"],
      params["p1"], params["p2"], avg, params["wfc"], params["bfc"])

    return [out.reshape(b_pad, cpad)[:b, :n_classes]]


# ----------------------------------------------------------------------------
# Parameter construction (BN folded; channel axes padded; matmul weights bf16).
# ----------------------------------------------------------------------------

def _make_pool_matrix(h, w):
    """(h//2*w//2, h*w) matrix so that P @ x_flat == 2x2 avg-pool, stride 2."""
    ho, wo = h // 2, w // 2
    m = np.zeros((ho * wo, h * w), np.float32)
    for i in range(ho):
        for j in range(wo):
            for dh in (0, 1):
                for dw in (0, 1):
                    m[i * wo + j, (2 * i + dh) * w + (2 * j + dw)] = 0.25
    return m


def init_params(key, n_channels, n_classes, h, w, cpad=CPAD):
    c = n_channels
    eps = 1e-5
    ks = jax.random.split(key, 8)
    f32, bf16 = jnp.float32, jnp.bfloat16

    def kaiming(k, cout, cin, kh, kw):
        std = (2.0 / (cin * kh * kw)) ** 0.5
        return std * jax.random.normal(k, (cout, cin, kh, kw), f32)

    def bn_affine(ch):  # inference BN with fresh running stats
        scale = jnp.full((ch,), 1.0 / np.sqrt(1.0 + eps), f32)
        shift = jnp.zeros((ch,), f32)
        return scale, shift

    def pad2(m, rows, cols, dtype):
        out = jnp.zeros((rows, cols), f32)
        return out.at[:m.shape[0], :m.shape[1]].set(m).astype(dtype)

    p = {}

    # conv1: (C,3,3,3) kaiming -> im2col-packed (27, C) matrix, BN1 scale folded.
    w1 = kaiming(ks[0], c, 3, 3, 3)
    s1, sh1 = bn_affine(c)
    w1_mat = jnp.transpose(w1, (2, 3, 1, 0)).reshape(9 * 3, c) * s1[None, :]
    p["w1"] = pad2(w1_mat, cpad, cpad, bf16)
    p["b1"] = pad2(sh1[None, :], 1, cpad, f32)

    def conv1x1(k, cout, cin):
        return kaiming(k, cout, cin, 1, 1)[:, :, 0, 0].T        # (cin, cout)

    def blockdiag_pair(ka, kb, cin, cout):
        sa, sha = bn_affine(cout)
        sb, shb = bn_affine(cout)
        wa = conv1x1(ka, cout, cin) * sa[None, :]
        wb = conv1x1(kb, cout, cin) * sb[None, :]
        wm = jnp.zeros((2 * cpad, 2 * cpad), f32)
        wm = wm.at[:cin, :cout].set(wa)
        wm = wm.at[cpad:cpad + cin, cpad:cpad + cout].set(wb)
        bias = jnp.zeros((1, 2 * cpad), f32)
        bias = bias.at[0, :cout].set(sha).at[0, cpad:cpad + cout].set(shb)
        return wm.astype(bf16), bias

    p["w2bd"], p["b2bd"] = blockdiag_pair(ks[1], ks[2], c, 2 * c)
    p["w3bd"], p["b3bd"] = blockdiag_pair(ks[3], ks[4], 2 * c, 4 * c)

    # fc1 = Sequential(ReLU, Linear(4C, n_classes)), PyTorch default Linear init;
    # output lane dim padded to 128 so the final store is an unmasked vst.
    bound = 1.0 / (4 * c) ** 0.5
    wfc = jax.random.uniform(ks[5], (4 * c, n_classes), f32, -bound, bound)
    bfc = jax.random.uniform(ks[6], (n_classes,), f32, -bound, bound)
    p["wfc"] = pad2(wfc, cpad, cpad, bf16)
    p["bfc"] = pad2(bfc[None, :], 1, cpad, f32)

    # constant per-element 2x2 average-pooling matrices (AvgPool2d(2))
    p["p1"] = jnp.asarray(_make_pool_matrix(h, w), dtype=bf16)
    p["p2"] = jnp.asarray(_make_pool_matrix(h // 2, w // 2), dtype=bf16)
    return p


if __name__ == "__main__":
    n_blocks = 2
    n_channels = 8
    n_classes = 10
    # batch a multiple of the per-step tile BT=4 and of 2 (v7x core balance)
    batch, spatial = 8, 16

    key = jax.random.PRNGKey(0)
    k_in, k_par = jax.random.split(key)
    x = jax.random.normal(k_in, (batch, 3, spatial, spatial), jnp.float32)  # NCHW
    params = init_params(k_par, n_channels, n_classes, spatial, spatial)

    fwd = jax.jit(functools.partial(net_forward, n_blocks=n_blocks,
                                    n_classes=n_classes, bt=4))
    out = jax.block_until_ready(fwd(x, params))
    assert out[0].shape == (batch, n_classes), out[0].shape
    assert bool(jnp.all(jnp.isfinite(out[0])))
    print("KERNEL_OK")
</pallas_src>

<mosaic_0001>
module attributes {stable_mosaic.version = 11 : i64} {
  func.func @_net_fused_kernel(%arg0: i32, %arg1: memref<4x256x128xbf16, #tpu.memory_space<vmem>>, %arg2: memref<128x128xbf16, #tpu.memory_space<vmem>>, %arg3: memref<1x128xf32, #tpu.memory_space<vmem>>, %arg4: memref<256x256xbf16, #tpu.memory_space<vmem>>, %arg5: memref<1x256xf32, #tpu.memory_space<vmem>>, %arg6: memref<256x256xbf16, #tpu.memory_space<vmem>>, %arg7: memref<1x256xf32, #tpu.memory_space<vmem>>, %arg8: memref<64x256xbf16, #tpu.memory_space<vmem>>, %arg9: memref<16x64xbf16, #tpu.memory_space<vmem>>, %arg10: memref<4x64xbf16, #tpu.memory_space<vmem>>, %arg11: memref<128x128xbf16, #tpu.memory_space<vmem>>, %arg12: memref<1x128xf32, #tpu.memory_space<vmem>>, %arg13: memref<1x4x128xf32, #tpu.memory_space<vmem>>) attributes {dimension_semantics = [#tpu.dimension_semantics<parallel>], iteration_bounds = array<i64: 2>, scalar_prefetch = 0 : i64, scratch_operands = 0 : i64, tpu.core_type = #tpu.core_type<tc>, window_params = [{transform_indices = @transform_0, window_bounds = array<i64: 4, 256, 128>}, {pipeline_mode = #tpu.pipeline_mode<synchronous>, transform_indices = @transform_1, window_bounds = array<i64: 128, 128>}, {pipeline_mode = #tpu.pipeline_mode<synchronous>, transform_indices = @transform_2, window_bounds = array<i64: 1, 128>}, {pipeline_mode = #tpu.pipeline_mode<synchronous>, transform_indices = @transform_3, window_bounds = array<i64: 256, 256>}, {pipeline_mode = #tpu.pipeline_mode<synchronous>, transform_indices = @transform_4, window_bounds = array<i64: 1, 256>}, {pipeline_mode = #tpu.pipeline_mode<synchronous>, transform_indices = @transform_5, window_bounds = array<i64: 256, 256>}, {pipeline_mode = #tpu.pipeline_mode<synchronous>, transform_indices = @transform_6, window_bounds = array<i64: 1, 256>}, {pipeline_mode = #tpu.pipeline_mode<synchronous>, transform_indices = @transform_7, window_bounds = array<i64: 64, 256>}, {pipeline_mode = #tpu.pipeline_mode<synchronous>, transform_indices = @transform_8, window_bounds = array<i64: 16, 64>}, {pipeline_mode = #tpu.pipeline_mode<synchronous>, transform_indices = @transform_9, window_bounds = array<i64: 4, 64>}, {pipeline_mode = #tpu.pipeline_mode<synchronous>, transform_indices = @transform_10, window_bounds = array<i64: 128, 128>}, {pipeline_mode = #tpu.pipeline_mode<synchronous>, transform_indices = @transform_11, window_bounds = array<i64: 1, 128>}, {transform_indices = @transform_12, window_bounds = array<i64: 1, 4, 128>}]} {
    %c0 = arith.constant 0 : index
    %c0_0 = arith.constant 0 : index
    %c0_1 = arith.constant 0 : index
    %0 = vector.load %arg1[%c0, %c0_0, %c0_1] : memref<4x256x128xbf16, #tpu.memory_space<vmem>>, vector<4x256x128xbf16>
    %1 = vector.shape_cast %0 : vector<4x256x128xbf16> to vector<1024x128xbf16>
    %c0_2 = arith.constant 0 : index
    %c0_3 = arith.constant 0 : index
    %2 = vector.load %arg2[%c0_2, %c0_3] : memref<128x128xbf16, #tpu.memory_space<vmem>>, vector<128x128xbf16>
    %cst = arith.constant dense<0.000000e+00> : vector<1024x128xf32>
    %3 = tpu.matmul %1, %2, %cst {dimension_numbers = #tpu.dot_dimension_numbers<[1], [0], [0], [1], [0, 0, 1, 1], [], []>} : vector<1024x128xbf16>, vector<128x128xbf16>, vector<1024x128xf32> -> vector<1024x128xf32>
    %c0_4 = arith.constant 0 : index
    %c0_5 = arith.constant 0 : index
    %4 = vector.load %arg3[%c0_4, %c0_5] : memref<1x128xf32, #tpu.memory_space<vmem>>, vector<1x128xf32>
    %5 = vector.broadcast %4 : vector<1x128xf32> to vector<1024x128xf32>
    %6 = arith.addf %3, %5 : vector<1024x128xf32>
    %7 = arith.addf %6, %6 : vector<1024x128xf32>
    %cst_6 = arith.constant 0.000000e+00 : f32
    %8 = vector.broadcast %cst_6 : f32 to vector<1024x128xf32>
    %9 = arith.maximumf %7, %8 : vector<1024x128xf32>
    %10 = arith.addf %9, %6 : vector<1024x128xf32>
    %cst_7 = arith.constant 0.000000e+00 : f32
    %11 = vector.broadcast %cst_7 : f32 to vector<1024x128xf32>
    %12 = arith.maximumf %10, %11 : vector<1024x128xf32>
    %13 = arith.truncf %12 : vector<1024x128xf32> to vector<1024x128xbf16>
    %14 = arith.truncf %9 : vector<1024x128xf32> to vector<1024x128xbf16>
    %15 = tpu.concatenate %13, %14 in 1 : vector<1024x128xbf16>, vector<1024x128xbf16> -> vector<1024x256xbf16>
    %c0_8 = arith.constant 0 : index
    %c0_9 = arith.constant 0 : index
    %16 = vector.load %arg8[%c0_8, %c0_9] : memref<64x256xbf16, #tpu.memory_space<vmem>>, vector<64x256xbf16>
    %17 = vector.extract_strided_slice %15 {offsets = [0, 0], sizes = [256, 256], strides = [1, 1]} : vector<1024x256xbf16> to vector<256x256xbf16>
    %cst_10 = arith.constant dense<0.000000e+00> : vector<64x256xf32>
    %18 = tpu.matmul %16, %17, %cst_10 {dimension_numbers = #tpu.dot_dimension_numbers<[1], [0], [0], [1], [0, 0, 1, 1], [], []>} : vector<64x256xbf16>, vector<256x256xbf16>, vector<64x256xf32> -> vector<64x256xf32>
    %19 = vector.extract_strided_slice %15 {offsets = [256, 0], sizes = [256, 256], strides = [1, 1]} : vector<1024x256xbf16> to vector<256x256xbf16>
    %cst_11 = arith.constant dense<0.000000e+00> : vector<64x256xf32>
    %20 = tpu.matmul %16, %19, %cst_11 {dimension_numbers = #tpu.dot_dimension_numbers<[1], [0], [0], [1], [0, 0, 1, 1], [], []>} : vector<64x256xbf16>, vector<256x256xbf16>, vector<64x256xf32> -> vector<64x256xf32>
    %21 = vector.extract_strided_slice %15 {offsets = [512, 0], sizes = [256, 256], strides = [1, 1]} : vector<1024x256xbf16> to vector<256x256xbf16>
    %cst_12 = arith.constant dense<0.000000e+00> : vector<64x256xf32>
    %22 = tpu.matmul %16, %21, %cst_12 {dimension_numbers = #tpu.dot_dimension_numbers<[1], [0], [0], [1], [0, 0, 1, 1], [], []>} : vector<64x256xbf16>, vector<256x256xbf16>, vector<64x256xf32> -> vector<64x256xf32>
    %23 = vector.extract_strided_slice %15 {offsets = [768, 0], sizes = [256, 256], strides = [1, 1]} : vector<1024x256xbf16> to vector<256x256xbf16>
    %cst_13 = arith.constant dense<0.000000e+00> : vector<64x256xf32>
    %24 = tpu.matmul %16, %23, %cst_13 {dimension_numbers = #tpu.dot_dimension_numbers<[1], [0], [0], [1], [0, 0, 1, 1], [], []>} : vector<64x256xbf16>, vector<256x256xbf16>, vector<64x256xf32> -> vector<64x256xf32>
    %25 = tpu.concatenate %18, %20, %22, %24 in 0 : vector<64x256xf32>, vector<64x256xf32>, vector<64x256xf32>, vector<64x256xf32> -> vector<256x256xf32>
    %26 = arith.truncf %25 : vector<256x256xf32> to vector<256x256xbf16>
    %c0_14 = arith.constant 0 : index
    %c0_15 = arith.constant 0 : index
    %27 = vector.load %arg4[%c0_14, %c0_15] : memref<256x256xbf16, #tpu.memory_space<vmem>>, vector<256x256xbf16>
    %cst_16 = arith.constant dense<0.000000e+00> : vector<256x256xf32>
    %28 = tpu.matmul %26, %27, %cst_16 {dimension_numbers = #tpu.dot_dimension_numbers<[1], [0], [0], [1], [0, 0, 1, 1], [], []>} : vector<256x256xbf16>, vector<256x256xbf16>, vector<256x256xf32> -> vector<256x256xf32>
    %c0_17 = arith.constant 0 : index
    %c0_18 = arith.constant 0 : index
    %29 = vector.load %arg5[%c0_17, %c0_18] : memref<1x256xf32, #tpu.memory_space<vmem>>, vector<1x256xf32>
    %30 = vector.broadcast %29 : vector<1x256xf32> to vector<256x256xf32>
    %31 = arith.addf %28, %30 : vector<256x256xf32>
    %32 = vector.extract_strided_slice %31 {offsets = [0, 0], sizes = [256, 128], strides = [1, 1]} : vector<256x256xf32> to vector<256x128xf32>
    %33 = vector.extract_strided_slice %31 {offsets = [0, 128], sizes = [256, 128], strides = [1, 1]} : vector<256x256xf32> to vector<256x128xf32>
    %34 = arith.addf %32, %33 : vector<256x128xf32>
    %cst_19 = arith.constant 0.000000e+00 : f32
    %35 = vector.broadcast %cst_19 : f32 to vector<256x128xf32>
    %36 = arith.maximumf %34, %35 : vector<256x128xf32>
    %37 = arith.addf %36, %32 : vector<256x128xf32>
    %cst_20 = arith.constant 0.000000e+00 : f32
    %38 = vector.broadcast %cst_20 : f32 to vector<256x128xf32>
    %39 = arith.maximumf %37, %38 : vector<256x128xf32>
    %40 = arith.addf %39, %36 : vector<256x128xf32>
    %cst_21 = arith.constant 0.000000e+00 : f32
    %41 = vector.broadcast %cst_21 : f32 to vector<256x128xf32>
    %42 = arith.maximumf %40, %41 : vector<256x128xf32>
    %43 = arith.truncf %42 : vector<256x128xf32> to vector<256x128xbf16>
    %44 = arith.truncf %39 : vector<256x128xf32> to vector<256x128xbf16>
    %45 = tpu.concatenate %43, %44 in 1 : vector<256x128xbf16>, vector<256x128xbf16> -> vector<256x256xbf16>
    %c0_22 = arith.constant 0 : index
    %c0_23 = arith.constant 0 : index
    %46 = vector.load %arg9[%c0_22, %c0_23] : memref<16x64xbf16, #tpu.memory_space<vmem>>, vector<16x64xbf16>
    %47 = vector.extract_strided_slice %45 {offsets = [0, 0], sizes = [64, 256], strides = [1, 1]} : vector<256x256xbf16> to vector<64x256xbf16>
    %cst_24 = arith.constant dense<0.000000e+00> : vector<16x256xf32>
    %48 = tpu.matmul %46, %47, %cst_24 {dimension_numbers = #tpu.dot_dimension_numbers<[1], [0], [0], [1], [0, 0, 1, 1], [], []>} : vector<16x64xbf16>, vector<64x256xbf16>, vector<16x256xf32> -> vector<16x256xf32>
    %49 = vector.extract_strided_slice %45 {offsets = [64, 0], sizes = [64, 256], strides = [1, 1]} : vector<256x256xbf16> to vector<64x256xbf16>
    %cst_25 = arith.constant dense<0.000000e+00> : vector<16x256xf32>
    %50 = tpu.matmul %46, %49, %cst_25 {dimension_numbers = #tpu.dot_dimension_numbers<[1], [0], [0], [1], [0, 0, 1, 1], [], []>} : vector<16x64xbf16>, vector<64x256xbf16>, vector<16x256xf32> -> vector<16x256xf32>
    %51 = vector.extract_strided_slice %45 {offsets = [128, 0], sizes = [64, 256], strides = [1, 1]} : vector<256x256xbf16> to vector<64x256xbf16>
    %cst_26 = arith.constant dense<0.000000e+00> : vector<16x256xf32>
    %52 = tpu.matmul %46, %51, %cst_26 {dimension_numbers = #tpu.dot_dimension_numbers<[1], [0], [0], [1], [0, 0, 1, 1], [], []>} : vector<16x64xbf16>, vector<64x256xbf16>, vector<16x256xf32> -> vector<16x256xf32>
    %53 = vector.extract_strided_slice %45 {offsets = [192, 0], sizes = [64, 256], strides = [1, 1]} : vector<256x256xbf16> to vector<64x256xbf16>
    %cst_27 = arith.constant dense<0.000000e+00> : vector<16x256xf32>
    %54 = tpu.matmul %46, %53, %cst_27 {dimension_numbers = #tpu.dot_dimension_numbers<[1], [0], [0], [1], [0, 0, 1, 1], [], []>} : vector<16x64xbf16>, vector<64x256xbf16>, vector<16x256xf32> -> vector<16x256xf32>
    %55 = tpu.concatenate %48, %50, %52, %54 in 0 : vector<16x256xf32>, vector<16x256xf32>, vector<16x256xf32>, vector<16x256xf32> -> vector<64x256xf32>
    %56 = arith.truncf %55 : vector<64x256xf32> to vector<64x256xbf16>
    %c0_28 = arith.constant 0 : index
    %c0_29 = arith.constant 0 : index
    %57 = vector.load %arg6[%c0_28, %c0_29] : memref<256x256xbf16, #tpu.memory_space<vmem>>, vector<256x256xbf16>
    %cst_30 = arith.constant dense<0.000000e+00> : vector<64x256xf32>
    %58 = tpu.matmul %56, %57, %cst_30 {dimension_numbers = #tpu.dot_dimension_numbers<[1], [0], [0], [1], [0, 0, 1, 1], [], []>} : vector<64x256xbf16>, vector<256x256xbf16>, vector<64x256xf32> -> vector<64x256xf32>
    %c0_31 = arith.constant 0 : index
    %c0_32 = arith.constant 0 : index
    %59 = vector.load %arg7[%c0_31, %c0_32] : memref<1x256xf32, #tpu.memory_space<vmem>>, vector<1x256xf32>
    %60 = vector.broadcast %59 : vector<1x256xf32> to vector<64x256xf32>
    %61 = arith.addf %58, %60 : vector<64x256xf32>
    %62 = vector.extract_strided_slice %61 {offsets = [0, 0], sizes = [64, 128], strides = [1, 1]} : vector<64x256xf32> to vector<64x128xf32>
    %63 = vector.extract_strided_slice %61 {offsets = [0, 128], sizes = [64, 128], strides = [1, 1]} : vector<64x256xf32> to vector<64x128xf32>
    %64 = arith.addf %62, %63 : vector<64x128xf32>
    %cst_33 = arith.constant 0.000000e+00 : f32
    %65 = vector.broadcast %cst_33 : f32 to vector<64x128xf32>
    %66 = arith.maximumf %64, %65 : vector<64x128xf32>
    %67 = arith.addf %66, %62 : vector<64x128xf32>
    %cst_34 = arith.constant 0.000000e+00 : f32
    %68 = vector.broadcast %cst_34 : f32 to vector<64x128xf32>
    %69 = arith.maximumf %67, %68 : vector<64x128xf32>
    %70 = arith.addf %69, %66 : vector<64x128xf32>
    %cst_35 = arith.constant 0.000000e+00 : f32
    %71 = vector.broadcast %cst_35 : f32 to vector<64x128xf32>
    %72 = arith.maximumf %70, %71 : vector<64x128xf32>
    %c0_36 = arith.constant 0 : index
    %c0_37 = arith.constant 0 : index
    %73 = vector.load %arg10[%c0_36, %c0_37] : memref<4x64xbf16, #tpu.memory_space<vmem>>, vector<4x64xbf16>
    %74 = arith.truncf %72 : vector<64x128xf32> to vector<64x128xbf16>
    %cst_38 = arith.constant dense<0.000000e+00> : vector<4x128xf32>
    %75 = tpu.matmul %73, %74, %cst_38 {dimension_numbers = #tpu.dot_dimension_numbers<[1], [0], [0], [1], [0, 0, 1, 1], [], []>} : vector<4x64xbf16>, vector<64x128xbf16>, vector<4x128xf32> -> vector<4x128xf32>
    %cst_39 = arith.constant 0.000000e+00 : f32
    %76 = vector.broadcast %cst_39 : f32 to vector<4x128xf32>
    %77 = arith.maximumf %75, %76 : vector<4x128xf32>
    %78 = arith.truncf %77 : vector<4x128xf32> to vector<4x128xbf16>
    %c0_40 = arith.constant 0 : index
    %c0_41 = arith.constant 0 : index
    %79 = vector.load %arg11[%c0_40, %c0_41] : memref<128x128xbf16, #tpu.memory_space<vmem>>, vector<128x128xbf16>
    %cst_42 = arith.constant dense<0.000000e+00> : vector<4x128xf32>
    %80 = tpu.matmul %78, %79, %cst_42 {dimension_numbers = #tpu.dot_dimension_numbers<[1], [0], [0], [1], [0, 0, 1, 1], [], []>} : vector<4x128xbf16>, vector<128x128xbf16>, vector<4x128xf32> -> vector<4x128xf32>
    %c0_43 = arith.constant 0 : index
    %c0_44 = arith.constant 0 : index
    %81 = vector.load %arg12[%c0_43, %c0_44] : memref<1x128xf32, #tpu.memory_space<vmem>>, vector<1x128xf32>
    %82 = vector.broadcast %81 : vector<1x128xf32> to vector<4x128xf32>
    %83 = arith.addf %80, %82 : vector<4x128xf32>
    %c0_45 = arith.constant 0 : index
    %c0_46 = arith.constant 0 : index
    %c0_47 = arith.constant 0 : index
    %84 = vector.load %arg13[%c0_45, %c0_46, %c0_47] : memref<1x4x128xf32, #tpu.memory_space<vmem>>, vector<1x4x128xf32>
    %85 = vector.shape_cast %84 : vector<1x4x128xf32> to vector<4x128xf32>
    %86 = vector.shape_cast %83 : vector<4x128xf32> to vector<1x4x128xf32>
    tpu.vector_store %arg13[%c0_45, %c0_46, %c0_47], %86 {strides = array<i32>} : memref<1x4x128xf32, #tpu.memory_space<vmem>>, vector<1x4x128xf32>,
    return
  }
  func.func @transform_0(%arg0: i32) -> (i32, i32, i32) {
    %c0_i32 = arith.constant 0 : i32
    %c0_i32_0 = arith.constant 0 : i32
    %c0_i32_1 = arith.constant 0 : i32
    return %arg0, %c0_i32, %c0_i32_0 : i32, i32, i32
  }
  func.func @transform_1(%arg0: i32) -> (i32, i32) {
    %c0_i32 = arith.constant 0 : i32
    %c0_i32_0 = arith.constant 0 : i32
    %c0_i32_1 = arith.constant 0 : i32
    return %c0_i32, %c0_i32_0 : i32, i32
  }
  func.func @transform_2(%arg0: i32) -> (i32, i32) {
    %c0_i32 = arith.constant 0 : i32
    %c0_i32_0 = arith.constant 0 : i32
    %c0_i32_1 = arith.constant 0 : i32
    return %c0_i32, %c0_i32_0 : i32, i32
  }
  func.func @transform_3(%arg0: i32) -> (i32, i32) {
    %c0_i32 = arith.constant 0 : i32
    %c0_i32_0 = arith.constant 0 : i32
    %c0_i32_1 = arith.constant 0 : i32
    return %c0_i32, %c0_i32_0 : i32, i32
  }
  func.func @transform_4(%arg0: i32) -> (i32, i32) {
    %c0_i32 = arith.constant 0 : i32
    %c0_i32_0 = arith.constant 0 : i32
    %c0_i32_1 = arith.constant 0 : i32
    return %c0_i32, %c0_i32_0 : i32, i32
  }
  func.func @transform_5(%arg0: i32) -> (i32, i32) {
    %c0_i32 = arith.constant 0 : i32
    %c0_i32_0 = arith.constant 0 : i32
    %c0_i32_1 = arith.constant 0 : i32
    return %c0_i32, %c0_i32_0 : i32, i32
  }
  func.func @transform_6(%arg0: i32) -> (i32, i32) {
    %c0_i32 = arith.constant 0 : i32
    %c0_i32_0 = arith.constant 0 : i32
    %c0_i32_1 = arith.constant 0 : i32
    return %c0_i32, %c0_i32_0 : i32, i32
  }
  func.func @transform_7(%arg0: i32) -> (i32, i32) {
    %c0_i32 = arith.constant 0 : i32
    %c0_i32_0 = arith.constant 0 : i32
    %c0_i32_1 = arith.constant 0 : i32
    return %c0_i32, %c0_i32_0 : i32, i32
  }
  func.func @transform_8(%arg0: i32) -> (i32, i32) {
    %c0_i32 = arith.constant 0 : i32
    %c0_i32_0 = arith.constant 0 : i32
    %c0_i32_1 = arith.constant 0 : i32
    return %c0_i32, %c0_i32_0 : i32, i32
  }
  func.func @transform_9(%arg0: i32) -> (i32, i32) {
    %c0_i32 = arith.constant 0 : i32
    %c0_i32_0 = arith.constant 0 : i32
    %c0_i32_1 = arith.constant 0 : i32
    return %c0_i32, %c0_i32_0 : i32, i32
  }
  func.func @transform_10(%arg0: i32) -> (i32, i32) {
    %c0_i32 = arith.constant 0 : i32
    %c0_i32_0 = arith.constant 0 : i32
    %c0_i32_1 = arith.constant 0 : i32
    return %c0_i32, %c0_i32_0 : i32, i32
  }
  func.func @transform_11(%arg0: i32) -> (i32, i32) {
    %c0_i32 = arith.constant 0 : i32
    %c0_i32_0 = arith.constant 0 : i32
    %c0_i32_1 = arith.constant 0 : i32
    return %c0_i32, %c0_i32_0 : i32, i32
  }
  func.func @transform_12(%arg0: i32) -> (i32, i32, i32) {
    %c0_i32 = arith.constant 0 : i32
    %c0_i32_0 = arith.constant 0 : i32
    %c0_i32_1 = arith.constant 0 : i32
    return %arg0, %c0_i32, %c0_i32_0 : i32, i32, i32
  }
}

</mosaic_0001>

<bundles_post_ra>
// kernel: net_forward.1
= control target key start
LH: loop header
LB: loop body
LE: loop exit
PB: predicated region body
PF: predicated region fallthrough
CT: control target
= control target key end

     0   :  { %17 = vsyncpa [#allocation3], 0  ;;  %s5543_s0 = inlined_call_operand.vmem [shape: bf16[8,256,128], index: 0, kind: input, shape index: {}]   ;;  %s5544_s1 = inlined_call_operand.vmem [shape: bf16[128,128], index: 1, kind: input, shape index: {}]   ;;  %s5545_s2 = inlined_call_operand.vmem [shape: f32[1,128], index: 2, kind: input, shape index: {}]   ;;  %s5546_s3 = inlined_call_operand.vmem [shape: bf16[256,256], index: 3, kind: input, shape index: {}]   ;;  %s5547_s4 = inlined_call_operand.vmem [shape: f32[1,256], index: 4, kind: input, shape index: {}]   ;;  %s5548_s5 = inlined_call_operand.vmem [shape: bf16[256,256], index: 5, kind: input, shape index: {}]   ;;  %s5549_s6 = inlined_call_operand.vmem [shape: f32[1,256], index: 6, kind: input, shape index: {}]   ;;  %s5550_s7 = inlined_call_operand.vmem [shape: bf16[64,256], index: 7, kind: input, shape index: {}]   ;;  %s5551_s8 = inlined_call_operand.vmem [shape: bf16[16,64], index: 8, kind: input, shape index: {}]   ;;  %s5552_s9 = inlined_call_operand.vmem [shape: bf16[4,64], index: 9, kind: input, shape index: {}]   ;;  %s5553_s10 = inlined_call_operand.vmem [shape: bf16[128,128], index: 10, kind: input, shape index: {}]   ;;  %s5554_s11 = inlined_call_operand.vmem [shape: f32[1,128], index: 11, kind: input, shape index: {}]   ;;  %s5555_s12 = inlined_call_operand.hbm [shape: f32[2,4,128], index: 12, kind: output, shape index: {}]  }
   0x1   :  { %19 = vsyncpa [#allocation3 + $0x1], 0  ;;  %s4739_s21 = smov 0   ;;  %s4741_s22 = smov 0  }
   0x2   :  { %s4743_s23 = smov 0   ;;  %s4745_s24 = smov 0  }
   0x3 LB: > { %s4760_s25 = sadd.s32 4294967295, %s4668_s24   ;;  %s3930_s26 = sadd.s32 4294967294, %s4668_s24   ;;  %s4668_s24 = sphi %s4745_s24, %s5563_s24   ;;  %s4664_s23 = sphi %s4743_s23, %s5562_s23   ;;  %s4660_s22 = sphi %s4741_s22, %s5561_s22   ;;  %s4656_s21 = sphi %s4739_s21, %s5560_s21  }
   0x4   : > { %s4764_s27 = sadd.s32 1, %s4668_s24   ;;  %s289_s28 = sadd.s32 1, %s4664_s23 }
   0x5   : > { %s286_s29 = ssub.s32 %s4668_s24, %s4764_s27  ;;  %p299_p0 = scmp.ne.s32.totalorder %s4664_s23, %s4660_s22 }
   0x6   : > { %p287_p1 = scmp.eq.s32.totalorder %s286_s29, 0  ;;  %p300_p2 = scmp.eq.s32.totalorder %s4760_s25, 1 }
   0x7   : > { %p305_p3 = scmp.ne.s32.totalorder %s4660_s22, %s4656_s21  ;;  %p306_p4 = scmp.eq.s32.totalorder %s3930_s26, 1 }
   0x8   : > { %s4775_s30 = scalar_select %p287_p1, %s4664_s23, %s289_s28  }
   0x9   : > { %p4777_p5 = por %p300_p2, %p299_p0  ;;  %p4781_p6 = por %p306_p4, %p305_p3 }
   0xa   : > { %5556 = sst [smem:[#allocation5_spill]] %s4775_s30  ;;  %p3933_p7 = scmp.ge.s32.totalorder %s4668_s24, 1 }
   0xb   : > { %p367_p8 = scmp.lt.s32.totalorder %s4668_s24, 3 }
   0xd   : > { %p368_p9 = pnand %p3933_p7, %p367_p8 }
   0xe   : > { %v4407_v0 = vld [vmem:[%s5544_s1] sm:$0xff] (!%p368_p9)   ;;  %s3935_s17 = sshll.u32 (!%p368_p9), %s4760_s25, 2  ;;  %v4408_v1 = vld [vmem:[%s5544_s1 + $0x8] sm:$0xff] (!%p368_p9)   ;;  %v4409_v2 = vld [vmem:[%s5544_s1 + $0x10] sm:$0xff] (!%p368_p9)   ;;  %vm3186_vm0 = vcmask (!%p368_p9), 523264   ;;  %vm4672_vm1 = vmmov (!%p368_p9), 0  }
   0xf   : > { %371 = sbr.rel (%p368_p9) target bundleno = 1901 (0x76d), region = 68  ;;  %p411_p10 = scmp.lt.s32.totalorder (!%p368_p9), %s3935_s17, 7  ;;  %4189 = vmatprep.subr.bf16.mxu0 (!%p368_p9), %v4407_v0  ;;  %v4410_v3 = vld [vmem:[%s5544_s1 + $0x18] sm:$0xff] (!%p368_p9)   ;;  %v4411_v5 = vld [vmem:[%s5544_s1 + $0x20] sm:$0xff] (!%p368_p9)   ;;  %v4412_v6 = vld [vmem:[%s5544_s1 + $0x28] sm:$0xff] (!%p368_p9)  }
  0x10   : > { %4190 = vmatpush3.bf16.msra.mxu0 (!%p368_p9), %v4407_v0  ;;  %v4413_v7 = vld [vmem:[%s5544_s1 + $0x30] sm:$0xff] (!%p368_p9)   ;;  %v4414_v8 = vld [vmem:[%s5544_s1 + $0x38] sm:$0xff] (!%p368_p9)   ;;  %v4863_v51 = vld [vmem:[%s5550_s7 + $0x4] ss:$8 sps:$4 sm:$0xff] (!%p368_p9)   ;;  %s407_s18 = sand.u32 (!%p368_p9), 1, %s4660_s22  }
  0x11   : > { %4191 = vmatprep.subr.bf16.mxu0 (!%p368_p9), %v4408_v1  ;;  %2266 = vmatprep.mubr.bf16.mxu1 (!%p368_p9), %v4863_v51  ;;  %v4881_v0 = vld [vmem:[%s5545_s2] ss:$0 sm:$0xff] (!%p368_p9)  ;;  %s3934_s19 = sshll.u32 (!%p368_p9), %s407_s18, 2 }
  0x12   : > { %s409_s20 = scalar_lea.vmem (!%p368_p9), [#allocation2], %s3934_s19  ;;  %s4673_s19 = smov (!%p368_p9), [#allocation2]  }
  0x13   : > { %s3871_s26 = sshll.u32 (!%p368_p9), %s409_s20, 4  ;;  %s4610_s30 = sshll.u32 (!%p368_p9), %s4673_s19, 4  ;;  %s5503_s26 = int_to_ptr.vmem [resolvable:$true] %s3871_s26  ;;  %s4611_s30 = int_to_ptr.vmem [resolvable:$false] %s4610_s30 }
  0x14   : > { %4192 = vmatpush3.bf16.msra.mxu0 (!%p368_p9), %v4408_v1  ;;  %p4613_p0 = scmp.lt.s32.totalorder (!%p368_p9), %s5503_s26, %s4611_s30 }
  0x15   : > { %4193 = vmatprep.subr.bf16.mxu0 (!%p368_p9), %v4409_v2 }
  0x16   : > { %s5565_s17 = smov (!%p411_p10, %s3935_s17), 7 }
  0x17   : > { %s4102_s28 = sshll.u32 %s5565_s17, 7  ;;  %s3858_s17 = scalar_lea.sflag [#allocation3], %s407_s18 }
  0x18   : > { %s4800_s15 = scalar_lea.vmem %s5543_s0, %s4102_s28  ;;  %4194 = vmatpush3.bf16.msra.mxu0 %v4409_v2  ;;  %s4612_s28 = scalar_lea.vmem %s4611_s30, 128 }
  0x19   : > { %v4415_v4 = vld [vmem:[%s4800_s15] sm:$0xff]   ;;  %4195 = vmatprep.subr.bf16.mxu0 %v4410_v3  ;;  %v4416_v9 = vld [vmem:[%s4800_s15 + $0x8] sm:$0xff]   ;;  %v4417_v10 = vld [vmem:[%s4800_s15 + $0x10] sm:$0xff]  }
  0x1a   : > { %4205 = vmatprep.mubr.bf16.mxu0 %v4415_v4  ;;  %v4418_v11 = vld [vmem:[%s4800_s15 + $0x18] sm:$0xff]   ;;  %v4419_v12 = vld [vmem:[%s4800_s15 + $0x20] sm:$0xff]   ;;  %v4420_v13 = vld [vmem:[%s4800_s15 + $0x28] sm:$0xff]  }
  0x1b   : > { %v4421_v14 = vld [vmem:[%s4800_s15 + $0x30] sm:$0xff]   ;;  %v4422_v15 = vld [vmem:[%s4800_s15 + $0x38] sm:$0xff]   ;;  %v4423_v16 = vld [vmem:[%s4800_s15 + $0x40] sm:$0xff]  }
  0x1c   : > { %4196 = vmatpush3.bf16.msra.mxu0 %v4410_v3  ;;  %v4424_v17 = vld [vmem:[%s4800_s15 + $0x48] sm:$0xff]   ;;  %v4425_v18 = vld [vmem:[%s4800_s15 + $0x50] sm:$0xff]   ;;  %v4426_v19 = vld [vmem:[%s4800_s15 + $0x58] sm:$0xff]  }
  0x1d   : > { %4197 = vmatprep.subr.bf16.mxu0 %v4411_v5  ;;  %v4427_v20 = vld [vmem:[%s4800_s15 + $0x60] sm:$0xff]   ;;  %v4428_v21 = vld [vmem:[%s4800_s15 + $0x68] sm:$0xff]   ;;  %v4429_v22 = vld [vmem:[%s4800_s15 + $0x70] sm:$0xff]  }
  0x1e   : > { %v4430_v23 = vld [vmem:[%s4800_s15 + $0x78] sm:$0xff]   ;;  %v4431_v24 = vld [vmem:[%s4800_s15 + $0x80] sm:$0xff]   ;;  %v4432_v25 = vld [vmem:[%s4800_s15 + $0x88] sm:$0xff]  }
  0x1f   : > { %v4433_v26 = vld [vmem:[%s4800_s15 + $0x90] sm:$0xff]   ;;  %v4434_v27 = vld [vmem:[%s4800_s15 + $0x98] sm:$0xff]   ;;  %v4435_v28 = vld [vmem:[%s4800_s15 + $0xa0] sm:$0xff]  }
  0x20   : > { %4198 = vmatpush3.bf16.msra.mxu0 %v4411_v5  ;;  %v4436_v29 = vld [vmem:[%s4800_s15 + $0xa8] sm:$0xff]   ;;  %v4437_v30 = vld [vmem:[%s4800_s15 + $0xb0] sm:$0xff]   ;;  %v4438_v31 = vld [vmem:[%s4800_s15 + $0xb8] sm:$0xff]  }
  0x21   : > { %4199 = vmatprep.subr.bf16.mxu0 %v4412_v6  ;;  %v4439_v32 = vld [vmem:[%s4800_s15 + $0xc0] sm:$0xff]   ;;  %v4440_v33 = vld [vmem:[%s4800_s15 + $0xc8] sm:$0xff]   ;;  %v4441_v34 = vld [vmem:[%s4800_s15 + $0xd0] sm:$0xff]  }
  0x22   : > { %v4442_v35 = vld [vmem:[%s4800_s15 + $0xd8] sm:$0xff]   ;;  %v4443_v36 = vld [vmem:[%s4800_s15 + $0xe0] sm:$0xff]   ;;  %v4444_v37 = vld [vmem:[%s4800_s15 + $0xe8] sm:$0xff]  }
  0x23   : > { %v4445_v38 = vld [vmem:[%s4800_s15 + $0xf0] sm:$0xff]   ;;  %v4446_v39 = vld [vmem:[%s4800_s15 + $0xf8] sm:$0xff]   ;;  %v4447_v40 = vld [vmem:[%s4800_s15 + $0x100] sm:$0xff]  }
  0x24   : > { %4200 = vmatpush3.bf16.msra.mxu0 %v4412_v6  ;;  %v4448_v41 = vld [vmem:[%s4800_s15 + $0x108] sm:$0xff]   ;;  %v4449_v42 = vld [vmem:[%s4800_s15 + $0x110] sm:$0xff]   ;;  %v4450_v43 = vld [vmem:[%s4800_s15 + $0x118] sm:$0xff]  }
  0x25   : > { %4201 = vmatprep.subr.bf16.mxu0 %v4413_v7  ;;  %v4451_v44 = vld [vmem:[%s4800_s15 + $0x120] sm:$0xff]   ;;  %v4452_v45 = vld [vmem:[%s4800_s15 + $0x128] sm:$0xff]   ;;  %v4453_v46 = vld [vmem:[%s4800_s15 + $0x130] sm:$0xff]  }
  0x26   : > { %v4454_v47 = vld [vmem:[%s4800_s15 + $0x138] sm:$0xff]   ;;  %v4455_v48 = vld [vmem:[%s4800_s15 + $0x140] sm:$0xff]   ;;  %v4456_v49 = vld [vmem:[%s4800_s15 + $0x148] sm:$0xff]  }
  0x27   : > { %v4457_v50 = vld [vmem:[%s4800_s15 + $0x150] sm:$0xff]   ;;  %v4458_v52 = vld [vmem:[%s4800_s15 + $0x158] sm:$0xff]   ;;  %v4459_v53 = vld [vmem:[%s4800_s15 + $0x160] sm:$0xff]  }
  0x28   : > { %4202 = vmatpush3.bf16.msra.mxu0 %v4413_v7  ;;  %v4460_v54 = vld [vmem:[%s4800_s15 + $0x168] sm:$0xff]   ;;  %v4461_v55 = vld [vmem:[%s4800_s15 + $0x170] sm:$0xff]   ;;  %v4462_v56 = vld [vmem:[%s4800_s15 + $0x178] sm:$0xff]  }
  0x29   : > { %4203 = vmatprep.subr.bf16.mxu0 %v4414_v8  ;;  %v4463_v57 = vld [vmem:[%s4800_s15 + $0x180] sm:$0xff]   ;;  %v4464_v58 = vld [vmem:[%s4800_s15 + $0x188] sm:$0xff]   ;;  %v4465_v59 = vld [vmem:[%s4800_s15 + $0x190] sm:$0xff]  }
  0x2a   : > { %v4466_v60 = vld [vmem:[%s4800_s15 + $0x198] sm:$0xff]   ;;  %v4467_v61 = vld [vmem:[%s4800_s15 + $0x1a0] sm:$0xff]   ;;  %v4468_v62 = vld [vmem:[%s4800_s15 + $0x1a8] sm:$0xff]  }
  0x2b   : > { %v4469_v63 = vld [vmem:[%s4800_s15 + $0x1b0] sm:$0xff]   ;;  %v4470_v4 = vld [vmem:[%s4800_s15 + $0x1b8] sm:$0xff]   ;;  %v4471_v7 = vld [vmem:[%s4800_s15 + $0x1c0] sm:$0xff]  }
  0x2c   : > { %4204 = vmatpush3.bf16.msra.mxu0 %v4414_v8 }
  0x2f   : > { %4206 = vmatmul.mubr.bf16.vlgmr.msra.gmra.mrb[0].mxu0 %v4416_v9 }
  0x30   : > { %4209 = vmatprep.mubr.bf16.mxu0 %v4417_v10 }
  0x37   : > { %4210 = vmatmul.mubr.bf16.gmra.mrb[4].mxu0 %v4418_v11 }
  0x38   : > { %4213 = vmatprep.mubr.bf16.mxu0 %v4419_v12 }
  0x3f   : > { %4214 = vmatmul.mubr.bf16.gmra.mrb[8].mxu0 %v4420_v13 }
  0x40   : > { %4217 = vmatprep.mubr.bf16.mxu0 %v4421_v14 }
  0x47   : > { %4218 = vmatmul.mubr.bf16.gmra.mrb[12].mxu0 %v4422_v15 }
  0x48   : > { %4221 = vmatprep.mubr.bf16.mxu0 %v4423_v16 }
  0x4f   : > { %4222 = vmatmul.mubr.bf16.gmra.mrb[16].mxu0 %v4424_v17 }
  0x50   : > { %4225 = vmatprep.mubr.bf16.mxu0 %v4425_v18 }
  0x57   : > { %4226 = vmatmul.mubr.bf16.gmra.mrb[20].mxu0 %v4426_v19 }
  0x58   : > { %4229 = vmatprep.mubr.bf16.mxu0 %v4427_v20 }
  0x5f   : > { %4230 = vmatmul.mubr.bf16.gmra.mrb[24].mxu0 %v4428_v21 }
  0x60   : > { %4233 = vmatprep.mubr.bf16.mxu0 %v4429_v22 }
  0x67   : > { %4234 = vmatmul.mubr.bf16.gmra.mrb[28].mxu0 %v4430_v23 }
  0x68   : > { %4237 = vmatprep.mubr.bf16.mxu0 %v4431_v24 }
  0x6f   : > { %4238 = vmatmul.mubr.bf16.gmra.mrb[32].mxu0 %v4432_v25  ;;  %v4472_v25 = vld [vmem:[%s4800_s15 + $0x1c8] sm:$0xff]  }
  0x70   : > { %4241 = vmatprep.mubr.bf16.mxu0 %v4433_v26 }
  0x77   : > { %4242 = vmatmul.mubr.bf16.gmra.mrb[36].mxu0 %v4434_v27 }
  0x78   : > { %4245 = vmatprep.mubr.bf16.mxu0 %v4435_v28 }
  0x7f   : > { %4246 = vmatmul.mubr.bf16.gmra.mrb[40].mxu0 %v4436_v29 }
  0x80   : > { %4249 = vmatprep.mubr.bf16.mxu0 %v4437_v30 }
  0x87   : > { %4250 = vmatmul.mubr.bf16.gmra.mrb[44].mxu0 %v4438_v31  ;;  %v4473_v31 = vld [vmem:[%s4800_s15 + $0x1d0] sm:$0xff]  }
  0x88   : > { %4253 = vmatprep.mubr.bf16.mxu0 %v4439_v32 }
  0x8f   : > { %4254 = vmatmul.mubr.bf16.gmra.mrb[48].mxu0 %v4440_v33 }
  0x90   : > { %4257 = vmatprep.mubr.bf16.mxu0 %v4441_v34 }
  0x97   : > { %4258 = vmatmul.mubr.bf16.gmra.mrb[52].mxu0 %v4442_v35 }
  0x98   : > { %4261 = vmatprep.mubr.bf16.mxu0 %v4443_v36 }
  0x9f   : > { %4262 = vmatmul.mubr.bf16.gmra.mrb[56].mxu0 %v4444_v37 }
  0xa0   : > { %4265 = vmatprep.mubr.bf16.mxu0 %v4445_v38 }
  0xa7   : > { %4266 = vmatmul.mubr.bf16.gmra.mrb[60].mxu0 %v4446_v39 }
  0xa8   : > { %4269 = vmatprep.mubr.bf16.mxu0 %v4447_v40 }
  0xaf   : > { %4270 = vmatmul.mubr.bf16.gmra.mrb[64].mxu0 %v4448_v41 }
  0xb0   : > { %4273 = vmatprep.mubr.bf16.mxu0 %v4449_v42 }
  0xb7   : > { %4274 = vmatmul.mubr.bf16.gmra.mrb[68].mxu0 %v4450_v43 }
  0xb8   : > { %4277 = vmatprep.mubr.bf16.mxu0 %v4451_v44 }
  0xbf   : > { %4278 = vmatmul.mubr.bf16.gmra.mrb[72].mxu0 %v4452_v45 }
  0xc0   : > { %4281 = vmatprep.mubr.bf16.mxu0 %v4453_v46 }
  0xc7   : > { %4282 = vmatmul.mubr.bf16.gmra.mrb[76].mxu0 %v4454_v47 }
  0xc8   : > { %4285 = vmatprep.mubr.bf16.mxu0 %v4455_v48 }
  0xcf   : > { %4286 = vmatmul.mubr.bf16.gmra.mrb[80].mxu0 %v4456_v49 }
  0xd0   : > { %4289 = vmatprep.mubr.bf16.mxu0 %v4457_v50 }
  0xd7   : > { %4290 = vmatmul.mubr.bf16.gmra.mrb[84].mxu0 %v4458_v52 }
  0xd8   : > { %4293 = vmatprep.mubr.bf16.mxu0 %v4459_v53 }
  0xdf   : > { %4294 = vmatmul.mubr.bf16.gmra.mrb[88].mxu0 %v4460_v54 }
  0xe0   : > { %4297 = vmatprep.mubr.bf16.mxu0 %v4461_v55 }
  0xe7   : > { %4298 = vmatmul.mubr.bf16.gmra.mrb[92].mxu0 %v4462_v56  ;;  %v4474_v56 = vld [vmem:[%s4800_s15 + $0x1d8] sm:$0xff]  }
  0xe8   : > { %4301 = vmatprep.mubr.bf16.mxu0 %v4463_v57 }
  0xef   : > { %4302 = vmatmul.mubr.bf16.gmra.mrb[96].mxu0 %v4464_v58 }
  0xf0   : > { %4305 = vmatprep.mubr.bf16.mxu0 %v4465_v59 }
  0xf7   : > { %4306 = vmatmul.mubr.bf16.gmra.mrb[100].mxu0 %v4466_v60 }
  0xf8   : > { %4309 = vmatprep.mubr.bf16.mxu0 %v4467_v61 }
  0xff   : > { %4310 = vmatmul.mubr.bf16.gmra.mrb[104].mxu0 %v4468_v62  ;;  %v4475_v62 = vld [vmem:[%s4800_s15 + $0x1e0] sm:$0xff]  }
 0x100   : > { %4313 = vmatprep.mubr.bf16.mxu0 %v4469_v63 }
 0x102   : > { %v4207_v1 = vpop.f32.mrb[0].mxu0 }
 0x103   : > { %v1044_v2 = vadd.f32 %v4207_v1, %v4881_v0  ;;  %v1035_v3 = vpop.f32.mrb[1].mxu0 }
 0x104   : > { %v1036_v5 = vadd.f32 %v4881_v0, %v1035_v3  ;;  %v4208_v6 = vpop.f32.mrb[2].mxu0 }
 0x105   : > { %v1548_v8 = vadd.f32 %v1044_v2, %v1044_v2  ;;  %v1047_v9 = vadd.f32 %v4208_v6, %v4881_v0  ;;  %v1038_v10 = vpop.f32.mrb[3].mxu0 }
 0x106   : > { %v1039_v11 = vadd.f32 %v4881_v0, %v1038_v10  ;;  %v1546_v12 = vadd.f32 %v1036_v5, %v1036_v5 }
 0x107   : > { %v1676_v13 = vmax.f32 %v1548_v8, 0.0  ;;  %v1549_v14 = vadd.f32 %v1047_v9, %v1047_v9  ;;  %4314 = vmatmul.mubr.bf16.gmra.mrb[108].mxu0 %v4470_v4 }
 0x108   : > { %4317 = vmatprep.mubr.bf16.mxu0 %v4471_v7  ;;  %v1547_v15 = vadd.f32 %v1039_v11, %v1039_v11  ;;  %v1674_v16 = vmax.f32 %v1546_v12, 0.0 }
 0x109   : > { %v1804_v17 = vadd.f32 %v1676_v13, %v1044_v2  ;;  %v1677_v18 = vmax.f32 %v1549_v14, 0.0 }
 0x10a   : > { %v4211_v19 = vpop.f32.mrb[4].mxu0  ;;  %v1675_v20 = vmax.f32 %v1547_v15, 0.0  ;;  %v1802_v21 = vadd.f32 %v1674_v16, %v1036_v5 }
 0x10b   : > { %v1805_v22 = vadd.f32 %v1677_v18, %v1047_v9  ;;  %v1060_v23 = vadd.f32 %v4211_v19, %v4881_v0  ;;  %v1051_v24 = vpop.f32.mrb[5].mxu0  ;;  %v2123_v26 = vpack.c.bf16 %v1677_v18, %v1676_v13  ;;  %v1932_v32 = vmax.f32 %v1804_v17, 0.0 }
 0x10c   : > { %v1052_v27 = vadd.f32 %v4881_v0, %v1051_v24  ;;  %v4212_v28 = vpop.f32.mrb[6].mxu0  ;;  %v2122_v29 = vpack.c.bf16 %v1675_v20, %v1674_v16  ;;  %v1803_v30 = vadd.f32 %v1675_v20, %v1039_v11  ;;  %v1930_v39 = vmax.f32 %v1802_v21, 0.0 }
 0x10d   : > { %v1933_v33 = vmax.f32 %v1805_v22, 0.0  ;;  %v1552_v34 = vadd.f32 %v1060_v23, %v1060_v23  ;;  %v1063_v35 = vadd.f32 %v4212_v28, %v4881_v0  ;;  %v1054_v36 = vpop.f32.mrb[7].mxu0 }
 0x10e   : > { %v1550_v37 = vadd.f32 %v1052_v27, %v1052_v27  ;;  %v1055_v38 = vadd.f32 %v4881_v0, %v1054_v36  ;;  %2234 = vmatprep.subr.bf16.mxu1 %v2122_v29  ;;  %v1931_v40 = vmax.f32 %v1803_v30, 0.0  ;;  %v4477_v29 = vld [vmem:[%s4800_s15 + $0x1f0] sm:$0xff]  }
 0x10f   : > { %v1680_v41 = vmax.f32 %v1552_v34, 0.0  ;;  %v1553_v42 = vadd.f32 %v1063_v35, %v1063_v35  ;;  %4318 = vmatmul.mubr.bf16.gmra.mrb[112].mxu0 %v4472_v25  ;;  %v2059_v43 = vpack.c.bf16 %v1933_v33, %v1932_v32 }
 0x110   : > { %v1678_v44 = vmax.f32 %v1550_v37, 0.0  ;;  %v1551_v45 = vadd.f32 %v1055_v38, %v1055_v38  ;;  %v2058_v46 = vpack.c.bf16 %v1931_v40, %v1930_v39  ;;  %4321 = vmatprep.mubr.bf16.mxu0 %v4473_v31 }
 0x111   : > { %v1808_v47 = vadd.f32 %v1680_v41, %v1060_v23  ;;  %v1681_v48 = vmax.f32 %v1553_v42, 0.0  ;;  %v4476_v23 = vld [vmem:[%s4800_s15 + $0x1e8] sm:$0xff]  }
 0x112   : > { %v1806_v49 = vadd.f32 %v1678_v44, %v1052_v27  ;;  %v1679_v50 = vmax.f32 %v1551_v45, 0.0  ;;  %v4215_v52 = vpop.f32.mrb[8].mxu0  ;;  %2235 = vmatpush1.bf16.msra.mxu1 %v2058_v46 }
 0x113   : > { %v1809_v53 = vadd.f32 %v1681_v48, %v1063_v35  ;;  %v1076_v54 = vadd.f32 %v4215_v52, %v4881_v0  ;;  %v1067_v55 = vpop.f32.mrb[9].mxu0  ;;  %2236 = vmatprep.subr.bf16.mxu1 %v2123_v26  ;;  %v2125_v57 = vpack.c.bf16 %v1681_v48, %v1680_v41  ;;  %v1936_v63 = vmax.f32 %v1808_v47, 0.0 }
 0x114   : > { %v1807_v58 = vadd.f32 %v1679_v50, %v1055_v38  ;;  %v1068_v59 = vadd.f32 %v4881_v0, %v1067_v55  ;;  %v4216_v60 = vpop.f32.mrb[10].mxu0  ;;  %v2124_v61 = vpack.c.bf16 %v1679_v50, %v1678_v44  ;;  %v1934_v5 = vmax.f32 %v1806_v49, 0.0 }
 0x115   : > { %v1937_v1 = vmax.f32 %v1809_v53, 0.0  ;;  %v1556_v2 = vadd.f32 %v1076_v54, %v1076_v54  ;;  %v1079_v3 = vadd.f32 %v4216_v60, %v4881_v0  ;;  %v1070_v4 = vpop.f32.mrb[11].mxu0 }
 0x116   : > { %v1935_v6 = vmax.f32 %v1807_v58, 0.0  ;;  %v1554_v7 = vadd.f32 %v1068_v59, %v1068_v59  ;;  %v1071_v8 = vadd.f32 %v4881_v0, %v1070_v4  ;;  %2237 = vmatpush1.bf16.msra.mxu1 %v2059_v43 }
 0x117   : > { %v1684_v9 = vmax.f32 %v1556_v2, 0.0  ;;  %v1557_v10 = vadd.f32 %v1079_v3, %v1079_v3  ;;  %4322 = vmatmul.mubr.bf16.gmra.mrb[116].mxu0 %v4474_v56  ;;  %2238 = vmatprep.subr.bf16.mxu1 %v2124_v61  ;;  %v2061_v11 = vpack.c.bf16 %v1937_v1, %v1936_v63 }
 0x118   : > { %v1682_v12 = vmax.f32 %v1554_v7, 0.0  ;;  %v1555_v13 = vadd.f32 %v1071_v8, %v1071_v8  ;;  %v2060_v14 = vpack.c.bf16 %v1935_v6, %v1934_v5  ;;  %4325 = vmatprep.mubr.bf16.mxu0 %v4475_v62 }
 0x119   : > { %v1812_v15 = vadd.f32 %v1684_v9, %v1076_v54  ;;  %v1685_v16 = vmax.f32 %v1557_v10, 0.0  ;;  %v4478_v54 = vld [vmem:[%s4800_s15 + $0x1f8] sm:$0xff]   ;;  %s4099_s15 = sshll.u32 %s4760_s25, 6  ;;  %s4606_s25 = scalar_lea.vmem %s5503_s26, 64 }
 0x11a   : > { %v1810_v17 = vadd.f32 %v1682_v12, %v1068_v59  ;;  %v1683_v18 = vmax.f32 %v1555_v13, 0.0  ;;  %v4219_v19 = vpop.f32.mrb[12].mxu0  ;;  %2239 = vmatpush1.bf16.msra.mxu1 %v2060_v14  ;;  %s5501_s16 = scalar_lea.hbm %s5555_s12, %s4099_s15  ;;  %p4607_p11 = scmp.ne.s32.totalorder %s5503_s26, %s4606_s25 }
 0x11b   : > { %v1813_v20 = vadd.f32 %v1685_v16, %v1079_v3  ;;  %v1092_v21 = vadd.f32 %v4219_v19, %v4881_v0  ;;  %v1083_v22 = vpop.f32.mrb[13].mxu0  ;;  %2240 = vmatprep.subr.bf16.mxu1 %v2125_v57  ;;  %v2127_v24 = vpack.c.bf16 %v1685_v16, %v1684_v9  ;;  %v1940_v30 = vmax.f32 %v1812_v15, 0.0  ;;  %p4614_p1 = scmp.lt.s32.totalorder %s4612_s28, %s4606_s25 }
 0x11c   : > { %v1811_v25 = vadd.f32 %v1683_v18, %v1071_v8  ;;  %v1084_v26 = vadd.f32 %v4881_v0, %v1083_v22  ;;  %v4220_v27 = vpop.f32.mrb[14].mxu0  ;;  %v2126_v28 = vpack.c.bf16 %v1683_v18, %v1682_v12  ;;  %v1938_v35 = vmax.f32 %v1810_v17, 0.0  ;;  %p4608_p12 = pnand %p4607_p11, %p4777_p5 }
 0x11d   : > { %v1941_v31 = vmax.f32 %v1813_v20, 0.0  ;;  %v1560_v32 = vadd.f32 %v1092_v21, %v1092_v21  ;;  %v1095_v33 = vadd.f32 %v4220_v27, %v4881_v0  ;;  %v1086_v34 = vpop.f32.mrb[15].mxu0  ;;  %p4615_p2 = por %p4614_p1, %p4613_p0 }
 0x11e   : > { %v1939_v36 = vmax.f32 %v1811_v25, 0.0  ;;  %v1558_v37 = vadd.f32 %v1084_v26, %v1084_v26  ;;  %v1087_v38 = vadd.f32 %v4881_v0, %v1086_v34  ;;  %2241 = vmatpush1.bf16.msra.mxu1 %v2061_v11  ;;  %p4609_p13 = pneg %p4608_p12 }
 0x11f   : > { %v1688_v39 = vmax.f32 %v1560_v32, 0.0  ;;  %v1561_v40 = vadd.f32 %v1095_v33, %v1095_v33  ;;  %4326 = vmatmul.mubr.bf16.gmra.mrb[120].mxu0 %v4476_v23  ;;  %2242 = vmatprep.subr.bf16.mxu1 %v2126_v28  ;;  %v2063_v41 = vpack.c.bf16 %v1941_v31, %v1940_v30 }
 0x120   : > { %v1686_v42 = vmax.f32 %v1558_v37, 0.0  ;;  %v1559_v43 = vadd.f32 %v1087_v38, %v1087_v38  ;;  %v2062_v44 = vpack.c.bf16 %v1939_v36, %v1938_v35  ;;  %4329 = vmatprep.mubr.bf16.mxu0 %v4477_v29  ;;  %p4616_p3 = pnand %p4615_p2, %p4609_p13 }
 0x121   : > { %v1816_v45 = vadd.f32 %v1688_v39, %v1092_v21  ;;  %v1689_v46 = vmax.f32 %v1561_v40, 0.0  ;;  %v4491_v40 = vld [vmem:[%s5546_s3] ss:$8 sps:$4 sm:$0xff]  }
 0x122   : > { %v1814_v47 = vadd.f32 %v1686_v42, %v1084_v26  ;;  %v1687_v48 = vmax.f32 %v1559_v43, 0.0  ;;  %v4223_v49 = vpop.f32.mrb[16].mxu0  ;;  %2243 = vmatpush1.bf16.msra.mxu1 %v2062_v44 }
 0x123   : > { %v1817_v50 = vadd.f32 %v1689_v46, %v1095_v33  ;;  %v1108_v52 = vadd.f32 %v4223_v49, %v4881_v0  ;;  %v1099_v53 = vpop.f32.mrb[17].mxu0  ;;  %2244 = vmatprep.subr.bf16.mxu1 %v2127_v24  ;;  %v2129_v55 = vpack.c.bf16 %v1689_v46, %v1688_v39  ;;  %v1944_v60 = vmax.f32 %v1816_v45, 0.0 }
 0x124   : > { %v1815_v56 = vadd.f32 %v1687_v48, %v1087_v38  ;;  %v1100_v57 = vadd.f32 %v4881_v0, %v1099_v53  ;;  %v4224_v58 = vpop.f32.mrb[18].mxu0  ;;  %v2128_v59 = vpack.c.bf16 %v1687_v48, %v1686_v42  ;;  %v1942_v2 = vmax.f32 %v1814_v47, 0.0 }
 0x125   : > { %v1945_v61 = vmax.f32 %v1817_v50, 0.0  ;;  %v1564_v62 = vadd.f32 %v1108_v52, %v1108_v52  ;;  %v1111_v63 = vadd.f32 %v4224_v58, %v4881_v0  ;;  %v1102_v1 = vpop.f32.mrb[19].mxu0 }
 0x126   : > { %v1943_v3 = vmax.f32 %v1815_v56, 0.0  ;;  %v1562_v4 = vadd.f32 %v1100_v57, %v1100_v57  ;;  %v1103_v5 = vadd.f32 %v4881_v0, %v1102_v1  ;;  %2245 = vmatpush1.bf16.msra.mxu1 %v2063_v41  ;;  %v4493_v41 = vld [vmem:[%s5546_s3 + $0x4] ss:$8 sps:$4 sm:$0xff]  }
 0x127   : > { %v1692_v6 = vmax.f32 %v1564_v62, 0.0  ;;  %v1565_v7 = vadd.f32 %v1111_v63, %v1111_v63  ;;  %4330 = vmatmul.mubr.bf16.gmra.mrb[124].mxu0 %v4478_v54  ;;  %2246 = vmatprep.subr.bf16.mxu1 %v2128_v59  ;;  %v2065_v8 = vpack.c.bf16 %v1945_v61, %v1944_v60 }
 0x128   : > { %v1690_v9 = vmax.f32 %v1562_v4, 0.0  ;;  %v1563_v10 = vadd.f32 %v1103_v5, %v1103_v5  ;;  %v2064_v11 = vpack.c.bf16 %v1943_v3, %v1942_v2  ;;  %2762 = vmatprep.subr.bf16.mxu0 %v4493_v41 }
 0x129   : > { %v1820_v12 = vadd.f32 %v1692_v6, %v1108_v52  ;;  %v1693_v13 = vmax.f32 %v1565_v7, 0.0  ;;  %2763 = vmatpush1.bf16.msra.mxu0 %v4491_v40 }
 0x12a   : > { %v1818_v14 = vadd.f32 %v1690_v9, %v1100_v57  ;;  %v1691_v15 = vmax.f32 %v1563_v10, 0.0  ;;  %v4227_v16 = vpop.f32.mrb[20].mxu0  ;;  %2247 = vmatpush1.bf16.msra.mxu1 %v2064_v11 }
 0x12b   : > { %v1821_v17 = vadd.f32 %v1693_v13, %v1111_v63  ;;  %v1124_v18 = vadd.f32 %v4227_v16, %v4881_v0  ;;  %v1115_v19 = vpop.f32.mrb[21].mxu0  ;;  %2248 = vmatprep.subr.bf16.mxu1 %v2129_v55  ;;  %v2131_v20 = vpack.c.bf16 %v1693_v13, %v1692_v6  ;;  %v1948_v25 = vmax.f32 %v1820_v12, 0.0 }
 0x12c   : > { %v1819_v21 = vadd.f32 %v1691_v15, %v1103_v5  ;;  %v1116_v22 = vadd.f32 %v4881_v0, %v1115_v19  ;;  %v4228_v23 = vpop.f32.mrb[22].mxu0  ;;  %v2130_v24 = vpack.c.bf16 %v1691_v15, %v1690_v9  ;;  %v1946_v30 = vmax.f32 %v1818_v14, 0.0 }
 0x12d   : > { %v1949_v26 = vmax.f32 %v1821_v17, 0.0  ;;  %v1568_v27 = vadd.f32 %v1124_v18, %v1124_v18  ;;  %v1127_v28 = vadd.f32 %v4228_v23, %v4881_v0  ;;  %v1118_v29 = vpop.f32.mrb[23].mxu0 }
 0x12e   : > { %v1947_v31 = vmax.f32 %v1819_v21, 0.0  ;;  %v1566_v32 = vadd.f32 %v1116_v22, %v1116_v22  ;;  %v1119_v33 = vadd.f32 %v4881_v0, %v1118_v29  ;;  %2249 = vmatpush1.bf16.msra.mxu1 %v2065_v8 }
 0x12f   : > { %v1696_v34 = vmax.f32 %v1568_v27, 0.0  ;;  %v1569_v35 = vadd.f32 %v1127_v28, %v1127_v28  ;;  %2250 = vmatprep.subr.bf16.mxu1 %v2130_v24  ;;  %v2067_v36 = vpack.c.bf16 %v1949_v26, %v1948_v25 }
 0x130   : > { %v1694_v37 = vmax.f32 %v1566_v32, 0.0  ;;  %v1567_v38 = vadd.f32 %v1119_v33, %v1119_v33  ;;  %v2066_v39 = vpack.c.bf16 %v1947_v31, %v1946_v30 }
 0x131   : > { %v1824_v42 = vadd.f32 %v1696_v34, %v1124_v18  ;;  %v1697_v43 = vmax.f32 %v1569_v35, 0.0 }
 0x132   : > { %v1822_v44 = vadd.f32 %v1694_v37, %v1116_v22  ;;  %v1695_v45 = vmax.f32 %v1567_v38, 0.0  ;;  %v4231_v46 = vpop.f32.mrb[24].mxu0  ;;  %2251 = vmatpush1.bf16.msra.mxu1 %v2066_v39 }
 0x133   : > { %v1825_v47 = vadd.f32 %v1697_v43, %v1127_v28  ;;  %v1140_v48 = vadd.f32 %v4231_v46, %v4881_v0  ;;  %v1131_v49 = vpop.f32.mrb[25].mxu0  ;;  %2252 = vmatprep.subr.bf16.mxu1 %v2131_v20  ;;  %v2133_v50 = vpack.c.bf16 %v1697_v43, %v1696_v34  ;;  %v1952_v56 = vmax.f32 %v1824_v42, 0.0 }
 0x134   : > { %v1823_v52 = vadd.f32 %v1695_v45, %v1119_v33  ;;  %v1132_v53 = vadd.f32 %v4881_v0, %v1131_v49  ;;  %v4232_v54 = vpop.f32.mrb[26].mxu0  ;;  %v2132_v55 = vpack.c.bf16 %v1695_v45, %v1694_v37  ;;  %v1950_v61 = vmax.f32 %v1822_v44, 0.0  ;;  %v4496_v37 = vld [vmem:[%s5546_s3 + $0x14] ss:$8 sps:$4 sm:$0xff]  }
 0x135   : > { %v1953_v57 = vmax.f32 %v1825_v47, 0.0  ;;  %v1572_v58 = vadd.f32 %v1140_v48, %v1140_v48  ;;  %v1143_v59 = vadd.f32 %v4232_v54, %v4881_v0  ;;  %v1134_v60 = vpop.f32.mrb[27].mxu0  ;;  %2764 = vmatprep.subr.bf16.mxu0 %v4496_v37 }
 0x136   : > { %v1951_v62 = vmax.f32 %v1823_v52, 0.0  ;;  %v1570_v63 = vadd.f32 %v1132_v53, %v1132_v53  ;;  %v1135_v1 = vadd.f32 %v4881_v0, %v1134_v60  ;;  %2253 = vmatpush1.bf16.msra.mxu1 %v2067_v36  ;;  %v4494_v36 = vld [vmem:[%s5546_s3 + $0x10] ss:$8 sps:$4 sm:$0xff]  }
 0x137   : > { %v1700_v2 = vmax.f32 %v1572_v58, 0.0  ;;  %v1573_v3 = vadd.f32 %v1143_v59, %v1143_v59  ;;  %2254 = vmatprep.subr.bf16.mxu1 %v2132_v55  ;;  %v2069_v4 = vpack.c.bf16 %v1953_v57, %v1952_v56  ;;  %2765 = vmatpush1.bf16.msra.mxu0 %v4494_v36 }
 0x138   : > { %v1698_v5 = vmax.f32 %v1570_v63, 0.0  ;;  %v1571_v6 = vadd.f32 %v1135_v1, %v1135_v1  ;;  %v2068_v7 = vpack.c.bf16 %v1951_v62, %v1950_v61 }
 0x139   : > { %v1828_v8 = vadd.f32 %v1700_v2, %v1140_v48  ;;  %v1701_v9 = vmax.f32 %v1573_v3, 0.0 }
 0x13a   : > { %v1826_v10 = vadd.f32 %v1698_v5, %v1132_v53  ;;  %v1699_v11 = vmax.f32 %v1571_v6, 0.0  ;;  %v4235_v12 = vpop.f32.mrb[28].mxu0  ;;  %2255 = vmatpush1.bf16.msra.mxu1 %v2068_v7 }
 0x13b   : > { %v1829_v13 = vadd.f32 %v1701_v9, %v1143_v59  ;;  %v1156_v14 = vadd.f32 %v4235_v12, %v4881_v0  ;;  %v1147_v15 = vpop.f32.mrb[29].mxu0  ;;  %2256 = vmatprep.subr.bf16.mxu1 %v2133_v50  ;;  %v2135_v16 = vpack.c.bf16 %v1701_v9, %v1700_v2  ;;  %v1956_v21 = vmax.f32 %v1828_v8, 0.0 }
 0x13c   : > { %v1827_v17 = vadd.f32 %v1699_v11, %v1135_v1  ;;  %v1148_v18 = vadd.f32 %v4881_v0, %v1147_v15  ;;  %v4236_v19 = vpop.f32.mrb[30].mxu0  ;;  %v2134_v20 = vpack.c.bf16 %v1699_v11, %v1698_v5  ;;  %v1954_v26 = vmax.f32 %v1826_v10, 0.0 }
 0x13d   : > { %v1957_v22 = vmax.f32 %v1829_v13, 0.0  ;;  %v1576_v23 = vadd.f32 %v1156_v14, %v1156_v14  ;;  %v1159_v24 = vadd.f32 %v4236_v19, %v4881_v0  ;;  %v1150_v25 = vpop.f32.mrb[31].mxu0 }
 0x13e   : > { %v1955_v27 = vmax.f32 %v1827_v17, 0.0  ;;  %v1574_v28 = vadd.f32 %v1148_v18, %v1148_v18  ;;  %v1151_v29 = vadd.f32 %v4881_v0, %v1150_v25  ;;  %2257 = vmatpush1.bf16.msra.mxu1 %v2069_v4 }
 0x13f   : > { %v1704_v30 = vmax.f32 %v1576_v23, 0.0  ;;  %v1577_v31 = vadd.f32 %v1159_v24, %v1159_v24  ;;  %2258 = vmatprep.subr.bf16.mxu1 %v2134_v20  ;;  %v2071_v32 = vpack.c.bf16 %v1957_v22, %v1956_v21  ;;  %v4946_v22 = vld [vmem:[%s5550_s7] ss:$8 sps:$4 sm:$0xff]  }
 0x140   : > { %v1702_v33 = vmax.f32 %v1574_v28, 0.0  ;;  %v1575_v34 = vadd.f32 %v1151_v29, %v1151_v29  ;;  %v2070_v35 = vpack.c.bf16 %v1955_v27, %v1954_v26  ;;  %v4952_v27 = vld [vmem:[%s5550_s7 + $0x14] ss:$8 sps:$4 sm:$0xff]  }
 0x141   : > { %v1832_v38 = vadd.f32 %v1704_v30, %v1156_v14  ;;  %v1705_v39 = vmax.f32 %v1577_v31, 0.0 }
 0x142   : > { %v1830_v40 = vadd.f32 %v1702_v33, %v1148_v18  ;;  %v1703_v41 = vmax.f32 %v1575_v34, 0.0  ;;  %v4239_v42 = vpop.f32.mrb[32].mxu0  ;;  %2259 = vmatpush1.bf16.msra.mxu1 %v2070_v35  ;;  %v4497_v34 = vld [vmem:[%s5546_s3 + $0x20] ss:$8 sps:$4 sm:$0xff]   ;;  %v4499_v35 = vld [vmem:[%s5546_s3 + $0x24] ss:$8 sps:$4 sm:$0xff]  }
 0x143   : > { %v1833_v43 = vadd.f32 %v1705_v39, %v1159_v24  ;;  %v1172_v44 = vadd.f32 %v4239_v42, %v4881_v0  ;;  %v1163_v45 = vpop.f32.mrb[33].mxu0  ;;  %2260 = vmatprep.subr.bf16.mxu1 %v2135_v16  ;;  %v2137_v46 = vpack.c.bf16 %v1705_v39, %v1704_v30  ;;  %v1960_v52 = vmax.f32 %v1832_v38, 0.0  ;;  %2766 = vmatprep.subr.bf16.mxu0 %v4499_v35 }
 0x144   : > { %v1831_v47 = vadd.f32 %v1703_v41, %v1151_v29  ;;  %v1164_v48 = vadd.f32 %v4881_v0, %v1163_v45  ;;  %v4240_v49 = vpop.f32.mrb[34].mxu0  ;;  %v2136_v50 = vpack.c.bf16 %v1703_v41, %v1702_v33  ;;  %v1958_v57 = vmax.f32 %v1830_v40, 0.0  ;;  %2767 = vmatpush1.bf16.msra.mxu0 %v4497_v34 }
 0x145   : > { %v1961_v53 = vmax.f32 %v1833_v43, 0.0  ;;  %v1580_v54 = vadd.f32 %v1172_v44, %v1172_v44  ;;  %v1175_v55 = vadd.f32 %v4240_v49, %v4881_v0  ;;  %v1166_v56 = vpop.f32.mrb[35].mxu0 }
 0x146   : > { %v1959_v58 = vmax.f32 %v1831_v47, 0.0  ;;  %v1578_v59 = vadd.f32 %v1164_v48, %v1164_v48  ;;  %v1167_v60 = vadd.f32 %v4881_v0, %v1166_v56  ;;  %2261 = vmatpush1.bf16.msra.mxu1 %v2071_v32 }
 0x147   : > { %v1708_v61 = vmax.f32 %v1580_v54, 0.0  ;;  %v1581_v62 = vadd.f32 %v1175_v55, %v1175_v55  ;;  %2262 = vmatprep.subr.bf16.mxu1 %v2136_v50  ;;  %v2073_v63 = vpack.c.bf16 %v1961_v53, %v1960_v52 }
 0x148   : > { %v1706_v1 = vmax.f32 %v1578_v59, 0.0  ;;  %v1579_v2 = vadd.f32 %v1167_v60, %v1167_v60  ;;  %v2072_v3 = vpack.c.bf16 %v1959_v58, %v1958_v57 }
 0x149   : > { %v1836_v4 = vadd.f32 %v1708_v61, %v1172_v44  ;;  %v1709_v5 = vmax.f32 %v1581_v62, 0.0 }
 0x14a   : > { %v1834_v6 = vadd.f32 %v1706_v1, %v1164_v48  ;;  %v1707_v7 = vmax.f32 %v1579_v2, 0.0  ;;  %v4243_v8 = vpop.f32.mrb[36].mxu0  ;;  %2263 = vmatpush1.bf16.msra.mxu1 %v2072_v3 }
 0x14b   : > { %v1837_v9 = vadd.f32 %v1709_v5, %v1175_v55  ;;  %v1188_v10 = vadd.f32 %v4243_v8, %v4881_v0  ;;  %v1179_v11 = vpop.f32.mrb[37].mxu0  ;;  %2264 = vmatprep.subr.bf16.mxu1 %v2137_v46  ;;  %v2139_v12 = vpack.c.bf16 %v1709_v5, %v1708_v61  ;;  %v1964_v17 = vmax.f32 %v1836_v4, 0.0  ;;  %v4968_v55 = vld [vmem:[%s5550_s7 + $0x10] ss:$8 sps:$4 sm:$0xff]  }
 0x14c   : > { %v1835_v13 = vadd.f32 %v1707_v7, %v1167_v60  ;;  %v1180_v14 = vadd.f32 %v4881_v0, %v1179_v11  ;;  %v4244_v15 = vpop.f32.mrb[38].mxu0  ;;  %v2138_v16 = vpack.c.bf16 %v1707_v7, %v1706_v1  ;;  %v1962_v23 = vmax.f32 %v1834_v6, 0.0  ;;  %v4974_v60 = vld [vmem:[%s5550_s7 + $0x24] ss:$8 sps:$4 sm:$0xff]  }
 0x14d   : > { %v1965_v18 = vmax.f32 %v1837_v9, 0.0  ;;  %v1584_v19 = vadd.f32 %v1188_v10, %v1188_v10  ;;  %v1191_v20 = vadd.f32 %v4244_v15, %v4881_v0  ;;  %v1182_v21 = vpop.f32.mrb[39].mxu0 }
 0x14e   : > { %v1963_v24 = vmax.f32 %v1835_v13, 0.0  ;;  %v1582_v25 = vadd.f32 %v1180_v14, %v1180_v14  ;;  %v1183_v26 = vadd.f32 %v4881_v0, %v1182_v21  ;;  %2265 = vmatpush1.bf16.msra.mxu1 %v2073_v63 }
 0x14f   : > { %v2075_v28 = vpack.c.bf16 %v1965_v18, %v1964_v17  ;;  %v1712_v29 = vmax.f32 %v1584_v19, 0.0  ;;  %v1585_v30 = vadd.f32 %v1191_v20, %v1191_v20  ;;  %2307 = vmatprep.subr.bf16.mxu1 %v2138_v16 }
 0x150   : > { %v2074_v31 = vpack.c.bf16 %v1963_v24, %v1962_v23  ;;  %v1710_v32 = vmax.f32 %v1582_v25, 0.0  ;;  %v1583_v33 = vadd.f32 %v1183_v26, %v1183_v26  ;;  %v4984_v23 = vld [vmem:[%s5550_s7 + $0x20] ss:$8 sps:$4 sm:$0xff]  }
 0x151   : > { %v1840_v36 = vadd.f32 %v1712_v29, %v1188_v10  ;;  %v1713_v37 = vmax.f32 %v1585_v30, 0.0  ;;  %2267 = vmatmul.mubr.bf16.vlgmr.msra.gmra.mrb[0].mxu1 %v4946_v22 }
 0x152   : > { %v1838_v38 = vadd.f32 %v1710_v32, %v1180_v14  ;;  %v1711_v39 = vmax.f32 %v1583_v33, 0.0  ;;  %v4247_v40 = vpop.f32.mrb[40].mxu0  ;;  %2308 = vmatpush1.bf16.msra.mxu1 %v2074_v31  ;;  %2276 = vmatprep.mubr.bf16.mxu1 %v4952_v27 }
 0x153   : > { %v1841_v41 = vadd.f32 %v1713_v37, %v1191_v20  ;;  %v1204_v42 = vadd.f32 %v4247_v40, %v4881_v0  ;;  %v1195_v43 = vpop.f32.mrb[41].mxu0  ;;  %2309 = vmatprep.subr.bf16.mxu1 %v2139_v12  ;;  %v2141_v44 = vpack.c.bf16 %v1713_v37, %v1712_v29  ;;  %v1968_v49 = vmax.f32 %v1840_v36, 0.0  ;;  %v4990_v29 = vld [vmem:[%s5550_s7 + $0x34] ss:$8 sps:$4 sm:$0xff]   ;;  %v4500_v36 = vld [vmem:[%s5546_s3 + $0x30] ss:$8 sps:$4 sm:$0xff]  }
 0x154   : > { %v1839_v45 = vadd.f32 %v1711_v39, %v1183_v26  ;;  %v1196_v46 = vadd.f32 %v4881_v0, %v1195_v43  ;;  %v4248_v47 = vpop.f32.mrb[42].mxu0  ;;  %v2140_v48 = vpack.c.bf16 %v1711_v39, %v1710_v32  ;;  %v1966_v56 = vmax.f32 %v1838_v38, 0.0  ;;  %v4502_v37 = vld [vmem:[%s5546_s3 + $0x34] ss:$8 sps:$4 sm:$0xff]  }
 0x155   : > { %v1969_v50 = vmax.f32 %v1841_v41, 0.0  ;;  %v1588_v52 = vadd.f32 %v1204_v42, %v1204_v42  ;;  %v1207_v53 = vadd.f32 %v4248_v47, %v4881_v0  ;;  %v1198_v54 = vpop.f32.mrb[43].mxu0  ;;  %2768 = vmatprep.subr.bf16.mxu0 %v4502_v37 }
 0x156   : > { %v1967_v57 = vmax.f32 %v1839_v45, 0.0  ;;  %v1586_v58 = vadd.f32 %v1196_v46, %v1196_v46  ;;  %v1199_v59 = vadd.f32 %v4881_v0, %v1198_v54  ;;  %2310 = vmatpush1.bf16.msra.mxu1 %v2075_v28  ;;  %2769 = vmatpush1.bf16.msra.mxu0 %v4500_v36 }
 0x157   : > { %v2077_v61 = vpack.c.bf16 %v1969_v50, %v1968_v49  ;;  %v1716_v62 = vmax.f32 %v1588_v52, 0.0  ;;  %v1589_v63 = vadd.f32 %v1207_v53, %v1207_v53  ;;  %2311 = vmatprep.subr.bf16.mxu1 %v2140_v48 }
 0x158   : > { %v2076_v1 = vpack.c.bf16 %v1967_v57, %v1966_v56  ;;  %v1714_v2 = vmax.f32 %v1586_v58, 0.0  ;;  %v1587_v3 = vadd.f32 %v1199_v59, %v1199_v59  ;;  %v5006_v58 = vld [vmem:[%s5550_s7 + $0x30] ss:$8 sps:$4 sm:$0xff]  }
 0x159   : > { %v1844_v4 = vadd.f32 %v1716_v62, %v1204_v42  ;;  %v1717_v5 = vmax.f32 %v1589_v63, 0.0  ;;  %2277 = vmatmul.mubr.bf16.gmra.mrb[4].mxu1 %v4968_v55 }
 0x15a   : > { %v1842_v6 = vadd.f32 %v1714_v2, %v1196_v46  ;;  %v1715_v7 = vmax.f32 %v1587_v3, 0.0  ;;  %v4251_v8 = vpop.f32.mrb[44].mxu0  ;;  %2312 = vmatpush1.bf16.msra.mxu1 %v2076_v1  ;;  %2286 = vmatprep.mubr.bf16.mxu1 %v4974_v60 }
 0x15b   : > { %v1845_v9 = vadd.f32 %v1717_v5, %v1207_v53  ;;  %v1220_v10 = vadd.f32 %v4251_v8, %v4881_v0  ;;  %v1211_v11 = vpop.f32.mrb[45].mxu0  ;;  %2313 = vmatprep.subr.bf16.mxu1 %v2141_v44  ;;  %v2143_v12 = vpack.c.bf16 %v1717_v5, %v1716_v62  ;;  %v1972_v17 = vmax.f32 %v1844_v4, 0.0 }
 0x15c   : > { %v1843_v13 = vadd.f32 %v1715_v7, %v1199_v59  ;;  %v1212_v14 = vadd.f32 %v4881_v0, %v1211_v11  ;;  %v4252_v15 = vpop.f32.mrb[46].mxu0  ;;  %v2142_v16 = vpack.c.bf16 %v1715_v7, %v1714_v2  ;;  %v1970_v24 = vmax.f32 %v1842_v6, 0.0 }
 0x15d   : > { %v1973_v18 = vmax.f32 %v1845_v9, 0.0  ;;  %v1592_v19 = vadd.f32 %v1220_v10, %v1220_v10  ;;  %v1223_v20 = vadd.f32 %v4252_v15, %v4881_v0  ;;  %v1214_v21 = vpop.f32.mrb[47].mxu0 }
 0x15e   : > { %v1971_v25 = vmax.f32 %v1843_v13, 0.0  ;;  %v1590_v26 = vadd.f32 %v1212_v14, %v1212_v14  ;;  %v1215_v28 = vadd.f32 %v4881_v0, %v1214_v21  ;;  %2314 = vmatpush1.bf16.msra.mxu1 %v2077_v61 }
 0x15f   : > { %v2079_v30 = vpack.c.bf16 %v1973_v18, %v1972_v17  ;;  %v1720_v31 = vmax.f32 %v1592_v19, 0.0  ;;  %v1593_v32 = vadd.f32 %v1223_v20, %v1223_v20  ;;  %2315 = vmatprep.subr.bf16.mxu1 %v2142_v16 }
 0x160   : > { %v2078_v33 = vpack.c.bf16 %v1971_v25, %v1970_v24  ;;  %v1718_v34 = vmax.f32 %v1590_v26, 0.0  ;;  %v1591_v35 = vadd.f32 %v1215_v28, %v1215_v28 }
 0x161   : > { %v1848_v38 = vadd.f32 %v1720_v31, %v1220_v10  ;;  %v1721_v39 = vmax.f32 %v1593_v32, 0.0  ;;  %2287 = vmatmul.mubr.bf16.gmra.mrb[8].mxu1 %v4984_v23 }
 0x162   : > { %v1846_v40 = vadd.f32 %v1718_v34, %v1212_v14  ;;  %v1719_v41 = vmax.f32 %v1591_v35, 0.0  ;;  %v4255_v42 = vpop.f32.mrb[48].mxu0  ;;  %2316 = vmatpush1.bf16.msra.mxu1 %v2078_v33  ;;  %2296 = vmatprep.mubr.bf16.mxu1 %v4990_v29 }
 0x163   : > { %v1849_v43 = vadd.f32 %v1721_v39, %v1223_v20  ;;  %v1236_v44 = vadd.f32 %v4255_v42, %v4881_v0  ;;  %v1227_v45 = vpop.f32.mrb[49].mxu0  ;;  %2317 = vmatprep.subr.bf16.mxu1 %v2143_v12  ;;  %v2145_v46 = vpack.c.bf16 %v1721_v39, %v1720_v31  ;;  %v1976_v52 = vmax.f32 %v1848_v38, 0.0  ;;  %v4503_v38 = vld [vmem:[%s5546_s3 + $0x40] ss:$8 sps:$4 sm:$0xff]   ;;  %v4505_v39 = vld [vmem:[%s5546_s3 + $0x44] ss:$8 sps:$4 sm:$0xff]  }
 0x164   : > { %v1847_v47 = vadd.f32 %v1719_v41, %v1215_v28  ;;  %v1228_v48 = vadd.f32 %v4881_v0, %v1227_v45  ;;  %v4256_v49 = vpop.f32.mrb[50].mxu0  ;;  %v2144_v50 = vpack.c.bf16 %v1719_v41, %v1718_v34  ;;  %v1974_v59 = vmax.f32 %v1846_v40, 0.0  ;;  %2770 = vmatprep.subr.bf16.mxu0 %v4505_v39 }
 0x165   : > { %v1977_v53 = vmax.f32 %v1849_v43, 0.0  ;;  %v1596_v54 = vadd.f32 %v1236_v44, %v1236_v44  ;;  %v1239_v56 = vadd.f32 %v4256_v49, %v4881_v0  ;;  %v1230_v57 = vpop.f32.mrb[51].mxu0  ;;  %2771 = vmatpush1.bf16.msra.mxu0 %v4503_v38 }
 0x166   : > { %v1975_v61 = vmax.f32 %v1847_v47, 0.0  ;;  %v1594_v62 = vadd.f32 %v1228_v48, %v1228_v48  ;;  %v1231_v63 = vadd.f32 %v4881_v0, %v1230_v57  ;;  %2318 = vmatpush1.bf16.msra.mxu1 %v2079_v30 }
 0x167   : > { %v2081_v1 = vpack.c.bf16 %v1977_v53, %v1976_v52  ;;  %v1724_v2 = vmax.f32 %v1596_v54, 0.0  ;;  %v1597_v3 = vadd.f32 %v1239_v56, %v1239_v56  ;;  %2319 = vmatprep.subr.bf16.mxu1 %v2144_v50 }
 0x168   : > { %v2080_v4 = vpack.c.bf16 %v1975_v61, %v1974_v59  ;;  %v1722_v5 = vmax.f32 %v1594_v62, 0.0  ;;  %v1595_v6 = vadd.f32 %v1231_v63, %v1231_v63 }
 0x169   : > { %v1852_v7 = vadd.f32 %v1724_v2, %v1236_v44  ;;  %v1725_v8 = vmax.f32 %v1597_v3, 0.0  ;;  %2297 = vmatmul.mubr.bf16.gmra.mrb[12].mxu1 %v5006_v58 }
 0x16a   : > { %v1850_v9 = vadd.f32 %v1722_v5, %v1228_v48  ;;  %v1723_v10 = vmax.f32 %v1595_v6, 0.0  ;;  %v4259_v11 = vpop.f32.mrb[52].mxu0  ;;  %2320 = vmatpush1.bf16.msra.mxu1 %v2080_v4  ;;  %2339 = vmatprep.mubr.bf16.mxu1 %v4863_v51 }
 0x16b   : > { %v1853_v12 = vadd.f32 %v1725_v8, %v1239_v56  ;;  %v1252_v13 = vadd.f32 %v4259_v11, %v4881_v0  ;;  %v1243_v14 = vpop.f32.mrb[53].mxu0  ;;  %2321 = vmatprep.subr.bf16.mxu1 %v2145_v46  ;;  %v2147_v15 = vpack.c.bf16 %v1725_v8, %v1724_v2  ;;  %v1980_v20 = vmax.f32 %v1852_v7, 0.0 }
 0x16c   : > { %v1851_v16 = vadd.f32 %v1723_v10, %v1231_v63  ;;  %v1244_v17 = vadd.f32 %v4881_v0, %v1243_v14  ;;  %v4260_v18 = vpop.f32.mrb[54].mxu0  ;;  %v2146_v19 = vpack.c.bf16 %v1723_v10, %v1722_v5  ;;  %v1978_v28 = vmax.f32 %v1850_v9, 0.0 }
 0x16d   : > { %v1981_v21 = vmax.f32 %v1853_v12, 0.0  ;;  %v1600_v24 = vadd.f32 %v1252_v13, %v1252_v13  ;;  %v1255_v25 = vadd.f32 %v4260_v18, %v4881_v0  ;;  %v1246_v26 = vpop.f32.mrb[55].mxu0 }
 0x16e   : > { %v1979_v30 = vmax.f32 %v1851_v16, 0.0  ;;  %v1598_v51 = vadd.f32 %v1244_v17, %v1244_v17  ;;  %v1247_v31 = vadd.f32 %v4881_v0, %v1246_v26  ;;  %2322 = vmatpush1.bf16.msra.mxu1 %v2081_v1 }
 0x16f   : > { %v2083_v32 = vpack.c.bf16 %v1981_v21, %v1980_v20  ;;  %v1728_v33 = vmax.f32 %v1600_v24, 0.0  ;;  %v1601_v34 = vadd.f32 %v1255_v25, %v1255_v25  ;;  %2323 = vmatprep.subr.bf16.mxu1 %v2146_v19 }
 0x170   : > { %v2082_v35 = vpack.c.bf16 %v1979_v30, %v1978_v28  ;;  %v1726_v36 = vmax.f32 %v1598_v51, 0.0  ;;  %v1599_v37 = vadd.f32 %v1247_v31, %v1247_v31  ;;  %v4508_v51 = vld [vmem:[%s5546_s3 + $0x54] ss:$8 sps:$4 sm:$0xff]  }
 0x171   : > { %v1856_v40 = vadd.f32 %v1728_v33, %v1252_v13  ;;  %v1729_v41 = vmax.f32 %v1601_v34, 0.0  ;;  %2772 = vmatprep.subr.bf16.mxu0 %v4508_v51 }
 0x172   : > { %v1854_v42 = vadd.f32 %v1726_v36, %v1244_v17  ;;  %v1727_v43 = vmax.f32 %v1599_v37, 0.0  ;;  %v4263_v44 = vpop.f32.mrb[56].mxu0  ;;  %2324 = vmatpush1.bf16.msra.mxu1 %v2082_v35  ;;  %v4506_v35 = vld [vmem:[%s5546_s3 + $0x50] ss:$8 sps:$4 sm:$0xff]  }
 0x173   : > { %v1857_v45 = vadd.f32 %v1729_v41, %v1255_v25  ;;  %v1268_v46 = vadd.f32 %v4263_v44, %v4881_v0  ;;  %v1259_v47 = vpop.f32.mrb[57].mxu0  ;;  %2325 = vmatprep.subr.bf16.mxu1 %v2147_v15  ;;  %v2149_v48 = vpack.c.bf16 %v1729_v41, %v1728_v33  ;;  %v1984_v54 = vmax.f32 %v1856_v40, 0.0  ;;  %v5028_v15 = vld [vmem:[%s5545_s2] ss:$0 sm:$0xff]  ;;  %2773 = vmatpush1.bf16.msra.mxu0 %v4506_v35  ;;  %v4511_v44 = vld [vmem:[%s5546_s3 + $0x64] ss:$8 sps:$4 sm:$0xff]  }
 0x174   : > { %v1855_v49 = vadd.f32 %v1727_v43, %v1247_v31  ;;  %v1260_v50 = vadd.f32 %v4881_v0, %v1259_v47  ;;  %v4264_v52 = vpop.f32.mrb[58].mxu0  ;;  %v2148_v53 = vpack.c.bf16 %v1727_v43, %v1726_v36  ;;  %v1982_v62 = vmax.f32 %v1854_v42, 0.0  ;;  %2774 = vmatprep.subr.bf16.mxu0 %v4511_v44 }
 0x175   : > { %v1985_v56 = vmax.f32 %v1857_v45, 0.0  ;;  %v1604_v57 = vadd.f32 %v1268_v46, %v1268_v46  ;;  %v1271_v59 = vadd.f32 %v4264_v52, %v4881_v0  ;;  %v1262_v61 = vpop.f32.mrb[59].mxu0 }
 0x176   : > { %v1983_v63 = vmax.f32 %v1855_v49, 0.0  ;;  %v1602_v1 = vadd.f32 %v1260_v50, %v1260_v50  ;;  %v1263_v2 = vadd.f32 %v4881_v0, %v1262_v61  ;;  %2326 = vmatpush1.bf16.msra.mxu1 %v2083_v32 }
 0x177   : > { %v2085_v3 = vpack.c.bf16 %v1985_v56, %v1984_v54  ;;  %v1732_v4 = vmax.f32 %v1604_v57, 0.0  ;;  %v1605_v5 = vadd.f32 %v1271_v59, %v1271_v59  ;;  %2327 = vmatprep.subr.bf16.mxu1 %v2148_v53 }
 0x178   : > { %v2084_v6 = vpack.c.bf16 %v1983_v63, %v1982_v62  ;;  %v1730_v7 = vmax.f32 %v1602_v1, 0.0  ;;  %v1603_v8 = vadd.f32 %v1263_v2, %v1263_v2 }
 0x179   : > { %v1860_v9 = vadd.f32 %v1732_v4, %v1268_v46  ;;  %v1733_v10 = vmax.f32 %v1605_v5, 0.0 }
 0x17a   : > { %v1858_v11 = vadd.f32 %v1730_v7, %v1260_v50  ;;  %v1731_v12 = vmax.f32 %v1603_v8, 0.0  ;;  %v4267_v13 = vpop.f32.mrb[60].mxu0  ;;  %2328 = vmatpush1.bf16.msra.mxu1 %v2084_v6  ;;  %v4512_v8 = vld [vmem:[%s5546_s3 + $0x70] ss:$8 sps:$4 sm:$0xff]  }
 0x17b   : > { %v1861_v14 = vadd.f32 %v1733_v10, %v1271_v59  ;;  %v1284_v0 = vadd.f32 %v5028_v15, %v4267_v13  ;;  %v1275_v16 = vpop.f32.mrb[61].mxu0  ;;  %2329 = vmatprep.subr.bf16.mxu1 %v2149_v48  ;;  %v2151_v17 = vpack.c.bf16 %v1733_v10, %v1732_v4  ;;  %v1988_v24 = vmax.f32 %v1860_v9, 0.0  ;;  %v4509_v48 = vld [vmem:[%s5546_s3 + $0x60] ss:$8 sps:$4 sm:$0xff]  }
 0x17c   : > { %v1859_v18 = vadd.f32 %v1731_v12, %v1263_v2  ;;  %v1276_v19 = vadd.f32 %v5028_v15, %v1275_v16  ;;  %v4268_v20 = vpop.f32.mrb[62].mxu0  ;;  %v2150_v21 = vpack.c.bf16 %v1731_v12, %v1730_v7  ;;  %v1986_v31 = vmax.f32 %v1858_v11, 0.0  ;;  %2775 = vmatpush1.bf16.msra.mxu0 %v4509_v48 }
 0x17d   : > { %v1989_v25 = vmax.f32 %v1861_v14, 0.0  ;;  %v1608_v26 = vadd.f32 %v1284_v0, %v1284_v0  ;;  %v1287_v28 = vadd.f32 %v5028_v15, %v4268_v20  ;;  %v1278_v30 = vpop.f32.mrb[63].mxu0 }
 0x17e   : > { %v1987_v32 = vmax.f32 %v1859_v18, 0.0  ;;  %v1606_v33 = vadd.f32 %v1276_v19, %v1276_v19  ;;  %v1279_v34 = vadd.f32 %v5028_v15, %v1278_v30  ;;  %2330 = vmatpush1.bf16.msra.mxu1 %v2085_v3  ;;  %v4514_v3 = vld [vmem:[%s5546_s3 + $0x74] ss:$8 sps:$4 sm:$0xff]  }
 0x17f   : > { %v2087_v36 = vpack.c.bf16 %v1989_v25, %v1988_v24  ;;  %v1736_v37 = vmax.f32 %v1608_v26, 0.0  ;;  %v1609_v38 = vadd.f32 %v1287_v28, %v1287_v28  ;;  %2331 = vmatprep.subr.bf16.mxu1 %v2150_v21  ;;  %2776 = vmatprep.subr.bf16.mxu0 %v4514_v3  ;;  %v4515_v21 = vld [vmem:[%s5546_s3 + $0x80] ss:$8 sps:$4 sm:$0xff]  }
 0x180   : > { %v2086_v39 = vpack.c.bf16 %v1987_v32, %v1986_v31  ;;  %v1734_v40 = vmax.f32 %v1606_v33, 0.0  ;;  %v1607_v41 = vadd.f32 %v1279_v34, %v1279_v34  ;;  %2777 = vmatpush1.bf16.msra.mxu0 %v4512_v8 }
 0x181   : > { %v1864_v42 = vadd.f32 %v1736_v37, %v1284_v0  ;;  %v1737_v43 = vmax.f32 %v1609_v38, 0.0  ;;  %v4520_v38 = vld [vmem:[%s5546_s3 + $0x94] ss:$8 sps:$4 sm:$0xff]  }
 0x182   : > { %v1862_v45 = vadd.f32 %v1734_v40, %v1276_v19  ;;  %v1735_v46 = vmax.f32 %v1607_v41, 0.0  ;;  %v4271_v47 = vpop.f32.mrb[64].mxu0  ;;  %2332 = vmatpush1.bf16.msra.mxu1 %v2086_v39 }
 0x183   : > { %v1865_v49 = vadd.f32 %v1737_v43, %v1287_v28  ;;  %v1300_v50 = vadd.f32 %v5028_v15, %v4271_v47  ;;  %v1291_v52 = vpop.f32.mrb[65].mxu0  ;;  %2333 = vmatprep.subr.bf16.mxu1 %v2151_v17  ;;  %v2153_v53 = vpack.c.bf16 %v1737_v43, %v1736_v37  ;;  %v1992_v61 = vmax.f32 %v1864_v42, 0.0  ;;  %v4517_v17 = vld [vmem:[%s5546_s3 + $0x84] ss:$8 sps:$4 sm:$0xff]   ;;  %v4518_v43 = vld [vmem:[%s5546_s3 + $0x90] ss:$8 sps:$4 sm:$0xff]  }
 0x184   : > { %v1863_v54 = vadd.f32 %v1735_v46, %v1279_v34  ;;  %v1292_v56 = vadd.f32 %v5028_v15, %v1291_v52  ;;  %v4272_v57 = vpop.f32.mrb[66].mxu0  ;;  %v2152_v59 = vpack.c.bf16 %v1735_v46, %v1734_v40  ;;  %v1990_v4 = vmax.f32 %v1862_v45, 0.0  ;;  %2778 = vmatprep.subr.bf16.mxu0 %v4517_v17 }
 0x185   : > { %v1993_v62 = vmax.f32 %v1865_v49, 0.0  ;;  %v1612_v63 = vadd.f32 %v1300_v50, %v1300_v50  ;;  %v1303_v1 = vadd.f32 %v5028_v15, %v4272_v57  ;;  %v1294_v2 = vpop.f32.mrb[67].mxu0  ;;  %2779 = vmatpush1.bf16.msra.mxu0 %v4515_v21 }
 0x186   : > { %v1991_v5 = vmax.f32 %v1863_v54, 0.0  ;;  %v1610_v6 = vadd.f32 %v1292_v56, %v1292_v56  ;;  %v1295_v7 = vadd.f32 %v5028_v15, %v1294_v2  ;;  %2334 = vmatpush1.bf16.msra.mxu1 %v2087_v36  ;;  %2780 = vmatprep.subr.bf16.mxu0 %v4520_v38  ;;  %v4523_v54 = vld [vmem:[%s5546_s3 + $0xa4] ss:$8 sps:$4 sm:$0xff]  }
 0x187   : > { %v2089_v9 = vpack.c.bf16 %v1993_v62, %v1992_v61  ;;  %v1740_v10 = vmax.f32 %v1612_v63, 0.0  ;;  %v1613_v11 = vadd.f32 %v1303_v1, %v1303_v1  ;;  %2335 = vmatprep.subr.bf16.mxu1 %v2152_v59  ;;  %v4526_v61 = vld [vmem:[%s5546_s3 + $0xb4] ss:$8 sps:$4 sm:$0xff]  }
 0x188   : > { %v2088_v12 = vpack.c.bf16 %v1991_v5, %v1990_v4  ;;  %v1738_v13 = vmax.f32 %v1610_v6, 0.0  ;;  %v1611_v14 = vadd.f32 %v1295_v7, %v1295_v7 }
 0x189   : > { %v1868_v0 = vadd.f32 %v1740_v10, %v1300_v50  ;;  %v1741_v16 = vmax.f32 %v1613_v11, 0.0  ;;  %2781 = vmatpush1.bf16.msra.mxu0 %v4518_v43 }
 0x18a   : > { %v1866_v18 = vadd.f32 %v1738_v13, %v1292_v56  ;;  %v1739_v19 = vmax.f32 %v1611_v14, 0.0  ;;  %v4275_v20 = vpop.f32.mrb[68].mxu0  ;;  %2336 = vmatpush1.bf16.msra.mxu1 %v2088_v12  ;;  %2782 = vmatprep.subr.bf16.mxu0 %v4523_v54 }
 0x18b   : > { %v1869_v24 = vadd.f32 %v1741_v16, %v1303_v1  ;;  %v1316_v25 = vadd.f32 %v5028_v15, %v4275_v20  ;;  %v1307_v26 = vpop.f32.mrb[69].mxu0  ;;  %2337 = vmatprep.subr.bf16.mxu1 %v2153_v53  ;;  %v2155_v28 = vpack.c.bf16 %v1741_v16, %v1740_v10  ;;  %v1996_v33 = vmax.f32 %v1868_v0, 0.0  ;;  %v4521_v53 = vld [vmem:[%s5546_s3 + $0xa0] ss:$8 sps:$4 sm:$0xff]  }
 0x18c   : > { %v1867_v30 = vadd.f32 %v1739_v19, %v1295_v7  ;;  %v1308_v51 = vadd.f32 %v5028_v15, %v1307_v26  ;;  %v4276_v31 = vpop.f32.mrb[70].mxu0  ;;  %v2154_v32 = vpack.c.bf16 %v1739_v19, %v1738_v13  ;;  %v1994_v39 = vmax.f32 %v1866_v18, 0.0  ;;  %v4529_v26 = vld [vmem:[%s5546_s3 + $0xc4] ss:$8 sps:$4 sm:$0xff]  }
 0x18d   : > { %v1997_v34 = vmax.f32 %v1869_v24, 0.0  ;;  %v1616_v35 = vadd.f32 %v1316_v25, %v1316_v25  ;;  %v1319_v36 = vadd.f32 %v5028_v15, %v4276_v31  ;;  %v1310_v37 = vpop.f32.mrb[71].mxu0  ;;  %2783 = vmatpush1.bf16.msra.mxu0 %v4521_v53  ;;  %v4532_v31 = vld [vmem:[%s5546_s3 + $0xd4] ss:$8 sps:$4 sm:$0xff]  }
 0x18e   : > { %v1995_v40 = vmax.f32 %v1867_v30, 0.0  ;;  %v1614_v41 = vadd.f32 %v1308_v51, %v1308_v51  ;;  %v1311_v42 = vadd.f32 %v5028_v15, %v1310_v37  ;;  %2338 = vmatpush1.bf16.msra.mxu1 %v2089_v9  ;;  %2784 = vmatprep.subr.bf16.mxu0 %v4526_v61  ;;  %v4535_v61 = vld [vmem:[%s5546_s3 + $0xe4] ss:$8 sps:$4 sm:$0xff]  }
 0x18f   : > { %v2091_v44 = vpack.c.bf16 %v1997_v34, %v1996_v33  ;;  %v1744_v45 = vmax.f32 %v1616_v35, 0.0  ;;  %v1617_v46 = vadd.f32 %v1319_v36, %v1319_v36  ;;  %2380 = vmatprep.subr.bf16.mxu1 %v2154_v32 }
 0x190   : > { %v2090_v47 = vpack.c.bf16 %v1995_v40, %v1994_v39  ;;  %v1742_v48 = vmax.f32 %v1614_v41, 0.0  ;;  %v1615_v49 = vadd.f32 %v1311_v42, %v1311_v42 }
 0x191   : > { %v1872_v50 = vadd.f32 %v1744_v45, %v1316_v25  ;;  %v1745_v52 = vmax.f32 %v1617_v46, 0.0  ;;  %2340 = vmatmul.mubr.bf16.vlgmr.msra.gmra.mrb[16].mxu1 %v4946_v22  ;;  %v4527_v25 = vld [vmem:[%s5546_s3 + $0xc0] ss:$8 sps:$4 sm:$0xff]  }
 0x192   : > { %v1870_v56 = vadd.f32 %v1742_v48, %v1308_v51  ;;  %v1743_v57 = vmax.f32 %v1615_v49, 0.0  ;;  %v4279_v59 = vpop.f32.mrb[72].mxu0  ;;  %2381 = vmatpush1.bf16.msra.mxu1 %v2090_v47  ;;  %2349 = vmatprep.mubr.bf16.mxu1 %v4952_v27  ;;  %v4524_v27 = vld [vmem:[%s5546_s3 + $0xb0] ss:$8 sps:$4 sm:$0xff]  }
 0x193   : > { %v1873_v62 = vadd.f32 %v1745_v52, %v1319_v36  ;;  %v1332_v22 = vadd.f32 %v5028_v15, %v4279_v59  ;;  %v1323_v63 = vpop.f32.mrb[73].mxu0  ;;  %2382 = vmatprep.subr.bf16.mxu1 %v2155_v28  ;;  %v2157_v1 = vpack.c.bf16 %v1745_v52, %v1744_v45  ;;  %v2000_v6 = vmax.f32 %v1872_v50, 0.0  ;;  %2785 = vmatpush1.bf16.msra.mxu0 %v4524_v27  ;;  %v4533_v59 = vld [vmem:[%s5546_s3 + $0xe0] ss:$8 sps:$4 sm:$0xff]  }
 0x194   : > { %v1871_v2 = vadd.f32 %v1743_v57, %v1311_v42  ;;  %v1324_v3 = vadd.f32 %v5028_v15, %v1323_v63  ;;  %v4280_v4 = vpop.f32.mrb[74].mxu0  ;;  %v2156_v5 = vpack.c.bf16 %v1743_v57, %v1742_v48  ;;  %v1998_v11 = vmax.f32 %v1870_v56, 0.0  ;;  %2786 = vmatprep.subr.bf16.mxu0 %v4529_v26 }
 0x195   : > { %v2001_v7 = vmax.f32 %v1873_v62, 0.0  ;;  %v1620_v8 = vadd.f32 %v1332_v22, %v1332_v22  ;;  %v1335_v9 = vadd.f32 %v5028_v15, %v4280_v4  ;;  %v1326_v10 = vpop.f32.mrb[75].mxu0 }
 0x196   : > { %v1999_v12 = vmax.f32 %v1871_v2, 0.0  ;;  %v1618_v13 = vadd.f32 %v1324_v3, %v1324_v3  ;;  %v1327_v14 = vadd.f32 %v5028_v15, %v1326_v10  ;;  %2383 = vmatpush1.bf16.msra.mxu1 %v2091_v44 }
 0x197   : > { %v2093_v0 = vpack.c.bf16 %v2001_v7, %v2000_v6  ;;  %v1748_v16 = vmax.f32 %v1620_v8, 0.0  ;;  %v1621_v17 = vadd.f32 %v1335_v9, %v1335_v9  ;;  %2384 = vmatprep.subr.bf16.mxu1 %v2156_v5  ;;  %2787 = vmatpush1.bf16.msra.mxu0 %v4527_v25 }
 0x198   : > { %v2092_v18 = vpack.c.bf16 %v1999_v12, %v1998_v11  ;;  %v1746_v19 = vmax.f32 %v1618_v13, 0.0  ;;  %v1619_v20 = vadd.f32 %v1327_v14, %v1327_v14  ;;  %2788 = vmatprep.subr.bf16.mxu0 %v4532_v31  ;;  %v5130_v31 = vld [vmem:[%s5550_s7 + $0x4] ss:$8 sps:$4 sm:$0xff]  }
 0x199   : > { %v1876_v21 = vadd.f32 %v1748_v16, %v1332_v22  ;;  %v1749_v24 = vmax.f32 %v1621_v17, 0.0  ;;  %2350 = vmatmul.mubr.bf16.gmra.mrb[20].mxu1 %v4968_v55 }
 0x19a   : > { %v1874_v28 = vadd.f32 %v1746_v19, %v1324_v3  ;;  %v1747_v30 = vmax.f32 %v1619_v20, 0.0  ;;  %v4283_v51 = vpop.f32.mrb[76].mxu0  ;;  %2385 = vmatpush1.bf16.msra.mxu1 %v2092_v18  ;;  %2359 = vmatprep.mubr.bf16.mxu1 %v4974_v60  ;;  %v4530_v60 = vld [vmem:[%s5546_s3 + $0xd0] ss:$8 sps:$4 sm:$0xff]  }
 0x19b   : > { %v1877_v32 = vadd.f32 %v1749_v24, %v1335_v9  ;;  %v1348_v55 = vadd.f32 %v5028_v15, %v4283_v51  ;;  %v1339_v33 = vpop.f32.mrb[77].mxu0  ;;  %2386 = vmatprep.subr.bf16.mxu1 %v2157_v1  ;;  %v2159_v34 = vpack.c.bf16 %v1749_v24, %v1748_v16  ;;  %v2004_v39 = vmax.f32 %v1876_v21, 0.0  ;;  %2789 = vmatpush1.bf16.msra.mxu0 %v4530_v60  ;;  %v4536_v16 = vld [vmem:[%s5546_s3 + $0xf0] ss:$8 sps:$4 sm:$0xff]  }
 0x19c   : > { %v1875_v35 = vadd.f32 %v1747_v30, %v1327_v14  ;;  %v1340_v36 = vadd.f32 %v5028_v15, %v1339_v33  ;;  %v4284_v37 = vpop.f32.mrb[78].mxu0  ;;  %v2158_v38 = vpack.c.bf16 %v1747_v30, %v1746_v19  ;;  %v2002_v44 = vmax.f32 %v1874_v28, 0.0  ;;  %2790 = vmatprep.subr.bf16.mxu0 %v4535_v61 }
 0x19d   : > { %v2005_v40 = vmax.f32 %v1877_v32, 0.0  ;;  %v1624_v41 = vadd.f32 %v1348_v55, %v1348_v55  ;;  %v1351_v42 = vadd.f32 %v5028_v15, %v4284_v37  ;;  %v1342_v43 = vpop.f32.mrb[79].mxu0 }
 0x19e   : > { %v2003_v45 = vmax.f32 %v1875_v35, 0.0  ;;  %v1622_v46 = vadd.f32 %v1340_v36, %v1340_v36  ;;  %v1343_v47 = vadd.f32 %v5028_v15, %v1342_v43  ;;  %2387 = vmatpush1.bf16.msra.mxu1 %v2093_v0 }
 0x19f   : > { %v2095_v48 = vpack.c.bf16 %v2005_v40, %v2004_v39  ;;  %v1752_v49 = vmax.f32 %v1624_v41, 0.0  ;;  %v1625_v50 = vadd.f32 %v1351_v42, %v1351_v42  ;;  %2388 = vmatprep.subr.bf16.mxu1 %v2158_v38  ;;  %2791 = vmatpush1.bf16.msra.mxu0 %v4533_v59 }
 0x1a0   : > { %v2094_v52 = vpack.c.bf16 %v2003_v45, %v2002_v44  ;;  %v1750_v53 = vmax.f32 %v1622_v46, 0.0  ;;  %v1623_v54 = vadd.f32 %v1343_v47, %v1343_v47 }
 0x1a1   : > { %v1880_v56 = vadd.f32 %v1752_v49, %v1348_v55  ;;  %v1753_v57 = vmax.f32 %v1625_v50, 0.0  ;;  %2360 = vmatmul.mubr.bf16.gmra.mrb[24].mxu1 %v4984_v23 }
 0x1a2   : > { %v1878_v62 = vadd.f32 %v1750_v53, %v1340_v36  ;;  %v1751_v22 = vmax.f32 %v1623_v54, 0.0  ;;  %v4287_v63 = vpop.f32.mrb[80].mxu0  ;;  %2389 = vmatpush1.bf16.msra.mxu1 %v2094_v52  ;;  %2369 = vmatprep.mubr.bf16.mxu1 %v4990_v29  ;;  %v4538_v29 = vld [vmem:[%s5546_s3 + $0xf4] ss:$8 sps:$4 sm:$0xff]  }
 0x1a3   : > { %v1881_v1 = vadd.f32 %v1753_v57, %v1351_v42  ;;  %v1364_v2 = vadd.f32 %v5028_v15, %v4287_v63  ;;  %v1355_v3 = vpop.f32.mrb[81].mxu0  ;;  %2390 = vmatprep.subr.bf16.mxu1 %v2159_v34  ;;  %v2161_v23 = vpack.c.bf16 %v1753_v57, %v1752_v49  ;;  %v2008_v7 = vmax.f32 %v1880_v56, 0.0  ;;  %2792 = vmatprep.subr.bf16.mxu0 %v4538_v29 }
 0x1a4   : > { %v1879_v4 = vadd.f32 %v1751_v22, %v1343_v47  ;;  %v1356_v5 = vadd.f32 %v5028_v15, %v1355_v3  ;;  %v4288_v27 = vpop.f32.mrb[82].mxu0  ;;  %v2160_v6 = vpack.c.bf16 %v1751_v22, %v1750_v53  ;;  %v2006_v12 = vmax.f32 %v1878_v62, 0.0  ;;  %2793 = vmatpush1.bf16.msra.mxu0 %v4536_v16 }
 0x1a5   : > { %v2009_v8 = vmax.f32 %v1881_v1, 0.0  ;;  %v1628_v9 = vadd.f32 %v1364_v2, %v1364_v2  ;;  %v1367_v10 = vadd.f32 %v5028_v15, %v4288_v27  ;;  %v1358_v11 = vpop.f32.mrb[83].mxu0 }
 0x1a6   : > { %v2007_v13 = vmax.f32 %v1879_v4, 0.0  ;;  %v1626_v14 = vadd.f32 %v1356_v5, %v1356_v5  ;;  %v1359_v0 = vadd.f32 %v5028_v15, %v1358_v11  ;;  %2391 = vmatpush1.bf16.msra.mxu1 %v2095_v48 }
 0x1a7   : > { %v2097_v17 = vpack.c.bf16 %v2009_v8, %v2008_v7  ;;  %v1756_v18 = vmax.f32 %v1628_v9, 0.0  ;;  %v1629_v19 = vadd.f32 %v1367_v10, %v1367_v10  ;;  %2392 = vmatprep.subr.bf16.mxu1 %v2160_v6 }
 0x1a8   : > { %v2096_v20 = vpack.c.bf16 %v2007_v13, %v2006_v12  ;;  %v1754_v21 = vmax.f32 %v1626_v14, 0.0  ;;  %v1627_v24 = vadd.f32 %v1359_v0, %v1359_v0 }
 0x1a9   : > { %v1884_v25 = vadd.f32 %v1756_v18, %v1364_v2  ;;  %v1757_v26 = vmax.f32 %v1629_v19, 0.0  ;;  %2370 = vmatmul.mubr.bf16.gmra.mrb[28].mxu1 %v5006_v58 }
 0x1aa   : > { %v1882_v28 = vadd.f32 %v1754_v21, %v1356_v5  ;;  %v1755_v30 = vmax.f32 %v1627_v24, 0.0  ;;  %v4291_v51 = vpop.f32.mrb[84].mxu0  ;;  %2393 = vmatpush1.bf16.msra.mxu1 %v2096_v20  ;;  %2412 = vmatprep.mubr.bf16.mxu1 %v5130_v31 }
 0x1ab   : > { %v1885_v32 = vadd.f32 %v1757_v26, %v1367_v10  ;;  %v1380_v55 = vadd.f32 %v5028_v15, %v4291_v51  ;;  %v1371_v33 = vpop.f32.mrb[85].mxu0  ;;  %2394 = vmatprep.subr.bf16.mxu1 %v2161_v23  ;;  %v2163_v34 = vpack.c.bf16 %v1757_v26, %v1756_v18  ;;  %v2012_v38 = vmax.f32 %v1884_v25, 0.0 }
 0x1ac   : > { %v1883_v35 = vadd.f32 %v1755_v30, %v1359_v0  ;;  %v1372_v58 = vadd.f32 %v5028_v15, %v1371_v33  ;;  %v4292_v36 = vpop.f32.mrb[86].mxu0  ;;  %v2162_v37 = vpack.c.bf16 %v1755_v30, %v1754_v21  ;;  %v2010_v42 = vmax.f32 %v1882_v28, 0.0 }
 0x1ad   : > { %v2013_v60 = vmax.f32 %v1885_v32, 0.0  ;;  %v1632_v39 = vadd.f32 %v1380_v55, %v1380_v55  ;;  %v1383_v40 = vadd.f32 %v5028_v15, %v4292_v36  ;;  %v1374_v41 = vpop.f32.mrb[87].mxu0 }
 0x1ae   : > { %v2011_v43 = vmax.f32 %v1883_v35, 0.0  ;;  %v1630_v44 = vadd.f32 %v1372_v58, %v1372_v58  ;;  %v1375_v45 = vadd.f32 %v5028_v15, %v1374_v41  ;;  %2395 = vmatpush1.bf16.msra.mxu1 %v2097_v17 }
 0x1af   : > { %v2099_v46 = vpack.c.bf16 %v2013_v60, %v2012_v38  ;;  %v1760_v47 = vmax.f32 %v1632_v39, 0.0  ;;  %v1633_v48 = vadd.f32 %v1383_v40, %v1383_v40  ;;  %2396 = vmatprep.subr.bf16.mxu1 %v2162_v37 }
 0x1b0   : > { %v2098_v49 = vpack.c.bf16 %v2011_v43, %v2010_v42  ;;  %v1758_v50 = vmax.f32 %v1630_v44, 0.0  ;;  %v1631_v52 = vadd.f32 %v1375_v45, %v1375_v45 }
 0x1b1   : > { %v1888_v53 = vadd.f32 %v1760_v47, %v1380_v55  ;;  %v1761_v54 = vmax.f32 %v1633_v48, 0.0 }
 0x1b2   : > { %v1886_v56 = vadd.f32 %v1758_v50, %v1372_v58  ;;  %v1759_v57 = vmax.f32 %v1631_v52, 0.0  ;;  %v4295_v59 = vpop.f32.mrb[88].mxu0  ;;  %2397 = vmatpush1.bf16.msra.mxu1 %v2098_v49 }
 0x1b3   : > { %v1889_v61 = vadd.f32 %v1761_v54, %v1383_v40  ;;  %v1396_v62 = vadd.f32 %v5028_v15, %v4295_v59  ;;  %v1387_v22 = vpop.f32.mrb[89].mxu0  ;;  %2398 = vmatprep.subr.bf16.mxu1 %v2163_v34  ;;  %v2165_v63 = vpack.c.bf16 %v1761_v54, %v1760_v47  ;;  %v2016_v4 = vmax.f32 %v1888_v53, 0.0 }
 0x1b4   : > { %v1887_v1 = vadd.f32 %v1759_v57, %v1375_v45  ;;  %v1388_v2 = vadd.f32 %v5028_v15, %v1387_v22  ;;  %v4296_v3 = vpop.f32.mrb[90].mxu0  ;;  %v2164_v23 = vpack.c.bf16 %v1759_v57, %v1758_v50  ;;  %v2014_v8 = vmax.f32 %v1886_v56, 0.0 }
 0x1b5   : > { %v2017_v5 = vmax.f32 %v1889_v61, 0.0  ;;  %v1636_v27 = vadd.f32 %v1396_v62, %v1396_v62  ;;  %v1399_v6 = vadd.f32 %v5028_v15, %v4296_v3  ;;  %v1390_v7 = vpop.f32.mrb[91].mxu0 }
 0x1b6   : > { %v2015_v9 = vmax.f32 %v1887_v1, 0.0  ;;  %v1634_v10 = vadd.f32 %v1388_v2, %v1388_v2  ;;  %v1391_v11 = vadd.f32 %v5028_v15, %v1390_v7  ;;  %2399 = vmatpush1.bf16.msra.mxu1 %v2099_v46 }
 0x1b7   : > { %v2101_v29 = vpack.c.bf16 %v2017_v5, %v2016_v4  ;;  %v1764_v12 = vmax.f32 %v1636_v27, 0.0  ;;  %v1637_v13 = vadd.f32 %v1399_v6, %v1399_v6  ;;  %2400 = vmatprep.subr.bf16.mxu1 %v2164_v23 }
 0x1b8   : > { %v2100_v14 = vpack.c.bf16 %v2015_v9, %v2014_v8  ;;  %v1762_v0 = vmax.f32 %v1634_v10, 0.0  ;;  %v1635_v16 = vadd.f32 %v1391_v11, %v1391_v11 }
 0x1b9   : > { %v1892_v17 = vadd.f32 %v1764_v12, %v1396_v62  ;;  %v1765_v18 = vmax.f32 %v1637_v13, 0.0 }
 0x1ba   : > { %v1890_v19 = vadd.f32 %v1762_v0, %v1388_v2  ;;  %v1763_v20 = vmax.f32 %v1635_v16, 0.0  ;;  %v4299_v21 = vpop.f32.mrb[92].mxu0  ;;  %2401 = vmatpush1.bf16.msra.mxu1 %v2100_v14 }
 0x1bb   : > { %v1893_v24 = vadd.f32 %v1765_v18, %v1399_v6  ;;  %v1412_v25 = vadd.f32 %v5028_v15, %v4299_v21  ;;  %v1403_v26 = vpop.f32.mrb[93].mxu0  ;;  %2402 = vmatprep.subr.bf16.mxu1 %v2165_v63  ;;  %v2167_v28 = vpack.c.bf16 %v1765_v18, %v1764_v12  ;;  %v2020_v33 = vmax.f32 %v1892_v17, 0.0 }
 0x1bc   : > { %v1891_v30 = vadd.f32 %v1763_v20, %v1391_v11  ;;  %v1404_v51 = vadd.f32 %v5028_v15, %v1403_v26  ;;  %v4300_v32 = vpop.f32.mrb[94].mxu0  ;;  %v2166_v55 = vpack.c.bf16 %v1763_v20, %v1762_v0  ;;  %v2018_v37 = vmax.f32 %v1890_v19, 0.0 }
 0x1bd   : > { %v2021_v34 = vmax.f32 %v1893_v24, 0.0  ;;  %v1640_v35 = vadd.f32 %v1412_v25, %v1412_v25  ;;  %v1415_v58 = vadd.f32 %v5028_v15, %v4300_v32  ;;  %v1406_v36 = vpop.f32.mrb[95].mxu0 }
 0x1be   : > { %v2019_v38 = vmax.f32 %v1891_v30, 0.0  ;;  %v1638_v60 = vadd.f32 %v1404_v51, %v1404_v51  ;;  %v1407_v39 = vadd.f32 %v5028_v15, %v1406_v36  ;;  %2403 = vmatpush1.bf16.msra.mxu1 %v2101_v29 }
 0x1bf   : > { %v2103_v40 = vpack.c.bf16 %v2021_v34, %v2020_v33  ;;  %v1768_v41 = vmax.f32 %v1640_v35, 0.0  ;;  %v1641_v42 = vadd.f32 %v1415_v58, %v1415_v58  ;;  %2404 = vmatprep.subr.bf16.mxu1 %v2166_v55 }
 0x1c0   : > { %v2102_v43 = vpack.c.bf16 %v2019_v38, %v2018_v37  ;;  %v1766_v44 = vmax.f32 %v1638_v60, 0.0  ;;  %v1639_v45 = vadd.f32 %v1407_v39, %v1407_v39 }
 0x1c1   : > { %v1896_v46 = vadd.f32 %v1768_v41, %v1412_v25  ;;  %v1769_v47 = vmax.f32 %v1641_v42, 0.0  ;;  %v5156_v42 = vld [vmem:[%s5550_s7] ss:$8 sps:$4 sm:$0xff]  }
 0x1c2   : > { %v1894_v48 = vadd.f32 %v1766_v44, %v1404_v51  ;;  %v1767_v49 = vmax.f32 %v1639_v45, 0.0  ;;  %v4303_v50 = vpop.f32.mrb[96].mxu0  ;;  %2405 = vmatpush1.bf16.msra.mxu1 %v2102_v43 }
 0x1c3   : > { %v1897_v52 = vadd.f32 %v1769_v47, %v1415_v58  ;;  %v1428_v53 = vadd.f32 %v5028_v15, %v4303_v50  ;;  %v1419_v54 = vpop.f32.mrb[97].mxu0  ;;  %2406 = vmatprep.subr.bf16.mxu1 %v2167_v28  ;;  %v2169_v56 = vpack.c.bf16 %v1769_v47, %v1768_v41  ;;  %v2024_v22 = vmax.f32 %v1896_v46, 0.0  ;;  %v5162_v46 = vld [vmem:[%s5550_s7 + $0x14] ss:$8 sps:$4 sm:$0xff]  }
 0x1c4   : > { %v1895_v57 = vadd.f32 %v1767_v49, %v1407_v39  ;;  %v1420_v59 = vadd.f32 %v5028_v15, %v1419_v54  ;;  %v4304_v61 = vpop.f32.mrb[98].mxu0  ;;  %v2168_v62 = vpack.c.bf16 %v1767_v49, %v1766_v44  ;;  %v2022_v23 = vmax.f32 %v1894_v48, 0.0 }
 0x1c5   : > { %v2025_v63 = vmax.f32 %v1897_v52, 0.0  ;;  %v1644_v1 = vadd.f32 %v1428_v53, %v1428_v53  ;;  %v1431_v2 = vadd.f32 %v5028_v15, %v4304_v61  ;;  %v1422_v3 = vpop.f32.mrb[99].mxu0 }
 0x1c6   : > { %v2023_v4 = vmax.f32 %v1895_v57, 0.0  ;;  %v1642_v5 = vadd.f32 %v1420_v59, %v1420_v59  ;;  %v1423_v27 = vadd.f32 %v5028_v15, %v1422_v3  ;;  %2407 = vmatpush1.bf16.msra.mxu1 %v2103_v40 }
 0x1c7   : > { %v2105_v6 = vpack.c.bf16 %v2025_v63, %v2024_v22  ;;  %v1772_v7 = vmax.f32 %v1644_v1, 0.0  ;;  %v1645_v8 = vadd.f32 %v1431_v2, %v1431_v2  ;;  %2408 = vmatprep.subr.bf16.mxu1 %v2168_v62 }
 0x1c8   : > { %v2104_v9 = vpack.c.bf16 %v2023_v4, %v2022_v23  ;;  %v1770_v10 = vmax.f32 %v1642_v5, 0.0  ;;  %v1643_v11 = vadd.f32 %v1423_v27, %v1423_v27 }
 0x1c9   : > { %v1900_v29 = vadd.f32 %v1772_v7, %v1428_v53  ;;  %v1773_v12 = vmax.f32 %v1645_v8, 0.0 }
 0x1ca   : > { %v1898_v13 = vadd.f32 %v1770_v10, %v1420_v59  ;;  %v1771_v14 = vmax.f32 %v1643_v11, 0.0  ;;  %v4307_v0 = vpop.f32.mrb[100].mxu0  ;;  %2409 = vmatpush1.bf16.msra.mxu1 %v2104_v9 }
 0x1cb   : > { %v1901_v16 = vadd.f32 %v1773_v12, %v1431_v2  ;;  %v1444_v17 = vadd.f32 %v5028_v15, %v4307_v0  ;;  %v1435_v18 = vpop.f32.mrb[101].mxu0  ;;  %2410 = vmatprep.subr.bf16.mxu1 %v2169_v56  ;;  %v2171_v19 = vpack.c.bf16 %v1773_v12, %v1772_v7  ;;  %v2028_v26 = vmax.f32 %v1900_v29, 0.0 }
 0x1cc   : > { %v1899_v20 = vadd.f32 %v1771_v14, %v1423_v27  ;;  %v1436_v21 = vadd.f32 %v5028_v15, %v1435_v18  ;;  %v4308_v24 = vpop.f32.mrb[102].mxu0  ;;  %v2170_v25 = vpack.c.bf16 %v1771_v14, %v1770_v10  ;;  %v2026_v55 = vmax.f32 %v1898_v13, 0.0  ;;  %v5172_v10 = vld [vmem:[%s5550_s7 + $0x10] ss:$8 sps:$4 sm:$0xff]   ;;  %v5178_v13 = vld [vmem:[%s5550_s7 + $0x24] ss:$8 sps:$4 sm:$0xff]  }
 0x1cd   : > { %v2029_v28 = vmax.f32 %v1901_v16, 0.0  ;;  %v1648_v30 = vadd.f32 %v1444_v17, %v1444_v17  ;;  %v1447_v51 = vadd.f32 %v5028_v15, %v4308_v24  ;;  %v1438_v32 = vpop.f32.mrb[103].mxu0 }
 0x1ce   : > { %v2027_v33 = vmax.f32 %v1899_v20, 0.0  ;;  %v1646_v34 = vadd.f32 %v1436_v21, %v1436_v21  ;;  %v1439_v35 = vadd.f32 %v5028_v15, %v1438_v32  ;;  %2411 = vmatpush1.bf16.msra.mxu1 %v2105_v6 }
 0x1cf   : > { %v2107_v58 = vpack.c.bf16 %v2029_v28, %v2028_v26  ;;  %v1776_v36 = vmax.f32 %v1648_v30, 0.0  ;;  %v1649_v37 = vadd.f32 %v1447_v51, %v1447_v51  ;;  %2453 = vmatprep.subr.bf16.mxu1 %v2170_v25 }
 0x1d0   : > { %v2106_v38 = vpack.c.bf16 %v2027_v33, %v2026_v55  ;;  %v1774_v60 = vmax.f32 %v1646_v34, 0.0  ;;  %v1647_v39 = vadd.f32 %v1439_v35, %v1439_v35 }
 0x1d1   : > { %v1904_v40 = vadd.f32 %v1776_v36, %v1444_v17  ;;  %v1777_v41 = vmax.f32 %v1649_v37, 0.0  ;;  %2413 = vmatmul.mubr.bf16.vlgmr.msra.gmra.mrb[32].mxu1 %v5156_v42 }
 0x1d2   : > { %v1902_v43 = vadd.f32 %v1774_v60, %v1436_v21  ;;  %v1775_v44 = vmax.f32 %v1647_v39, 0.0  ;;  %v4311_v45 = vpop.f32.mrb[104].mxu0  ;;  %2454 = vmatpush1.bf16.msra.mxu1 %v2106_v38  ;;  %2422 = vmatprep.mubr.bf16.mxu1 %v5162_v46 }
 0x1d3   : > { %v1905_v47 = vadd.f32 %v1777_v41, %v1447_v51  ;;  %v1460_v48 = vadd.f32 %v5028_v15, %v4311_v45  ;;  %v1451_v49 = vpop.f32.mrb[105].mxu0  ;;  %2455 = vmatprep.subr.bf16.mxu1 %v2171_v19  ;;  %v2173_v50 = vpack.c.bf16 %v1777_v41, %v1776_v36  ;;  %v2032_v57 = vmax.f32 %v1904_v40, 0.0  ;;  %v5188_v40 = vld [vmem:[%s5550_s7 + $0x20] ss:$8 sps:$4 sm:$0xff]   ;;  %v5194_v45 = vld [vmem:[%s5550_s7 + $0x34] ss:$8 sps:$4 sm:$0xff]  }
 0x1d4   : > { %v1903_v52 = vadd.f32 %v1775_v44, %v1439_v35  ;;  %v1452_v53 = vadd.f32 %v5028_v15, %v1451_v49  ;;  %v4312_v54 = vpop.f32.mrb[106].mxu0  ;;  %v2172_v56 = vpack.c.bf16 %v1775_v44, %v1774_v60  ;;  %v2030_v63 = vmax.f32 %v1902_v43, 0.0 }
 0x1d5   : > { %v2033_v59 = vmax.f32 %v1905_v47, 0.0  ;;  %v1652_v61 = vadd.f32 %v1460_v48, %v1460_v48  ;;  %v1463_v62 = vadd.f32 %v5028_v15, %v4312_v54  ;;  %v1454_v22 = vpop.f32.mrb[107].mxu0 }
 0x1d6   : > { %v2031_v1 = vmax.f32 %v1903_v52, 0.0  ;;  %v1650_v2 = vadd.f32 %v1452_v53, %v1452_v53  ;;  %v1455_v3 = vadd.f32 %v5028_v15, %v1454_v22  ;;  %2456 = vmatpush1.bf16.msra.mxu1 %v2107_v58 }
 0x1d7   : > { %v2109_v23 = vpack.c.bf16 %v2033_v59, %v2032_v57  ;;  %v1780_v4 = vmax.f32 %v1652_v61, 0.0  ;;  %v1653_v5 = vadd.f32 %v1463_v62, %v1463_v62  ;;  %2457 = vmatprep.subr.bf16.mxu1 %v2172_v56 }
 0x1d8   : > { %v2108_v27 = vpack.c.bf16 %v2031_v1, %v2030_v63  ;;  %v1778_v6 = vmax.f32 %v1650_v2, 0.0  ;;  %v1651_v7 = vadd.f32 %v1455_v3, %v1455_v3 }
 0x1d9   : > { %v1908_v8 = vadd.f32 %v1780_v4, %v1460_v48  ;;  %v1781_v9 = vmax.f32 %v1653_v5, 0.0  ;;  %2423 = vmatmul.mubr.bf16.gmra.mrb[36].mxu1 %v5172_v10 }
 0x1da   : > { %v1906_v11 = vadd.f32 %v1778_v6, %v1452_v53  ;;  %v1779_v29 = vmax.f32 %v1651_v7, 0.0  ;;  %v4315_v12 = vpop.f32.mrb[108].mxu0  ;;  %2458 = vmatpush1.bf16.msra.mxu1 %v2108_v27  ;;  %2432 = vmatprep.mubr.bf16.mxu1 %v5178_v13 }
 0x1db   : > { %v1909_v14 = vadd.f32 %v1781_v9, %v1463_v62  ;;  %v1476_v0 = vadd.f32 %v5028_v15, %v4315_v12  ;;  %v1467_v16 = vpop.f32.mrb[109].mxu0  ;;  %2459 = vmatprep.subr.bf16.mxu1 %v2173_v50  ;;  %v2175_v17 = vpack.c.bf16 %v1781_v9, %v1780_v4  ;;  %v2036_v24 = vmax.f32 %v1908_v8, 0.0 }
 0x1dc   : > { %v1907_v18 = vadd.f32 %v1779_v29, %v1455_v3  ;;  %v1468_v19 = vadd.f32 %v5028_v15, %v1467_v16  ;;  %v4316_v20 = vpop.f32.mrb[110].mxu0  ;;  %v2174_v21 = vpack.c.bf16 %v1779_v29, %v1778_v6  ;;  %v2034_v51 = vmax.f32 %v1906_v11, 0.0  ;;  %v5204_v11 = vld [vmem:[%s5550_s7 + $0x30] ss:$8 sps:$4 sm:$0xff]  }
 0x1dd   : > { %v2037_v25 = vmax.f32 %v1909_v14, 0.0  ;;  %v1656_v26 = vadd.f32 %v1476_v0, %v1476_v0  ;;  %v1479_v28 = vadd.f32 %v5028_v15, %v4316_v20  ;;  %v1470_v30 = vpop.f32.mrb[111].mxu0  ;;  %v5212_v20 = vld [vmem:[%s5545_s2] ss:$0 sm:$0xff] }
 0x1de   : > { %v2035_v32 = vmax.f32 %v1907_v18, 0.0  ;;  %v1654_v55 = vadd.f32 %v1468_v19, %v1468_v19  ;;  %v1471_v33 = vadd.f32 %v5028_v15, %v1470_v30  ;;  %2460 = vmatpush1.bf16.msra.mxu1 %v2109_v23 }
 0x1df   : > { %v2111_v34 = vpack.c.bf16 %v2037_v25, %v2036_v24  ;;  %v1784_v35 = vmax.f32 %v1656_v26, 0.0  ;;  %v1657_v58 = vadd.f32 %v1479_v28, %v1479_v28  ;;  %2461 = vmatprep.subr.bf16.mxu1 %v2174_v21 }
 0x1e0   : > { %v2110_v36 = vpack.c.bf16 %v2035_v32, %v2034_v51  ;;  %v1782_v37 = vmax.f32 %v1654_v55, 0.0  ;;  %v1655_v38 = vadd.f32 %v1471_v33, %v1471_v33 }
 0x1e1   : > { %v1912_v60 = vadd.f32 %v1784_v35, %v1476_v0  ;;  %v1785_v39 = vmax.f32 %v1657_v58, 0.0  ;;  %2433 = vmatmul.mubr.bf16.gmra.mrb[40].mxu1 %v5188_v40 }
 0x1e2   : > { %v1910_v41 = vadd.f32 %v1782_v37, %v1468_v19  ;;  %v1783_v43 = vmax.f32 %v1655_v38, 0.0  ;;  %v4319_v44 = vpop.f32.mrb[112].mxu0  ;;  %2462 = vmatpush1.bf16.msra.mxu1 %v2110_v36  ;;  %2442 = vmatprep.mubr.bf16.mxu1 %v5194_v45 }
 0x1e3   : > { %v1913_v47 = vadd.f32 %v1785_v39, %v1479_v28  ;;  %v1492_v48 = vadd.f32 %v5028_v15, %v4319_v44  ;;  %v1483_v49 = vpop.f32.mrb[113].mxu0  ;;  %2463 = vmatprep.subr.bf16.mxu1 %v2175_v17  ;;  %v2177_v50 = vpack.c.bf16 %v1785_v39, %v1784_v35  ;;  %v2040_v57 = vmax.f32 %v1912_v60, 0.0 }
 0x1e4   : > { %v1911_v52 = vadd.f32 %v1783_v43, %v1471_v33  ;;  %v1484_v53 = vadd.f32 %v5028_v15, %v1483_v49  ;;  %v4320_v54 = vpop.f32.mrb[114].mxu0  ;;  %v2176_v56 = vpack.c.bf16 %v1783_v43, %v1782_v37  ;;  %v2038_v63 = vmax.f32 %v1910_v41, 0.0 }
 0x1e5   : > { %v2041_v59 = vmax.f32 %v1913_v47, 0.0  ;;  %v1660_v61 = vadd.f32 %v1492_v48, %v1492_v48  ;;  %v1495_v62 = vadd.f32 %v5028_v15, %v4320_v54  ;;  %v1486_v22 = vpop.f32.mrb[115].mxu0 }
 0x1e6   : > { %v2039_v1 = vmax.f32 %v1911_v52, 0.0  ;;  %v1658_v2 = vadd.f32 %v1484_v53, %v1484_v53  ;;  %v1487_v3 = vadd.f32 %v5028_v15, %v1486_v22  ;;  %2464 = vmatpush1.bf16.msra.mxu1 %v2111_v34 }
 0x1e7   : > { %v2113_v23 = vpack.c.bf16 %v2041_v59, %v2040_v57  ;;  %v1788_v4 = vmax.f32 %v1660_v61, 0.0  ;;  %v1661_v5 = vadd.f32 %v1495_v62, %v1495_v62  ;;  %2465 = vmatprep.subr.bf16.mxu1 %v2176_v56 }
 0x1e8   : > { %v2112_v27 = vpack.c.bf16 %v2039_v1, %v2038_v63  ;;  %v1786_v6 = vmax.f32 %v1658_v2, 0.0  ;;  %v1659_v7 = vadd.f32 %v1487_v3, %v1487_v3 }
 0x1e9   : > { %v1916_v8 = vadd.f32 %v1788_v4, %v1492_v48  ;;  %v1789_v9 = vmax.f32 %v1661_v5, 0.0  ;;  %2443 = vmatmul.mubr.bf16.gmra.mrb[44].mxu1 %v5204_v11 }
 0x1ea   : > { %v1914_v29 = vadd.f32 %v1786_v6, %v1484_v53  ;;  %v1787_v12 = vmax.f32 %v1659_v7, 0.0  ;;  %v4323_v14 = vpop.f32.mrb[116].mxu0  ;;  %2466 = vmatpush1.bf16.msra.mxu1 %v2112_v27  ;;  %2485 = vmatprep.mubr.bf16.mxu1 %v5130_v31 }
 0x1eb   : > { %v1917_v0 = vadd.f32 %v1789_v9, %v1495_v62  ;;  %v1508_v16 = vadd.f32 %v5028_v15, %v4323_v14  ;;  %v1499_v17 = vpop.f32.mrb[117].mxu0  ;;  %2467 = vmatprep.subr.bf16.mxu1 %v2177_v50  ;;  %v2179_v18 = vpack.c.bf16 %v1789_v9, %v1788_v4  ;;  %v2044_v26 = vmax.f32 %v1916_v8, 0.0 }
 0x1ec   : > { %v1915_v19 = vadd.f32 %v1787_v12, %v1487_v3  ;;  %v1500_v21 = vadd.f32 %v5212_v20, %v1499_v17  ;;  %v4324_v24 = vpop.f32.mrb[118].mxu0  ;;  %v2178_v25 = vpack.c.bf16 %v1787_v12, %v1786_v6  ;;  %v2042_v15 = vmax.f32 %v1914_v29, 0.0 }
 0x1ed   : > { %v2045_v28 = vmax.f32 %v1917_v0, 0.0  ;;  %v1664_v30 = vadd.f32 %v1508_v16, %v1508_v16  ;;  %v1511_v31 = vadd.f32 %v5212_v20, %v4324_v24  ;;  %v1502_v51 = vpop.f32.mrb[119].mxu0 }
 0x1ee   : > { %v2043_v32 = vmax.f32 %v1915_v19, 0.0  ;;  %v1662_v55 = vadd.f32 %v1500_v21, %v1500_v21  ;;  %v1503_v33 = vadd.f32 %v5212_v20, %v1502_v51  ;;  %2468 = vmatpush1.bf16.msra.mxu1 %v2113_v23 }
 0x1ef   : > { %v2115_v34 = vpack.c.bf16 %v2045_v28, %v2044_v26  ;;  %v1792_v35 = vmax.f32 %v1664_v30, 0.0  ;;  %v1665_v58 = vadd.f32 %v1511_v31, %v1511_v31  ;;  %2469 = vmatprep.subr.bf16.mxu1 %v2178_v25 }
 0x1f0   : > { %v2114_v36 = vpack.c.bf16 %v2043_v32, %v2042_v15  ;;  %v1790_v37 = vmax.f32 %v1662_v55, 0.0  ;;  %v1663_v38 = vadd.f32 %v1503_v33, %v1503_v33 }
 0x1f1   : > { %v1920_v60 = vadd.f32 %v1792_v35, %v1508_v16  ;;  %v1793_v39 = vmax.f32 %v1665_v58, 0.0 }
 0x1f2   : > { %v1918_v41 = vadd.f32 %v1790_v37, %v1500_v21  ;;  %v1791_v43 = vmax.f32 %v1663_v38, 0.0  ;;  %v4327_v44 = vpop.f32.mrb[120].mxu0  ;;  %2470 = vmatpush1.bf16.msra.mxu1 %v2114_v36 }
 0x1f3   : > { %v1921_v47 = vadd.f32 %v1793_v39, %v1511_v31  ;;  %v1524_v48 = vadd.f32 %v5212_v20, %v4327_v44  ;;  %v1515_v49 = vpop.f32.mrb[121].mxu0  ;;  %2471 = vmatprep.subr.bf16.mxu1 %v2179_v18  ;;  %v2181_v50 = vpack.c.bf16 %v1793_v39, %v1792_v35  ;;  %v2048_v57 = vmax.f32 %v1920_v60, 0.0 }
 0x1f4   : > { %v1919_v52 = vadd.f32 %v1791_v43, %v1503_v33  ;;  %v1516_v53 = vadd.f32 %v5212_v20, %v1515_v49  ;;  %v4328_v54 = vpop.f32.mrb[122].mxu0  ;;  %v2180_v56 = vpack.c.bf16 %v1791_v43, %v1790_v37  ;;  %v2046_v63 = vmax.f32 %v1918_v41, 0.0 }
 0x1f5   : > { %v2049_v59 = vmax.f32 %v1921_v47, 0.0  ;;  %v1668_v61 = vadd.f32 %v1524_v48, %v1524_v48  ;;  %v1527_v62 = vadd.f32 %v5212_v20, %v4328_v54  ;;  %v1518_v22 = vpop.f32.mrb[123].mxu0 }
 0x1f6   : > { %v2047_v1 = vmax.f32 %v1919_v52, 0.0  ;;  %v1666_v2 = vadd.f32 %v1516_v53, %v1516_v53  ;;  %v1519_v3 = vadd.f32 %v5212_v20, %v1518_v22  ;;  %2472 = vmatpush1.bf16.msra.mxu1 %v2115_v34 }
 0x1f7   : > { %v2117_v23 = vpack.c.bf16 %v2049_v59, %v2048_v57  ;;  %v1796_v4 = vmax.f32 %v1668_v61, 0.0  ;;  %v1669_v5 = vadd.f32 %v1527_v62, %v1527_v62  ;;  %2473 = vmatprep.subr.bf16.mxu1 %v2180_v56 }
 0x1f8   : > { %v2116_v27 = vpack.c.bf16 %v2047_v1, %v2046_v63  ;;  %v1794_v6 = vmax.f32 %v1666_v2, 0.0  ;;  %v1667_v7 = vadd.f32 %v1519_v3, %v1519_v3 }
 0x1f9   : > { %v1924_v8 = vadd.f32 %v1796_v4, %v1524_v48  ;;  %v1797_v9 = vmax.f32 %v1669_v5, 0.0 }
 0x1fa   : > { %v1922_v29 = vadd.f32 %v1794_v6, %v1516_v53  ;;  %v1795_v12 = vmax.f32 %v1667_v7, 0.0  ;;  %v4331_v14 = vpop.f32.mrb[124].mxu0  ;;  %2474 = vmatpush1.bf16.msra.mxu1 %v2116_v27 }
 0x1fb   : > { %v1925_v0 = vadd.f32 %v1797_v9, %v1527_v62  ;;  %v1540_v16 = vadd.f32 %v5212_v20, %v4331_v14  ;;  %v1531_v17 = vpop.f32.mrb[125].mxu0  ;;  %2475 = vmatprep.subr.bf16.mxu1 %v2181_v50  ;;  %v2183_v18 = vpack.c.bf16 %v1797_v9, %v1796_v4  ;;  %v2052_v26 = vmax.f32 %v1924_v8, 0.0 }
 0x1fc   : > { %v1923_v19 = vadd.f32 %v1795_v12, %v1519_v3  ;;  %v1532_v21 = vadd.f32 %v5212_v20, %v1531_v17  ;;  %v4332_v24 = vpop.f32.mrb[126].mxu0  ;;  %v2182_v25 = vpack.c.bf16 %v1795_v12, %v1794_v6  ;;  %v2050_v15 = vmax.f32 %v1922_v29, 0.0 }
 0x1fd   : > { %v2053_v28 = vmax.f32 %v1925_v0, 0.0  ;;  %v1672_v30 = vadd.f32 %v1540_v16, %v1540_v16  ;;  %v1543_v31 = vadd.f32 %v5212_v20, %v4332_v24  ;;  %v1534_v51 = vpop.f32.mrb[127].mxu0 }
 0x1fe   : > { %v2051_v32 = vmax.f32 %v1923_v19, 0.0  ;;  %v1670_v55 = vadd.f32 %v1532_v21, %v1532_v21  ;;  %v1535_v33 = vadd.f32 %v5212_v20, %v1534_v51  ;;  %2476 = vmatpush1.bf16.msra.mxu1 %v2117_v23 }
 0x1ff   : > { %v2119_v34 = vpack.c.bf16 %v2053_v28, %v2052_v26  ;;  %v1800_v35 = vmax.f32 %v1672_v30, 0.0  ;;  %v1673_v58 = vadd.f32 %v1543_v31, %v1543_v31  ;;  %2477 = vmatprep.subr.bf16.mxu1 %v2182_v25 }
 0x200   : > { %v2118_v36 = vpack.c.bf16 %v2051_v32, %v2050_v15  ;;  %v1798_v37 = vmax.f32 %v1670_v55, 0.0  ;;  %v1671_v38 = vadd.f32 %v1535_v33, %v1535_v33 }
 0x201   : > { %v1928_v60 = vadd.f32 %v1800_v35, %v1540_v16  ;;  %v1801_v39 = vmax.f32 %v1673_v58, 0.0 }
 0x202   : > { %v1926_v41 = vadd.f32 %v1798_v37, %v1532_v21  ;;  %v1799_v43 = vmax.f32 %v1671_v38, 0.0  ;;  %2478 = vmatpush1.bf16.msra.mxu1 %v2118_v36 }
 0x203   : > { %v1929_v44 = vadd.f32 %v1801_v39, %v1543_v31  ;;  %2479 = vmatprep.subr.bf16.mxu1 %v2183_v18  ;;  %v2185_v47 = vpack.c.bf16 %v1801_v39, %v1800_v35  ;;  %v2056_v50 = vmax.f32 %v1928_v60, 0.0 }
 0x204   : > { %v1927_v48 = vadd.f32 %v1799_v43, %v1535_v33  ;;  %v2184_v49 = vpack.c.bf16 %v1799_v43, %v1798_v37  ;;  %v2054_v52 = vmax.f32 %v1926_v41, 0.0 }
 0x205   : > { %v2057_v20 = vmax.f32 %v1929_v44, 0.0 }
 0x206   : > { %v2055_v53 = vmax.f32 %v1927_v48, 0.0  ;;  %2480 = vmatpush1.bf16.msra.mxu1 %v2119_v34 }
 0x207   : > { %v2121_v54 = vpack.c.bf16 %v2057_v20, %v2056_v50  ;;  %2481 = vmatprep.subr.bf16.mxu1 %v2184_v49 }
 0x208   : > { %v2120_v56 = vpack.c.bf16 %v2055_v53, %v2054_v52 }
 0x20a   : > { %2482 = vmatpush1.bf16.msra.mxu1 %v2120_v56 }
 0x20b   : > { %2483 = vmatprep.subr.bf16.mxu1 %v2185_v47 }
 0x20e   : > { %2484 = vmatpush1.bf16.msra.mxu1 %v2121_v54 }
 0x211   : > { %2486 = vmatmul.mubr.bf16.vlgmr.msra.gmra.mrb[48].mxu1 %v5156_v42 }
 0x212   : > { %2495 = vmatprep.mubr.bf16.mxu1 %v5162_v46 }
 0x219   : > { %2496 = vmatmul.mubr.bf16.gmra.mrb[52].mxu1 %v5172_v10 }
 0x21a   : > { %2505 = vmatprep.mubr.bf16.mxu1 %v5178_v13 }
 0x221   : > { %2506 = vmatmul.mubr.bf16.gmra.mrb[56].mxu1 %v5188_v40 }
 0x222   : > { %2515 = vmatprep.mubr.bf16.mxu1 %v5194_v45 }
 0x224   : > { %v2268_v57 = vpop.f32.mrb[0].mxu1 }
 0x225   : > { %v2270_v59 = vpop.f32.mrb[1].mxu1 }
 0x226   : > { %v2272_v61 = vpop.f32.mrb[2].mxu1 }
 0x227   : > { %v2526_v62 = vpack.c.bf16 %v2272_v61, %v2268_v57  ;;  %v2274_v22 = vpop.f32.mrb[3].mxu1 }
 0x228   : > { %v2527_v63 = vpack.c.bf16 %v2274_v22, %v2270_v59 }
 0x229   : > { %2516 = vmatmul.mubr.bf16.gmra.mrb[60].mxu1 %v5204_v11 }
 0x22a   : > { %2794 = vmatprep.mubr.bf16.mxu0 %v2527_v63 }
 0x22b   : > { %2795 = vmatmul.mubr.bf16.vlgmr.msra.gmra.mrb[128].mxu0 %v2526_v62 }
 0x22c   : > { %v2278_v42 = vpop.f32.mrb[4].mxu1 }
 0x22d   : > { %v2280_v46 = vpop.f32.mrb[5].mxu1 }
 0x22e   : > { %v2282_v1 = vpop.f32.mrb[6].mxu1 }
 0x22f   : > { %v2528_v10 = vpack.c.bf16 %v2282_v1, %v2278_v42  ;;  %v2284_v2 = vpop.f32.mrb[7].mxu1  ;;  %v4670_v1 = vmov 0  }
 0x230   : > { %v2529_v13 = vpack.c.bf16 %v2284_v2, %v2280_v46  ;;  %3222 = vmatprep.mubr.bf16.mxu1 %v4670_v1 }
 0x232   : > { %2804 = vmatprep.mubr.bf16.mxu0 %v2529_v13 }
 0x233   : > { %2805 = vmatmul.mubr.bf16.gmra.mrb[132].mxu0 %v2528_v10 }
 0x234   : > { %v2288_v40 = vpop.f32.mrb[8].mxu1 }
 0x235   : > { %v2290_v45 = vpop.f32.mrb[9].mxu1 }
 0x236   : > { %v2292_v3 = vpop.f32.mrb[10].mxu1 }
 0x237   : > { %v2530_v23 = vpack.c.bf16 %v2292_v3, %v2288_v40  ;;  %v2294_v4 = vpop.f32.mrb[11].mxu1 }
 0x238   : > { %v2531_v5 = vpack.c.bf16 %v2294_v4, %v2290_v45 }
 0x23a   : > { %2814 = vmatprep.mubr.bf16.mxu0 %v2531_v5 }
 0x23b   : > { %2815 = vmatmul.mubr.bf16.gmra.mrb[136].mxu0 %v2530_v23 }
 0x23c   : > { %v2298_v27 = vpop.f32.mrb[12].mxu1 }
 0x23d   : > { %v2300_v11 = vpop.f32.mrb[13].mxu1 }
 0x23e   : > { %v2302_v6 = vpop.f32.mrb[14].mxu1 }
 0x23f   : > { %v2532_v7 = vpack.c.bf16 %v2302_v6, %v2298_v27  ;;  %v2304_v8 = vpop.f32.mrb[15].mxu1  ;;  %v2592_v6 = vlaneseq }
 0x240   : > { %v2533_v9 = vpack.c.bf16 %v2304_v8, %v2300_v11 }
 0x241   : > { %v5233_v8 = vshrl.u32 %v2592_v6, 7 }
 0x242   : > { %2824 = vmatprep.mubr.bf16.mxu0 %v2533_v9 }
 0x243   : > { %2825 = vmatmul.mubr.bf16.gmra.mrb[140].mxu0 %v2532_v7 }
 0x264   : > { %v2341_v29 = vpop.f32.mrb[16].mxu1 }
 0x265   : > { %v2343_v12 = vpop.f32.mrb[17].mxu1 }
 0x266   : > { %v2345_v14 = vpop.f32.mrb[18].mxu1 }
 0x267   : > { %v2534_v0 = vpack.c.bf16 %v2345_v14, %v2341_v29  ;;  %v2347_v16 = vpop.f32.mrb[19].mxu1 }
 0x268   : > { %v2535_v17 = vpack.c.bf16 %v2347_v16, %v2343_v12  ;;  %v2594_v16 = vsub.s32 0, %v5233_v8 }
 0x26a   : > { %2834 = vmatprep.mubr.bf16.mxu0 %v2535_v17 }
 0x26b   : > { %2835 = vmatmul.mubr.bf16.gmra.mrb[144].mxu0 %v2534_v0 }
 0x26c   : > { %v2351_v18 = vpop.f32.mrb[20].mxu1 }
 0x26d   : > { %v2353_v19 = vpop.f32.mrb[21].mxu1 }
 0x26e   : > { %v2355_v21 = vpop.f32.mrb[22].mxu1 }
 0x26f   : > { %v2536_v24 = vpack.c.bf16 %v2355_v21, %v2351_v18  ;;  %v2357_v25 = vpop.f32.mrb[23].mxu1  ;;  %v2590_v18 = vld [vmem:[%s5547_s4] sm:$0x3] }
 0x270   : > { %v2537_v26 = vpack.c.bf16 %v2357_v25, %v2353_v19  ;;  %v2598_v19 = vsub.s32 1, %v5233_v8  ;;  %v5242_v21 = vrot.slane %v2590_v18, %v2594_v16 }
 0x272   : > { %2844 = vmatprep.mubr.bf16.mxu0 %v2537_v26  ;;  %v5246_v25 = vrot.slane %v2590_v18, %v2598_v19 }
 0x273   : > { %2845 = vmatmul.mubr.bf16.gmra.mrb[148].mxu0 %v2536_v24 }
 0x274   : > { %v2361_v28 = vpop.f32.mrb[24].mxu1 }
 0x275   : > { %v2363_v30 = vpop.f32.mrb[25].mxu1 }
 0x276   : > { %v2365_v31 = vpop.f32.mrb[26].mxu1 }
 0x277   : > { %v2538_v51 = vpack.c.bf16 %v2365_v31, %v2361_v28  ;;  %v2367_v15 = vpop.f32.mrb[27].mxu1 }
 0x278   : > { %v2539_v32 = vpack.c.bf16 %v2367_v15, %v2363_v30 }
 0x27a   : > { %2854 = vmatprep.mubr.bf16.mxu0 %v2539_v32 }
 0x27b   : > { %2855 = vmatmul.mubr.bf16.gmra.mrb[152].mxu0 %v2538_v51 }
 0x27c   : > { %v2371_v55 = vpop.f32.mrb[28].mxu1 }
 0x27d   : > { %v2373_v33 = vpop.f32.mrb[29].mxu1 }
 0x27e   : > { %v2375_v34 = vpop.f32.mrb[30].mxu1 }
 0x27f   : > { %v2540_v35 = vpack.c.bf16 %v2375_v34, %v2371_v55  ;;  %v2377_v58 = vpop.f32.mrb[31].mxu1 }
 0x280   : > { %v2541_v36 = vpack.c.bf16 %v2377_v58, %v2373_v33 }
 0x282   : > { %2864 = vmatprep.mubr.bf16.mxu0 %v2541_v36 }
 0x283   : > { %2865 = vmatmul.mubr.bf16.gmra.mrb[156].mxu0 %v2540_v35 }
 0x2a4   : > { %v2414_v37 = vpop.f32.mrb[32].mxu1 }
 0x2a5   : > { %v2416_v38 = vpop.f32.mrb[33].mxu1 }
 0x2a6   : > { %v2418_v60 = vpop.f32.mrb[34].mxu1 }
 0x2a7   : > { %v2542_v39 = vpack.c.bf16 %v2418_v60, %v2414_v37  ;;  %v2420_v41 = vpop.f32.mrb[35].mxu1 }
 0x2a8   : > { %v2543_v43 = vpack.c.bf16 %v2420_v41, %v2416_v38 }
 0x2aa   : > { %2874 = vmatprep.mubr.bf16.mxu0 %v2543_v43 }
 0x2ab   : > { %2875 = vmatmul.mubr.bf16.gmra.mrb[160].mxu0 %v2542_v39 }
 0x2ac   : > { %v2424_v44 = vpop.f32.mrb[36].mxu1 }
 0x2ad   : > { %v2426_v47 = vpop.f32.mrb[37].mxu1 }
 0x2ae   : > { %v2428_v48 = vpop.f32.mrb[38].mxu1 }
 0x2af   : > { %v2544_v49 = vpack.c.bf16 %v2428_v48, %v2424_v44  ;;  %v2430_v50 = vpop.f32.mrb[39].mxu1 }
 0x2b0   : > { %v2545_v20 = vpack.c.bf16 %v2430_v50, %v2426_v47 }
 0x2b2   : > { %2884 = vmatprep.mubr.bf16.mxu0 %v2545_v20 }
 0x2b3   : > { %2885 = vmatmul.mubr.bf16.gmra.mrb[164].mxu0 %v2544_v49 }
 0x2b4   : > { %v2434_v52 = vpop.f32.mrb[40].mxu1 }
 0x2b5   : > { %v2436_v53 = vpop.f32.mrb[41].mxu1 }
 0x2b6   : > { %v2438_v54 = vpop.f32.mrb[42].mxu1 }
 0x2b7   : > { %v2546_v56 = vpack.c.bf16 %v2438_v54, %v2434_v52  ;;  %v2440_v57 = vpop.f32.mrb[43].mxu1 }
 0x2b8   : > { %v2547_v59 = vpack.c.bf16 %v2440_v57, %v2436_v53 }
 0x2ba   : > { %2894 = vmatprep.mubr.bf16.mxu0 %v2547_v59 }
 0x2bb   : > { %2895 = vmatmul.mubr.bf16.gmra.mrb[168].mxu0 %v2546_v56 }
 0x2bc   : > { %v2444_v61 = vpop.f32.mrb[44].mxu1 }
 0x2bd   : > { %v2446_v62 = vpop.f32.mrb[45].mxu1 }
 0x2be   : > { %v2448_v22 = vpop.f32.mrb[46].mxu1 }
 0x2bf   : > { %v2548_v63 = vpack.c.bf16 %v2448_v22, %v2444_v61  ;;  %v2450_v42 = vpop.f32.mrb[47].mxu1 }
 0x2c0   : > { %v2549_v46 = vpack.c.bf16 %v2450_v42, %v2446_v62 }
 0x2c2   : > { %2904 = vmatprep.mubr.bf16.mxu0 %v2549_v46 }
 0x2c3   : > { %2905 = vmatmul.mubr.bf16.gmra.mrb[172].mxu0 %v2548_v63 }
 0x2e4   : > { %v2487_v10 = vpop.f32.mrb[48].mxu1 }
 0x2e5   : > { %v2489_v2 = vpop.f32.mrb[49].mxu1 }
 0x2e6   : > { %v2491_v13 = vpop.f32.mrb[50].mxu1 }
 0x2e7   : > { %v2550_v40 = vpack.c.bf16 %v2491_v13, %v2487_v10  ;;  %v2493_v45 = vpop.f32.mrb[51].mxu1 }
 0x2e8   : > { %v2551_v3 = vpack.c.bf16 %v2493_v45, %v2489_v2 }
 0x2ea   : > { %2914 = vmatprep.mubr.bf16.mxu0 %v2551_v3 }
 0x2eb   : > { %2915 = vmatmul.mubr.bf16.gmra.mrb[176].mxu0 %v2550_v40 }
 0x2ec   : > { %v2497_v23 = vpop.f32.mrb[52].mxu1 }
 0x2ed   : > { %v2499_v4 = vpop.f32.mrb[53].mxu1 }
 0x2ee   : > { %v2501_v5 = vpop.f32.mrb[54].mxu1 }
 0x2ef   : > { %v2552_v27 = vpack.c.bf16 %v2501_v5, %v2497_v23  ;;  %v2503_v11 = vpop.f32.mrb[55].mxu1 }
 0x2f0   : > { %v2553_v7 = vpack.c.bf16 %v2503_v11, %v2499_v4 }
 0x2f2   : > { %2924 = vmatprep.mubr.bf16.mxu0 %v2553_v7 }
 0x2f3   : > { %2925 = vmatmul.mubr.bf16.gmra.mrb[180].mxu0 %v2552_v27 }
 0x2f4   : > { %v2507_v9 = vpop.f32.mrb[56].mxu1 }
 0x2f5   : > { %v2509_v29 = vpop.f32.mrb[57].mxu1 }
 0x2f6   : > { %v2511_v12 = vpop.f32.mrb[58].mxu1 }
 0x2f7   : > { %v2554_v14 = vpack.c.bf16 %v2511_v12, %v2507_v9  ;;  %v2513_v0 = vpop.f32.mrb[59].mxu1 }
 0x2f8   : > { %v2555_v17 = vpack.c.bf16 %v2513_v0, %v2509_v29 }
 0x2fa   : > { %2934 = vmatprep.mubr.bf16.mxu0 %v2555_v17 }
 0x2fb   : > { %2935 = vmatmul.mubr.bf16.gmra.mrb[184].mxu0 %v2554_v14 }
 0x2fc   : > { %v2517_v24 = vpop.f32.mrb[60].mxu1 }
 0x2fd   : > { %v2519_v26 = vpop.f32.mrb[61].mxu1 }
 0x2fe   : > { %v2521_v28 = vpop.f32.mrb[62].mxu1  ;;  %v2796_v30 = vpop.f32.mrb[128].mxu0 }
 0x2ff   : > { %v2556_v31 = vpack.c.bf16 %v2521_v28, %v2517_v24  ;;  %v2797_v51 = vadd.f32 %v2796_v30, %v5242_v21  ;;  %v2523_v15 = vpop.f32.mrb[63].mxu1  ;;  %v2798_v32 = vpop.f32.mrb[129].mxu0 }
 0x300   : > { %v2557_v55 = vpack.c.bf16 %v2523_v15, %v2519_v26  ;;  %v2799_v33 = vadd.f32 %v2798_v32, %v5246_v25  ;;  %v2800_v34 = vpop.f32.mrb[130].mxu0 }
 0x301   : > { %v2801_v35 = vadd.f32 %v2800_v34, %v5242_v21  ;;  %v2802_v58 = vpop.f32.mrb[131].mxu0 }
 0x302   : > { %v2955_v36 = vadd.f32 %v2799_v33, %v2797_v51  ;;  %v2803_v37 = vadd.f32 %v2802_v58, %v5246_v25  ;;  %2944 = vmatprep.mubr.bf16.mxu0 %v2557_v55 }
 0x303   : > { %2945 = vmatmul.mubr.bf16.gmra.mrb[188].mxu0 %v2556_v31 }
 0x304   : > { %v2987_v38 = vmax.f32 %v2955_v36, 0.0  ;;  %v2956_v60 = vadd.f32 %v2803_v37, %v2801_v35 }
 0x306   : > { %v3019_v39 = vadd.f32 %v2987_v38, %v2797_v51  ;;  %v2988_v41 = vmax.f32 %v2956_v60, 0.0  ;;  %v2806_v43 = vpop.f32.mrb[132].mxu0 }
 0x307   : > { %v2807_v44 = vadd.f32 %v2806_v43, %v5242_v21  ;;  %v2808_v47 = vpop.f32.mrb[133].mxu0 }
 0x308   : > { %v3051_v48 = vmax.f32 %v3019_v39, 0.0  ;;  %v3020_v49 = vadd.f32 %v2988_v41, %v2801_v35  ;;  %v2809_v50 = vadd.f32 %v2808_v47, %v5246_v25  ;;  %v2810_v20 = vpop.f32.mrb[134].mxu0 }
 0x309   : > { %v2811_v52 = vadd.f32 %v2810_v20, %v5242_v21  ;;  %v2812_v53 = vpop.f32.mrb[135].mxu0 }
 0x30a   : > { %v3083_v54 = vadd.f32 %v3051_v48, %v2987_v38  ;;  %v3052_v56 = vmax.f32 %v3020_v49, 0.0  ;;  %v2957_v57 = vadd.f32 %v2809_v50, %v2807_v44  ;;  %v2813_v59 = vadd.f32 %v2812_v53, %v5246_v25 }
 0x30c   : > { %v3084_v61 = vadd.f32 %v3052_v56, %v2988_v41  ;;  %v3163_v62 = vpack.c.bf16 %v3052_v56, %v3051_v48  ;;  %v2989_v22 = vmax.f32 %v2957_v57, 0.0  ;;  %v2958_v63 = vadd.f32 %v2813_v59, %v2811_v52 }
 0x30d   : > { %v3115_v42 = vmax.f32 %v3083_v54, 0.0 }
 0x30e   : > { %v3116_v46 = vmax.f32 %v3084_v61, 0.0  ;;  %3190 = vmatprep.subr.bf16.mxu1 %v3163_v62  ;;  %v3021_v10 = vadd.f32 %v2989_v22, %v2807_v44  ;;  %v2816_v2 = vpop.f32.mrb[136].mxu0  ;;  %v2990_v13 = vmax.f32 %v2958_v63, 0.0 }
 0x30f   : > { %v2817_v40 = vadd.f32 %v2816_v2, %v5242_v21  ;;  %v2818_v45 = vpop.f32.mrb[137].mxu0 }
 0x310   : > { %v3147_v3 = vpack.c.bf16 %v3116_v46, %v3115_v42  ;;  %v3053_v23 = vmax.f32 %v3021_v10, 0.0  ;;  %v2819_v4 = vadd.f32 %v2818_v45, %v5246_v25  ;;  %v2820_v5 = vpop.f32.mrb[138].mxu0  ;;  %v3022_v27 = vadd.f32 %v2990_v13, %v2811_v52  ;;  %v5267_v42 = vld [vmem:[%s5551_s8] sm:$0xff]  }
 0x311   : > { %v2821_v11 = vadd.f32 %v2820_v5, %v5242_v21  ;;  %v2822_v6 = vpop.f32.mrb[139].mxu0 }
 0x312   : > { %3191 = vmatpush1.bf16.msra.mxu1 %v3147_v3  ;;  %v3085_v7 = vadd.f32 %v3053_v23, %v2989_v22  ;;  %v2959_v9 = vadd.f32 %v2819_v4, %v2817_v40  ;;  %v2823_v29 = vadd.f32 %v2822_v6, %v5246_v25  ;;  %v3054_v12 = vmax.f32 %v3022_v27, 0.0 }
 0x314   : > { %v2991_v14 = vmax.f32 %v2959_v9, 0.0  ;;  %v2960_v0 = vadd.f32 %v2823_v29, %v2821_v11  ;;  %v3117_v17 = vmax.f32 %v3085_v7, 0.0  ;;  %v3086_v18 = vadd.f32 %v3054_v12, %v2990_v13 }
 0x315   : > { %v3164_v24 = vpack.c.bf16 %v3054_v12, %v3053_v23 }
 0x316   : > { %v3023_v26 = vadd.f32 %v2991_v14, %v2817_v40  ;;  %v2992_v28 = vmax.f32 %v2960_v0, 0.0  ;;  %v2826_v30 = vpop.f32.mrb[140].mxu0  ;;  %v3118_v31 = vmax.f32 %v3086_v18, 0.0 }
 0x317   : > { %v2827_v51 = vadd.f32 %v2826_v30, %v5242_v21  ;;  %3192 = vmatprep.subr.bf16.mxu1 %v3164_v24  ;;  %v2828_v15 = vpop.f32.mrb[141].mxu0 }
 0x318   : > { %v3055_v32 = vmax.f32 %v3023_v26, 0.0  ;;  %v3024_v55 = vadd.f32 %v2992_v28, %v2821_v11  ;;  %v2829_v33 = vadd.f32 %v2828_v15, %v5246_v25  ;;  %v2830_v34 = vpop.f32.mrb[142].mxu0  ;;  %v3148_v36 = vpack.c.bf16 %v3118_v31, %v3117_v17 }
 0x319   : > { %v2831_v35 = vadd.f32 %v2830_v34, %v5242_v21  ;;  %v2832_v58 = vpop.f32.mrb[143].mxu0 }
 0x31a   : > { %v3087_v37 = vadd.f32 %v3055_v32, %v2991_v14  ;;  %v3056_v38 = vmax.f32 %v3024_v55, 0.0  ;;  %v2961_v60 = vadd.f32 %v2829_v33, %v2827_v51  ;;  %v2833_v39 = vadd.f32 %v2832_v58, %v5246_v25  ;;  %3193 = vmatpush1.bf16.msra.mxu1 %v3148_v36 }
 0x31c   : > { %v3119_v41 = vmax.f32 %v3087_v37, 0.0  ;;  %v3088_v43 = vadd.f32 %v3056_v38, %v2992_v28  ;;  %v2993_v44 = vmax.f32 %v2961_v60, 0.0  ;;  %v2962_v47 = vadd.f32 %v2833_v39, %v2831_v35 }
 0x31d   : > { %v3165_v48 = vpack.c.bf16 %v3056_v38, %v3055_v32 }
 0x31e   : > { %v3120_v49 = vmax.f32 %v3088_v43, 0.0  ;;  %v3025_v50 = vadd.f32 %v2993_v44, %v2827_v51  ;;  %v2994_v20 = vmax.f32 %v2962_v47, 0.0 }
 0x31f   : > { %3194 = vmatprep.subr.bf16.mxu1 %v3165_v48 }
 0x320   : > { %v3057_v52 = vmax.f32 %v3025_v50, 0.0  ;;  %v3026_v53 = vadd.f32 %v2994_v20, %v2831_v35  ;;  %v3149_v54 = vpack.c.bf16 %v3120_v49, %v3119_v41 }
 0x322   : > { %v3089_v56 = vadd.f32 %v3057_v52, %v2993_v44  ;;  %v3058_v57 = vmax.f32 %v3026_v53, 0.0  ;;  %3195 = vmatpush1.bf16.msra.mxu1 %v3149_v54 }
 0x324   : > { %v3121_v59 = vmax.f32 %v3089_v56, 0.0  ;;  %v3090_v61 = vadd.f32 %v3058_v57, %v2994_v20  ;;  %v3166_v62 = vpack.c.bf16 %v3058_v57, %v3057_v52 }
 0x326   : > { %v3122_v22 = vmax.f32 %v3090_v61, 0.0  ;;  %3196 = vmatprep.subr.bf16.mxu1 %v3166_v62 }
 0x328   : > { %v3150_v63 = vpack.c.bf16 %v3122_v22, %v3121_v59 }
 0x32a   : > { %3197 = vmatpush1.bf16.msra.mxu1 %v3150_v63 }
 0x32d   : > { %4052 = vmatmul.mubr.msk.bf16.vlgmr.msra.gmra.mrb[64].mxu1 %vm3186_vm0, %v5267_v42 }
 0x32e   : > { %3265 = vmatprep.mubr.bf16.mxu1 %v4670_v1 }
 0x33e   : > { %v2836_v46 = vpop.f32.mrb[144].mxu0 }
 0x33f   : > { %v2837_v10 = vadd.f32 %v2836_v46, %v5242_v21  ;;  %v2838_v2 = vpop.f32.mrb[145].mxu0 }
 0x340   : > { %v2839_v13 = vadd.f32 %v2838_v2, %v5246_v25  ;;  %v2840_v40 = vpop.f32.mrb[146].mxu0 }
 0x341   : > { %v2841_v45 = vadd.f32 %v2840_v40, %v5242_v21  ;;  %v2842_v3 = vpop.f32.mrb[147].mxu0 }
 0x342   : > { %v2963_v23 = vadd.f32 %v2839_v13, %v2837_v10  ;;  %v2843_v4 = vadd.f32 %v2842_v3, %v5246_v25 }
 0x344   : > { %v2995_v5 = vmax.f32 %v2963_v23, 0.0  ;;  %v2964_v27 = vadd.f32 %v2843_v4, %v2841_v45 }
 0x346   : > { %v3027_v11 = vadd.f32 %v2995_v5, %v2837_v10  ;;  %v2996_v6 = vmax.f32 %v2964_v27, 0.0  ;;  %v2846_v7 = vpop.f32.mrb[148].mxu0 }
 0x347   : > { %v2847_v9 = vadd.f32 %v2846_v7, %v5242_v21  ;;  %v2848_v29 = vpop.f32.mrb[149].mxu0 }
 0x348   : > { %v3059_v12 = vmax.f32 %v3027_v11, 0.0  ;;  %v3028_v14 = vadd.f32 %v2996_v6, %v2841_v45  ;;  %v2849_v0 = vadd.f32 %v2848_v29, %v5246_v25  ;;  %v2850_v17 = vpop.f32.mrb[150].mxu0 }
 0x349   : > { %v2851_v18 = vadd.f32 %v2850_v17, %v5242_v21  ;;  %v2852_v24 = vpop.f32.mrb[151].mxu0 }
 0x34a   : > { %v3091_v26 = vadd.f32 %v3059_v12, %v2995_v5  ;;  %v3060_v28 = vmax.f32 %v3028_v14, 0.0  ;;  %v2965_v30 = vadd.f32 %v2849_v0, %v2847_v9  ;;  %v2853_v31 = vadd.f32 %v2852_v24, %v5246_v25 }
 0x34c   : > { %v3092_v51 = vadd.f32 %v3060_v28, %v2996_v6  ;;  %v3167_v15 = vpack.c.bf16 %v3060_v28, %v3059_v12  ;;  %v2997_v32 = vmax.f32 %v2965_v30, 0.0  ;;  %v2966_v55 = vadd.f32 %v2853_v31, %v2851_v18 }
 0x34d   : > { %v3123_v33 = vmax.f32 %v3091_v26, 0.0 }
 0x34e   : > { %v3124_v34 = vmax.f32 %v3092_v51, 0.0  ;;  %3233 = vmatprep.subr.bf16.mxu1 %v3167_v15  ;;  %v3029_v35 = vadd.f32 %v2997_v32, %v2847_v9  ;;  %v2856_v58 = vpop.f32.mrb[152].mxu0  ;;  %v2998_v36 = vmax.f32 %v2966_v55, 0.0 }
 0x34f   : > { %v2857_v37 = vadd.f32 %v2856_v58, %v5242_v21  ;;  %v2858_v38 = vpop.f32.mrb[153].mxu0 }
 0x350   : > { %v3151_v60 = vpack.c.bf16 %v3124_v34, %v3123_v33  ;;  %v3061_v39 = vmax.f32 %v3029_v35, 0.0  ;;  %v2859_v41 = vadd.f32 %v2858_v38, %v5246_v25  ;;  %v2860_v43 = vpop.f32.mrb[154].mxu0  ;;  %v3030_v44 = vadd.f32 %v2998_v36, %v2851_v18 }
 0x351   : > { %v2861_v47 = vadd.f32 %v2860_v43, %v5242_v21  ;;  %v2862_v48 = vpop.f32.mrb[155].mxu0 }
 0x352   : > { %3234 = vmatpush1.bf16.msra.mxu1 %v3151_v60  ;;  %v3093_v49 = vadd.f32 %v3061_v39, %v2997_v32  ;;  %v2967_v50 = vadd.f32 %v2859_v41, %v2857_v37  ;;  %v2863_v20 = vadd.f32 %v2862_v48, %v5246_v25  ;;  %v3062_v52 = vmax.f32 %v3030_v44, 0.0 }
 0x354   : > { %v2999_v53 = vmax.f32 %v2967_v50, 0.0  ;;  %v2968_v54 = vadd.f32 %v2863_v20, %v2861_v47  ;;  %v3125_v56 = vmax.f32 %v3093_v49, 0.0  ;;  %v3094_v57 = vadd.f32 %v3062_v52, %v2998_v36 }
 0x355   : > { %v3168_v59 = vpack.c.bf16 %v3062_v52, %v3061_v39 }
 0x356   : > { %v3031_v61 = vadd.f32 %v2999_v53, %v2857_v37  ;;  %v3000_v62 = vmax.f32 %v2968_v54, 0.0  ;;  %v2866_v22 = vpop.f32.mrb[156].mxu0  ;;  %v3126_v63 = vmax.f32 %v3094_v57, 0.0 }
 0x357   : > { %v2867_v46 = vadd.f32 %v2866_v22, %v5242_v21  ;;  %3235 = vmatprep.subr.bf16.mxu1 %v3168_v59  ;;  %v2868_v10 = vpop.f32.mrb[157].mxu0 }
 0x358   : > { %v3063_v2 = vmax.f32 %v3031_v61, 0.0  ;;  %v3032_v13 = vadd.f32 %v3000_v62, %v2861_v47  ;;  %v2869_v40 = vadd.f32 %v2868_v10, %v5246_v25  ;;  %v2870_v45 = vpop.f32.mrb[158].mxu0  ;;  %v3152_v4 = vpack.c.bf16 %v3126_v63, %v3125_v56 }
 0x359   : > { %v2871_v3 = vadd.f32 %v2870_v45, %v5242_v21  ;;  %v2872_v23 = vpop.f32.mrb[159].mxu0 }
 0x35a   : > { %v3095_v5 = vadd.f32 %v3063_v2, %v2999_v53  ;;  %v3064_v27 = vmax.f32 %v3032_v13, 0.0  ;;  %v2969_v11 = vadd.f32 %v2869_v40, %v2867_v46  ;;  %v2873_v6 = vadd.f32 %v2872_v23, %v5246_v25  ;;  %3236 = vmatpush1.bf16.msra.mxu1 %v3152_v4 }
 0x35c   : > { %v3127_v7 = vmax.f32 %v3095_v5, 0.0  ;;  %v3096_v9 = vadd.f32 %v3064_v27, %v3000_v62  ;;  %v3001_v29 = vmax.f32 %v2969_v11, 0.0  ;;  %v2970_v12 = vadd.f32 %v2873_v6, %v2871_v3 }
 0x35d   : > { %v3169_v14 = vpack.c.bf16 %v3064_v27, %v3063_v2 }
 0x35e   : > { %v3128_v0 = vmax.f32 %v3096_v9, 0.0  ;;  %v3033_v17 = vadd.f32 %v3001_v29, %v2867_v46  ;;  %v3002_v18 = vmax.f32 %v2970_v12, 0.0 }
 0x35f   : > { %3237 = vmatprep.subr.bf16.mxu1 %v3169_v14 }
 0x360   : > { %v3065_v24 = vmax.f32 %v3033_v17, 0.0  ;;  %v3034_v26 = vadd.f32 %v3002_v18, %v2871_v3  ;;  %v3153_v28 = vpack.c.bf16 %v3128_v0, %v3127_v7 }
 0x362   : > { %v3097_v30 = vadd.f32 %v3065_v24, %v3001_v29  ;;  %v3066_v31 = vmax.f32 %v3034_v26, 0.0  ;;  %3238 = vmatpush1.bf16.msra.mxu1 %v3153_v28 }
 0x364   : > { %v3129_v51 = vmax.f32 %v3097_v30, 0.0  ;;  %v3098_v15 = vadd.f32 %v3066_v31, %v3002_v18  ;;  %v3170_v32 = vpack.c.bf16 %v3066_v31, %v3065_v24 }
 0x366   : > { %v3130_v55 = vmax.f32 %v3098_v15, 0.0  ;;  %3239 = vmatprep.subr.bf16.mxu1 %v3170_v32 }
 0x368   : > { %v3154_v33 = vpack.c.bf16 %v3130_v55, %v3129_v51 }
 0x36a   : > { %3240 = vmatpush1.bf16.msra.mxu1 %v3154_v33 }
 0x36d   : > { %4053 = vmatmul.mubr.msk.bf16.vlgmr.msra.gmra.mrb[68].mxu1 %vm3186_vm0, %v5267_v42 }
 0x36e   : > { %3308 = vmatprep.mubr.bf16.mxu1 %v4670_v1 }
 0x37e   : > { %v2876_v34 = vpop.f32.mrb[160].mxu0 }
 0x37f   : > { %v2877_v35 = vadd.f32 %v2876_v34, %v5242_v21  ;;  %v2878_v58 = vpop.f32.mrb[161].mxu0 }
 0x380   : > { %v2879_v36 = vadd.f32 %v2878_v58, %v5246_v25  ;;  %v2880_v37 = vpop.f32.mrb[162].mxu0 }
 0x381   : > { %v2881_v38 = vadd.f32 %v2880_v37, %v5242_v21  ;;  %v2882_v60 = vpop.f32.mrb[163].mxu0 }
 0x382   : > { %v2971_v39 = vadd.f32 %v2879_v36, %v2877_v35  ;;  %v2883_v41 = vadd.f32 %v2882_v60, %v5246_v25 }
 0x384   : > { %v3003_v43 = vmax.f32 %v2971_v39, 0.0  ;;  %v2972_v44 = vadd.f32 %v2883_v41, %v2881_v38 }
 0x386   : > { %v3035_v47 = vadd.f32 %v3003_v43, %v2877_v35  ;;  %v3004_v48 = vmax.f32 %v2972_v44, 0.0  ;;  %v2886_v49 = vpop.f32.mrb[164].mxu0 }
 0x387   : > { %v2887_v50 = vadd.f32 %v2886_v49, %v5242_v21  ;;  %v2888_v20 = vpop.f32.mrb[165].mxu0 }
 0x388   : > { %v3067_v52 = vmax.f32 %v3035_v47, 0.0  ;;  %v3036_v53 = vadd.f32 %v3004_v48, %v2881_v38  ;;  %v2889_v54 = vadd.f32 %v2888_v20, %v5246_v25  ;;  %v2890_v56 = vpop.f32.mrb[166].mxu0 }
 0x389   : > { %v2891_v57 = vadd.f32 %v2890_v56, %v5242_v21  ;;  %v2892_v59 = vpop.f32.mrb[167].mxu0 }
 0x38a   : > { %v3099_v61 = vadd.f32 %v3067_v52, %v3003_v43  ;;  %v3068_v62 = vmax.f32 %v3036_v53, 0.0  ;;  %v2973_v22 = vadd.f32 %v2889_v54, %v2887_v50  ;;  %v2893_v63 = vadd.f32 %v2892_v59, %v5246_v25 }
 0x38c   : > { %v3100_v46 = vadd.f32 %v3068_v62, %v3004_v48  ;;  %v3171_v10 = vpack.c.bf16 %v3068_v62, %v3067_v52  ;;  %v3005_v2 = vmax.f32 %v2973_v22, 0.0  ;;  %v2974_v13 = vadd.f32 %v2893_v63, %v2891_v57 }
 0x38d   : > { %v3131_v40 = vmax.f32 %v3099_v61, 0.0 }
 0x38e   : > { %v3132_v45 = vmax.f32 %v3100_v46, 0.0  ;;  %3276 = vmatprep.subr.bf16.mxu1 %v3171_v10  ;;  %v3037_v3 = vadd.f32 %v3005_v2, %v2887_v50  ;;  %v2896_v23 = vpop.f32.mrb[168].mxu0  ;;  %v3006_v4 = vmax.f32 %v2974_v13, 0.0 }
 0x38f   : > { %v2897_v5 = vadd.f32 %v2896_v23, %v5242_v21  ;;  %v2898_v27 = vpop.f32.mrb[169].mxu0 }
 0x390   : > { %v3155_v11 = vpack.c.bf16 %v3132_v45, %v3131_v40  ;;  %v3069_v6 = vmax.f32 %v3037_v3, 0.0  ;;  %v2899_v7 = vadd.f32 %v2898_v27, %v5246_v25  ;;  %v2900_v9 = vpop.f32.mrb[170].mxu0  ;;  %v3038_v29 = vadd.f32 %v3006_v4, %v2891_v57 }
 0x391   : > { %v2901_v12 = vadd.f32 %v2900_v9, %v5242_v21  ;;  %v2902_v14 = vpop.f32.mrb[171].mxu0 }
 0x392   : > { %3277 = vmatpush1.bf16.msra.mxu1 %v3155_v11  ;;  %v3101_v0 = vadd.f32 %v3069_v6, %v3005_v2  ;;  %v2975_v17 = vadd.f32 %v2899_v7, %v2897_v5  ;;  %v2903_v18 = vadd.f32 %v2902_v14, %v5246_v25  ;;  %v3070_v24 = vmax.f32 %v3038_v29, 0.0 }
 0x394   : > { %v3007_v26 = vmax.f32 %v2975_v17, 0.0  ;;  %v2976_v28 = vadd.f32 %v2903_v18, %v2901_v12  ;;  %v3133_v30 = vmax.f32 %v3101_v0, 0.0  ;;  %v3102_v31 = vadd.f32 %v3070_v24, %v3006_v4 }
 0x395   : > { %v3172_v51 = vpack.c.bf16 %v3070_v24, %v3069_v6 }
 0x396   : > { %v3039_v15 = vadd.f32 %v3007_v26, %v2897_v5  ;;  %v3008_v32 = vmax.f32 %v2976_v28, 0.0  ;;  %v2906_v55 = vpop.f32.mrb[172].mxu0  ;;  %v3134_v33 = vmax.f32 %v3102_v31, 0.0 }
 0x397   : > { %v2907_v34 = vadd.f32 %v2906_v55, %v5242_v21  ;;  %3278 = vmatprep.subr.bf16.mxu1 %v3172_v51  ;;  %v2908_v35 = vpop.f32.mrb[173].mxu0 }
 0x398   : > { %v3071_v58 = vmax.f32 %v3039_v15, 0.0  ;;  %v3040_v36 = vadd.f32 %v3008_v32, %v2901_v12  ;;  %v2909_v37 = vadd.f32 %v2908_v35, %v5246_v25  ;;  %v2910_v38 = vpop.f32.mrb[174].mxu0  ;;  %v3156_v41 = vpack.c.bf16 %v3134_v33, %v3133_v30 }
 0x399   : > { %v2911_v60 = vadd.f32 %v2910_v38, %v5242_v21  ;;  %v2912_v39 = vpop.f32.mrb[175].mxu0 }
 0x39a   : > { %v3103_v43 = vadd.f32 %v3071_v58, %v3007_v26  ;;  %v3072_v44 = vmax.f32 %v3040_v36, 0.0  ;;  %v2977_v47 = vadd.f32 %v2909_v37, %v2907_v34  ;;  %v2913_v48 = vadd.f32 %v2912_v39, %v5246_v25  ;;  %3279 = vmatpush1.bf16.msra.mxu1 %v3156_v41 }
 0x39c   : > { %v3135_v49 = vmax.f32 %v3103_v43, 0.0  ;;  %v3104_v50 = vadd.f32 %v3072_v44, %v3008_v32  ;;  %v3009_v20 = vmax.f32 %v2977_v47, 0.0  ;;  %v2978_v52 = vadd.f32 %v2913_v48, %v2911_v60 }
 0x39d   : > { %v3173_v53 = vpack.c.bf16 %v3072_v44, %v3071_v58 }
 0x39e   : > { %v3136_v54 = vmax.f32 %v3104_v50, 0.0  ;;  %v3041_v56 = vadd.f32 %v3009_v20, %v2907_v34  ;;  %v3010_v57 = vmax.f32 %v2978_v52, 0.0 }
 0x39f   : > { %3280 = vmatprep.subr.bf16.mxu1 %v3173_v53 }
 0x3a0   : > { %v3073_v59 = vmax.f32 %v3041_v56, 0.0  ;;  %v3042_v61 = vadd.f32 %v3010_v57, %v2911_v60  ;;  %v3157_v62 = vpack.c.bf16 %v3136_v54, %v3135_v49 }
 0x3a2   : > { %v3105_v22 = vadd.f32 %v3073_v59, %v3009_v20  ;;  %v3074_v63 = vmax.f32 %v3042_v61, 0.0  ;;  %3281 = vmatpush1.bf16.msra.mxu1 %v3157_v62 }
 0x3a4   : > { %v3137_v46 = vmax.f32 %v3105_v22, 0.0  ;;  %v3106_v10 = vadd.f32 %v3074_v63, %v3010_v57  ;;  %v3174_v2 = vpack.c.bf16 %v3074_v63, %v3073_v59 }
 0x3a6   : > { %v3138_v13 = vmax.f32 %v3106_v10, 0.0  ;;  %3282 = vmatprep.subr.bf16.mxu1 %v3174_v2 }
 0x3a8   : > { %v3158_v40 = vpack.c.bf16 %v3138_v13, %v3137_v46 }
 0x3aa   : > { %3283 = vmatpush1.bf16.msra.mxu1 %v3158_v40 }
 0x3ad   : > { %4054 = vmatmul.mubr.msk.bf16.vlgmr.msra.gmra.mrb[72].mxu1 %vm3186_vm0, %v5267_v42 }
 0x3ae   : > { %3351 = vmatprep.mubr.bf16.mxu1 %v4670_v1 }
 0x3be   : > { %v2916_v45 = vpop.f32.mrb[176].mxu0 }
 0x3bf   : > { %v2917_v3 = vadd.f32 %v2916_v45, %v5242_v21  ;;  %v2918_v23 = vpop.f32.mrb[177].mxu0 }
 0x3c0   : > { %v2919_v4 = vadd.f32 %v2918_v23, %v5246_v25  ;;  %v2920_v5 = vpop.f32.mrb[178].mxu0 }
 0x3c1   : > { %v2921_v27 = vadd.f32 %v2920_v5, %v5242_v21  ;;  %v2922_v11 = vpop.f32.mrb[179].mxu0 }
 0x3c2   : > { %v2979_v6 = vadd.f32 %v2919_v4, %v2917_v3  ;;  %v2923_v7 = vadd.f32 %v2922_v11, %v5246_v25 }
 0x3c4   : > { %v3011_v9 = vmax.f32 %v2979_v6, 0.0  ;;  %v2980_v29 = vadd.f32 %v2923_v7, %v2921_v27 }
 0x3c6   : > { %v3043_v12 = vadd.f32 %v3011_v9, %v2917_v3  ;;  %v3012_v14 = vmax.f32 %v2980_v29, 0.0  ;;  %v2926_v0 = vpop.f32.mrb[180].mxu0 }
 0x3c7   : > { %v2927_v1 = vadd.f32 %v2926_v0, %v5242_v21  ;;  %v2928_v17 = vpop.f32.mrb[181].mxu0 }
 0x3c8   : > { %v3075_v18 = vmax.f32 %v3043_v12, 0.0  ;;  %v3044_v24 = vadd.f32 %v3012_v14, %v2921_v27  ;;  %v2929_v26 = vadd.f32 %v2928_v17, %v5246_v25  ;;  %v2930_v28 = vpop.f32.mrb[182].mxu0 }
 0x3c9   : > { %v2931_v30 = vadd.f32 %v2930_v28, %v5242_v21  ;;  %v2932_v31 = vpop.f32.mrb[183].mxu0 }
 0x3ca   : > { %v3107_v51 = vadd.f32 %v3075_v18, %v3011_v9  ;;  %v3076_v15 = vmax.f32 %v3044_v24, 0.0  ;;  %v2981_v32 = vadd.f32 %v2929_v26, %v2927_v1  ;;  %v2933_v55 = vadd.f32 %v2932_v31, %v5246_v25 }
 0x3cc   : > { %v3108_v33 = vadd.f32 %v3076_v15, %v3012_v14  ;;  %v3013_v34 = vmax.f32 %v2981_v32, 0.0  ;;  %v2982_v35 = vadd.f32 %v2933_v55, %v2931_v30  ;;  %v3175_v58 = vpack.c.bf16 %v3076_v15, %v3075_v18 }
 0x3cd   : > { %v3139_v36 = vmax.f32 %v3107_v51, 0.0 }
 0x3ce   : > { %v3140_v37 = vmax.f32 %v3108_v33, 0.0  ;;  %v3045_v38 = vadd.f32 %v3013_v34, %v2927_v1  ;;  %v3014_v60 = vmax.f32 %v2982_v35, 0.0  ;;  %v2936_v39 = vpop.f32.mrb[184].mxu0  ;;  %3319 = vmatprep.subr.bf16.mxu1 %v3175_v58  ;;  %v4540_v58 = vld [vmem:[%s5548_s5] ss:$8 sps:$4 sm:$0xff]  }
 0x3cf   : > { %v2937_v41 = vadd.f32 %v2936_v39, %v5242_v21  ;;  %v2938_v43 = vpop.f32.mrb[185].mxu0  ;;  %v4549_v39 = vld [vmem:[%s5548_s5 + $0x30] ss:$8 sps:$4 sm:$0xff]  }
 0x3d0   : > { %v3077_v44 = vmax.f32 %v3045_v38, 0.0  ;;  %v3046_v47 = vadd.f32 %v3014_v60, %v2931_v30  ;;  %v2939_v48 = vadd.f32 %v2938_v43, %v5246_v25  ;;  %v2940_v49 = vpop.f32.mrb[186].mxu0  ;;  %v3159_v50 = vpack.c.bf16 %v3140_v37, %v3139_v36  ;;  %v4545_v36 = vld [vmem:[%s5548_s5 + $0x14] ss:$8 sps:$4 sm:$0xff]   ;;  %v4543_v37 = vld [vmem:[%s5548_s5 + $0x10] ss:$8 sps:$4 sm:$0xff]  }
 0x3d1   : > { %v2941_v20 = vadd.f32 %v2940_v49, %v5242_v21  ;;  %v2942_v52 = vpop.f32.mrb[187].mxu0  ;;  %v4548_v38 = vld [vmem:[%s5548_s5 + $0x24] ss:$8 sps:$4 sm:$0xff]   ;;  %v4552_v43 = vld [vmem:[%s5548_s5 + $0x40] ss:$8 sps:$4 sm:$0xff]  }
 0x3d2   : > { %v3109_v53 = vadd.f32 %v3077_v44, %v3013_v34  ;;  %v3078_v54 = vmax.f32 %v3046_v47, 0.0  ;;  %v2983_v56 = vadd.f32 %v2939_v48, %v2937_v41  ;;  %v2943_v57 = vadd.f32 %v2942_v52, %v5246_v25  ;;  %3320 = vmatpush1.bf16.msra.mxu1 %v3159_v50  ;;  %v4542_v34 = vld [vmem:[%s5548_s5 + $0x4] ss:$8 sps:$4 sm:$0xff]   ;;  %v4555_v47 = vld [vmem:[%s5548_s5 + $0x50] ss:$8 sps:$4 sm:$0xff]  }
 0x3d3   : > { %v4560_v48 = vld [vmem:[%s5548_s5 + $0x64] ss:$8 sps:$4 sm:$0xff]  }
 0x3d4   : > { %v3110_v59 = vadd.f32 %v3078_v54, %v3014_v60  ;;  %v3015_v61 = vmax.f32 %v2983_v56, 0.0  ;;  %v2984_v62 = vadd.f32 %v2943_v57, %v2941_v20  ;;  %v3176_v22 = vpack.c.bf16 %v3078_v54, %v3077_v44  ;;  %v4546_v60 = vld [vmem:[%s5548_s5 + $0x20] ss:$8 sps:$4 sm:$0xff]   ;;  %v4557_v44 = vld [vmem:[%s5548_s5 + $0x54] ss:$8 sps:$4 sm:$0xff]  }
 0x3d5   : > { %v3141_v63 = vmax.f32 %v3109_v53, 0.0  ;;  %v4563_v53 = vld [vmem:[%s5548_s5 + $0x74] ss:$8 sps:$4 sm:$0xff]  }
 0x3d6   : > { %v3142_v46 = vmax.f32 %v3110_v59, 0.0  ;;  %v3047_v10 = vadd.f32 %v3015_v61, %v2937_v41  ;;  %v3016_v2 = vmax.f32 %v2984_v62, 0.0  ;;  %v2946_v13 = vpop.f32.mrb[188].mxu0  ;;  %3321 = vmatprep.subr.bf16.mxu1 %v3176_v22  ;;  %v4554_v41 = vld [vmem:[%s5548_s5 + $0x44] ss:$8 sps:$4 sm:$0xff]  }
 0x3d7   : > { %v2947_v40 = vadd.f32 %v2946_v13, %v5242_v21  ;;  %v2948_v45 = vpop.f32.mrb[189].mxu0  ;;  %v4561_v59 = vld [vmem:[%s5548_s5 + $0x70] ss:$8 sps:$4 sm:$0xff]   ;;  %v4564_v62 = vld [vmem:[%s5548_s5 + $0x80] ss:$8 sps:$4 sm:$0xff]  }
 0x3d8   : > { %v3079_v3 = vmax.f32 %v3047_v10, 0.0  ;;  %v3048_v23 = vadd.f32 %v3016_v2, %v2941_v20  ;;  %v2949_v4 = vadd.f32 %v2948_v45, %v5246_v25  ;;  %v2950_v5 = vpop.f32.mrb[190].mxu0  ;;  %v3160_v27 = vpack.c.bf16 %v3142_v46, %v3141_v63  ;;  %v4558_v20 = vld [vmem:[%s5548_s5 + $0x60] ss:$8 sps:$4 sm:$0xff]   ;;  %v4569_v22 = vld [vmem:[%s5548_s5 + $0x94] ss:$8 sps:$4 sm:$0xff]  }
 0x3d9   : > { %v2951_v11 = vadd.f32 %v2950_v5, %v5242_v21  ;;  %v2952_v6 = vpop.f32.mrb[191].mxu0  ;;  %v4567_v63 = vld [vmem:[%s5548_s5 + $0x90] ss:$8 sps:$4 sm:$0xff]   ;;  %v4572_v46 = vld [vmem:[%s5548_s5 + $0xa4] ss:$8 sps:$4 sm:$0xff]  }
 0x3da   : > { %v3111_v7 = vadd.f32 %v3079_v3, %v3015_v61  ;;  %v3080_v9 = vmax.f32 %v3048_v23, 0.0  ;;  %v2985_v29 = vadd.f32 %v2949_v4, %v2947_v40  ;;  %v2953_v12 = vadd.f32 %v2952_v6, %v5246_v25  ;;  %3322 = vmatpush1.bf16.msra.mxu1 %v3160_v27  ;;  %v4566_v61 = vld [vmem:[%s5548_s5 + $0x84] ss:$8 sps:$4 sm:$0xff]   ;;  %v4570_v10 = vld [vmem:[%s5548_s5 + $0xa0] ss:$8 sps:$4 sm:$0xff]  }
 0x3db   : > { %v4573_v13 = vld [vmem:[%s5548_s5 + $0xb0] ss:$8 sps:$4 sm:$0xff]   ;;  %v4576_v45 = vld [vmem:[%s5548_s5 + $0xc0] ss:$8 sps:$4 sm:$0xff]   ;;  %v4584_v4 = vld [vmem:[%s5548_s5 + $0xe4] ss:$8 sps:$4 sm:$0xff]  }
 0x3dc   : > { %v3112_v14 = vadd.f32 %v3080_v9, %v3016_v2  ;;  %v3017_v0 = vmax.f32 %v2985_v29, 0.0  ;;  %v2986_v1 = vadd.f32 %v2953_v12, %v2951_v11  ;;  %v3177_v17 = vpack.c.bf16 %v3080_v9, %v3079_v3  ;;  %v4575_v2 = vld [vmem:[%s5548_s5 + $0xb4] ss:$8 sps:$4 sm:$0xff]   ;;  %v4579_v23 = vld [vmem:[%s5548_s5 + $0xd0] ss:$8 sps:$4 sm:$0xff]  }
 0x3dd   : > { %v3143_v18 = vmax.f32 %v3111_v7, 0.0  ;;  %v4581_v3 = vld [vmem:[%s5548_s5 + $0xd4] ss:$8 sps:$4 sm:$0xff]   ;;  %v4582_v5 = vld [vmem:[%s5548_s5 + $0xe0] ss:$8 sps:$4 sm:$0xff]  }
 0x3de   : > { %v3144_v24 = vmax.f32 %v3112_v14, 0.0  ;;  %v3049_v26 = vadd.f32 %v3017_v0, %v2947_v40  ;;  %v3018_v28 = vmax.f32 %v2986_v1, 0.0  ;;  %3323 = vmatprep.subr.bf16.mxu1 %v3177_v17  ;;  %v4578_v40 = vld [vmem:[%s5548_s5 + $0xc4] ss:$8 sps:$4 sm:$0xff]   ;;  %v4587_v27 = vld [vmem:[%s5548_s5 + $0xf4] ss:$8 sps:$4 sm:$0xff]  }
 0x3e0   : > { %v3081_v30 = vmax.f32 %v3049_v26, 0.0  ;;  %v3050_v31 = vadd.f32 %v3018_v28, %v2951_v11  ;;  %v3161_v51 = vpack.c.bf16 %v3144_v24, %v3143_v18  ;;  %v4585_v11 = vld [vmem:[%s5548_s5 + $0xf0] ss:$8 sps:$4 sm:$0xff]  }
 0x3e2   : > { %v3113_v21 = vadd.f32 %v3081_v30, %v3017_v0  ;;  %v3082_v15 = vmax.f32 %v3050_v31, 0.0  ;;  %3324 = vmatpush1.bf16.msra.mxu1 %v3161_v51 }
 0x3e4   : > { %v3114_v32 = vadd.f32 %v3082_v15, %v3018_v28  ;;  %v3178_v55 = vpack.c.bf16 %v3082_v15, %v3081_v30  ;;  %v3145_v33 = vmax.f32 %v3113_v21, 0.0  ;;  %v4671_v28 = vmov 0.0  }
 0x3e5   : > { %4333 = vmatprep.subr.bf16.mxu0 %v4671_v28  ;;  %4341 = vmatprep.mubr.msk.bf16.mxu0 %vm4672_vm1, %v4671_v28 }
 0x3e6   : > { %v3146_v25 = vmax.f32 %v3114_v32, 0.0  ;;  %3325 = vmatprep.subr.bf16.mxu1 %v3178_v55  ;;  %v3402_v55 = vld [vmem:[%s5549_s6] sm:$0x3] }
 0x3e8   : > { %v3162_v35 = vpack.c.bf16 %v3146_v25, %v3145_v33  ;;  %v5431_v33 = vrot.slane %v3402_v55, %v2594_v16  ;;  %v5435_v25 = vrot.slane %v3402_v55, %v2598_v19 }
 0x3ea   : > { %3326 = vmatpush1.bf16.msra.mxu1 %v3162_v35 }
 0x3eb   : > { %3574 = vmatprep.subr.bf16.mxu1 %v4542_v34 }
 0x3ed   : > { %4055 = vmatmul.mubr.msk.bf16.vlgmr.msra.gmra.mrb[76].mxu1 %vm3186_vm0, %v5267_v42  ;;  %v4551_v42 = vld [vmem:[%s5548_s5 + $0x34] ss:$8 sps:$4 sm:$0xff]  }
 0x3ee   : > { %3575 = vmatpush1.bf16.msra.mxu1 %v4540_v58 }
 0x3ef   : > { %3576 = vmatprep.subr.bf16.mxu1 %v4545_v36 }
 0x3f2   : > { %3577 = vmatpush1.bf16.msra.mxu1 %v4543_v37 }
 0x3f3   : > { %3578 = vmatprep.subr.bf16.mxu1 %v4548_v38 }
 0x3f6   : > { %3579 = vmatpush1.bf16.msra.mxu1 %v4546_v60 }
 0x3f7   : > { %3580 = vmatprep.subr.bf16.mxu1 %v4551_v42 }
 0x3fa   : > { %3581 = vmatpush1.bf16.msra.mxu1 %v4549_v39 }
 0x3fb   : > { %3582 = vmatprep.subr.bf16.mxu1 %v4554_v41 }
 0x3fe   : > { %3583 = vmatpush1.bf16.msra.mxu1 %v4552_v43 }
 0x3ff   : > { %3584 = vmatprep.subr.bf16.mxu1 %v4557_v44 }
 0x400   : > { %v3224_v49 = vpop.f32.mrb[64].mxu1 }
 0x401   : > { %v3226_v50 = vpop.f32.mrb[65].mxu1 }
 0x402   : > { %3585 = vmatpush1.bf16.msra.mxu1 %v4555_v47  ;;  %v3228_v52 = vpop.f32.mrb[66].mxu1 }
 0x403   : > { %3586 = vmatprep.subr.bf16.mxu1 %v4560_v48  ;;  %v3362_v54 = vpack.c.bf16 %v3228_v52, %v3224_v49  ;;  %v3230_v56 = vpop.f32.mrb[67].mxu1 }
 0x404   : > { %v3363_v57 = vpack.c.bf16 %v3230_v56, %v3226_v50 }
 0x406   : > { %3587 = vmatpush1.bf16.msra.mxu1 %v4558_v20  ;;  %3606 = vmatprep.mubr.bf16.mxu1 %v3363_v57 }
 0x407   : > { %3588 = vmatprep.subr.bf16.mxu1 %v4563_v53 }
 0x40a   : > { %3589 = vmatpush1.bf16.msra.mxu1 %v4561_v59 }
 0x40b   : > { %3590 = vmatprep.subr.bf16.mxu1 %v4566_v61 }
 0x40e   : > { %3591 = vmatpush1.bf16.msra.mxu1 %v4564_v62 }
 0x40f   : > { %3592 = vmatprep.subr.bf16.mxu1 %v4569_v22 }
 0x412   : > { %3593 = vmatpush1.bf16.msra.mxu1 %v4567_v63 }
 0x413   : > { %3594 = vmatprep.subr.bf16.mxu1 %v4572_v46 }
 0x416   : > { %3595 = vmatpush1.bf16.msra.mxu1 %v4570_v10 }
 0x417   : > { %3596 = vmatprep.subr.bf16.mxu1 %v4575_v2 }
 0x41a   : > { %3597 = vmatpush1.bf16.msra.mxu1 %v4573_v13 }
 0x41b   : > { %3598 = vmatprep.subr.bf16.mxu1 %v4578_v40 }
 0x41e   : > { %3599 = vmatpush1.bf16.msra.mxu1 %v4576_v45 }
 0x41f   : > { %3600 = vmatprep.subr.bf16.mxu1 %v4581_v3 }
 0x422   : > { %3601 = vmatpush1.bf16.msra.mxu1 %v4579_v23 }
 0x423   : > { %3602 = vmatprep.subr.bf16.mxu1 %v4584_v4 }
 0x426   : > { %3603 = vmatpush1.bf16.msra.mxu1 %v4582_v5 }
 0x427   : > { %3604 = vmatprep.subr.bf16.mxu1 %v4587_v27 }
 0x42a   : > { %3605 = vmatpush1.bf16.msra.mxu1 %v4585_v11 }
 0x42b   : > { %4345 = vmatprep.subr.bf16.mxu1 %v4671_v28 }
 0x42d   : > { %3607 = vmatmul.mubr.bf16.vlgmr.msra.gmra.mrb[80].mxu1 %v3362_v54 }
 0x440   : > { %v3267_v6 = vpop.f32.mrb[68].mxu1 }
 0x441   : > { %v3269_v7 = vpop.f32.mrb[69].mxu1 }
 0x442   : > { %v3271_v9 = vpop.f32.mrb[70].mxu1 }
 0x443   : > { %v3364_v29 = vpack.c.bf16 %v3271_v9, %v3267_v6  ;;  %v3273_v12 = vpop.f32.mrb[71].mxu1  ;;  %v4588_v6 = vld [vmem:[%s5553_s10] sm:$0xff]   ;;  %v4590_v9 = vld [vmem:[%s5553_s10 + $0x10] sm:$0xff]  }
 0x444   : > { %v3365_v14 = vpack.c.bf16 %v3273_v12, %v3269_v7  ;;  %4346 = vmatpush3.bf16.msra.mxu1 %v4588_v6  ;;  %v4589_v7 = vld [vmem:[%s5553_s10 + $0x8] sm:$0xff]   ;;  %v4592_v12 = vld [vmem:[%s5553_s10 + $0x20] sm:$0xff]  }
 0x445   : > { %4347 = vmatprep.subr.bf16.mxu1 %v4671_v28 }
 0x446   : > { %3616 = vmatprep.mubr.bf16.mxu1 %v3365_v14  ;;  %v4593_v14 = vld [vmem:[%s5553_s10 + $0x28] sm:$0xff]  }
 0x447   : > { %3617 = vmatmul.mubr.bf16.gmra.mrb[84].mxu1 %v3364_v29  ;;  %v4591_v29 = vld [vmem:[%s5553_s10 + $0x18] sm:$0xff]  }
 0x448   : > { %4348 = vmatpush3.bf16.msra.mxu1 %v4589_v7 }
 0x449   : > { %4349 = vmatprep.subr.bf16.mxu1 %v4671_v28 }
 0x44c   : > { %4350 = vmatpush3.bf16.msra.mxu1 %v4590_v9 }
 0x44d   : > { %4351 = vmatprep.subr.bf16.mxu1 %v4671_v28 }
 0x450   : > { %4352 = vmatpush3.bf16.msra.mxu1 %v4591_v29 }
 0x451   : > { %4353 = vmatprep.subr.bf16.mxu1 %v4671_v28 }
 0x454   : > { %4354 = vmatpush3.bf16.msra.mxu1 %v4592_v12 }
 0x455   : > { %4355 = vmatprep.subr.bf16.mxu1 %v4671_v28 }
 0x458   : > { %4356 = vmatpush3.bf16.msra.mxu1 %v4593_v14 }
 0x459   : > { %4357 = vmatprep.subr.bf16.mxu1 %v4671_v28 }
 0x480   : > { %v3310_v0 = vpop.f32.mrb[72].mxu1 }
 0x481   : > { %v3312_v1 = vpop.f32.mrb[73].mxu1 }
 0x482   : > { %v3314_v17 = vpop.f32.mrb[74].mxu1 }
 0x483   : > { %v3366_v18 = vpack.c.bf16 %v3314_v17, %v3310_v0  ;;  %v3316_v24 = vpop.f32.mrb[75].mxu1  ;;  %v4594_v0 = vld [vmem:[%s5553_s10 + $0x30] sm:$0xff]  }
 0x484   : > { %v3367_v26 = vpack.c.bf16 %v3316_v24, %v3312_v1  ;;  %4358 = vmatpush3.bf16.msra.mxu1 %v4594_v0 }
 0x485   : > { %4359 = vmatprep.subr.bf16.mxu1 %v4671_v28 }
 0x486   : > { %3626 = vmatprep.mubr.bf16.mxu1 %v3367_v26 }
 0x487   : > { %3627 = vmatmul.mubr.bf16.gmra.mrb[88].mxu1 %v3366_v18 }
 0x4c0   : > { %v3353_v30 = vpop.f32.mrb[76].mxu1 }
 0x4c1   : > { %v3355_v31 = vpop.f32.mrb[77].mxu1 }
 0x4c2   : > { %v3357_v51 = vpop.f32.mrb[78].mxu1 }
 0x4c3   : > { %v3368_v21 = vpack.c.bf16 %v3357_v51, %v3353_v30  ;;  %v3359_v15 = vpop.f32.mrb[79].mxu1 }
 0x4c4   : > { %v3369_v32 = vpack.c.bf16 %v3359_v15, %v3355_v31 }
 0x4c6   : > { %3636 = vmatprep.mubr.bf16.mxu1 %v3369_v32 }
 0x4c7   : > { %3637 = vmatmul.mubr.bf16.gmra.mrb[92].mxu1 %v3368_v21 }
 0x4c8   : > { %4361 = vmatprep.mubr.msk.bf16.mxu1 %vm4672_vm1, %v4671_v28 }
 0x500   : > { %v3608_v34 = vpop.f32.mrb[80].mxu1 }
 0x501   : > { %v3609_v35 = vadd.f32 %v3608_v34, %v5431_v33  ;;  %v3610_v58 = vpop.f32.mrb[81].mxu1 }
 0x502   : > { %v3611_v36 = vadd.f32 %v3610_v58, %v5435_v25  ;;  %v3612_v37 = vpop.f32.mrb[82].mxu1 }
 0x503   : > { %v3613_v38 = vadd.f32 %v3612_v37, %v5431_v33  ;;  %v3614_v60 = vpop.f32.mrb[83].mxu1 }
 0x504   : > { %v3647_v42 = vadd.f32 %v3611_v36, %v3609_v35  ;;  %v3615_v39 = vadd.f32 %v3614_v60, %v5435_v25 }
 0x506   : > { %v3655_v41 = vmax.f32 %v3647_v42, 0.0  ;;  %v3648_v16 = vadd.f32 %v3615_v39, %v3613_v38 }
 0x508   : > { %v3663_v43 = vadd.f32 %v3655_v41, %v3609_v35  ;;  %v3656_v44 = vmax.f32 %v3648_v16, 0.0 }
 0x50a   : > { %v3671_v8 = vmax.f32 %v3663_v43, 0.0  ;;  %v3664_v19 = vadd.f32 %v3656_v44, %v3613_v38 }
 0x50c   : > { %v3679_v47 = vadd.f32 %v3671_v8, %v3655_v41  ;;  %v3672_v48 = vmax.f32 %v3664_v19, 0.0 }
 0x50e   : > { %v3687_v49 = vmax.f32 %v3679_v47, 0.0  ;;  %v3680_v50 = vadd.f32 %v3672_v48, %v3656_v44 }
 0x510   : > { %v3688_v20 = vmax.f32 %v3680_v50, 0.0 }
 0x512   : > { %v3696_v52 = vpack.c.bf16 %v3688_v20, %v3687_v49 }
 0x514   : > { %4334 = vmatpush3.bf16.msra.mxu0 %v3696_v52 }
 0x515   : > { %4335 = vmatprep.subr.bf16.mxu0 %v4671_v28 }
 0x51a   : > { %v3618_v53 = vpop.f32.mrb[84].mxu1 }
 0x51b   : > { %v3619_v54 = vadd.f32 %v3618_v53, %v5431_v33  ;;  %v3620_v56 = vpop.f32.mrb[85].mxu1 }
 0x51c   : > { %v3621_v57 = vadd.f32 %v3620_v56, %v5435_v25  ;;  %v3622_v59 = vpop.f32.mrb[86].mxu1 }
 0x51d   : > { %v3623_v61 = vadd.f32 %v3622_v59, %v5431_v33  ;;  %v3624_v62 = vpop.f32.mrb[87].mxu1 }
 0x51e   : > { %v3649_v22 = vadd.f32 %v3621_v57, %v3619_v54  ;;  %v3625_v63 = vadd.f32 %v3624_v62, %v5435_v25 }
 0x520   : > { %v3657_v46 = vmax.f32 %v3649_v22, 0.0  ;;  %v3650_v10 = vadd.f32 %v3625_v63, %v3623_v61 }
 0x522   : > { %v3665_v2 = vadd.f32 %v3657_v46, %v3619_v54  ;;  %v3658_v13 = vmax.f32 %v3650_v10, 0.0 }
 0x524   : > { %v3673_v40 = vmax.f32 %v3665_v2, 0.0  ;;  %v3666_v45 = vadd.f32 %v3658_v13, %v3623_v61 }
 0x526   : > { %v3681_v3 = vadd.f32 %v3673_v40, %v3657_v46  ;;  %v3674_v23 = vmax.f32 %v3666_v45, 0.0  ;;  %v4089_v45 = vld [vmem:[%s5554_s11] ss:$0 sm:$0xff] }
 0x528   : > { %v3689_v4 = vmax.f32 %v3681_v3, 0.0  ;;  %v3682_v5 = vadd.f32 %v3674_v23, %v3658_v13 }
 0x52a   : > { %v3690_v27 = vmax.f32 %v3682_v5, 0.0 }
 0x52c   : > { %v3697_v11 = vpack.c.bf16 %v3690_v27, %v3689_v4 }
 0x52e   : > { %4336 = vmatpush3.bf16.msra.mxu0 %v3697_v11 }
 0x52f   : > { %4337 = vmatprep.subr.bf16.mxu0 %v4671_v28 }
 0x55a   : > { %v3628_v1 = vpop.f32.mrb[88].mxu1 }
 0x55b   : > { %v3629_v17 = vadd.f32 %v3628_v1, %v5431_v33  ;;  %v3630_v18 = vpop.f32.mrb[89].mxu1 }
 0x55c   : > { %v3631_v24 = vadd.f32 %v3630_v18, %v5435_v25  ;;  %v3632_v26 = vpop.f32.mrb[90].mxu1 }
 0x55d   : > { %v3633_v30 = vadd.f32 %v3632_v26, %v5431_v33  ;;  %v3634_v31 = vpop.f32.mrb[91].mxu1 }
 0x55e   : > { %v3651_v51 = vadd.f32 %v3631_v24, %v3629_v17  ;;  %v3635_v21 = vadd.f32 %v3634_v31, %v5435_v25 }
 0x560   : > { %v3659_v15 = vmax.f32 %v3651_v51, 0.0  ;;  %v3652_v32 = vadd.f32 %v3635_v21, %v3633_v30 }
 0x562   : > { %v3667_v55 = vadd.f32 %v3659_v15, %v3629_v17  ;;  %v3660_v34 = vmax.f32 %v3652_v32, 0.0 }
 0x564   : > { %v3675_v35 = vmax.f32 %v3667_v55, 0.0  ;;  %v3668_v58 = vadd.f32 %v3660_v34, %v3633_v30 }
 0x566   : > { %v3683_v36 = vadd.f32 %v3675_v35, %v3659_v15  ;;  %v3676_v37 = vmax.f32 %v3668_v58, 0.0 }
 0x568   : > { %v3691_v38 = vmax.f32 %v3683_v36, 0.0  ;;  %v3684_v60 = vadd.f32 %v3676_v37, %v3660_v34 }
 0x56a   : > { %v3692_v42 = vmax.f32 %v3684_v60, 0.0 }
 0x56c   : > { %v3698_v39 = vpack.c.bf16 %v3692_v42, %v3691_v38 }
 0x56e   : > { %4338 = vmatpush3.bf16.msra.mxu0 %v3698_v39 }
 0x56f   : > { %4339 = vmatprep.subr.bf16.mxu0 %v4671_v28 }
 0x59a   : > { %v3638_v41 = vpop.f32.mrb[92].mxu1 }
 0x59b   : > { %v3639_v16 = vadd.f32 %v3638_v41, %v5431_v33  ;;  %v3640_v43 = vpop.f32.mrb[93].mxu1 }
 0x59c   : > { %v3641_v44 = vadd.f32 %v3640_v43, %v5435_v25  ;;  %v3642_v8 = vpop.f32.mrb[94].mxu1 }
 0x59d   : > { %v3643_v19 = vadd.f32 %v3642_v8, %v5431_v33  ;;  %v3644_v47 = vpop.f32.mrb[95].mxu1  ;;  %v3695_v33 = vld [vmem:[%s5552_s9] sm:$0x3] }
 0x59e   : > { %v3653_v48 = vadd.f32 %v3641_v44, %v3639_v16  ;;  %v3645_v49 = vadd.f32 %v3644_v47, %v5435_v25  ;;  %v4595_v25 = vld [vmem:[%s5553_s10 + $0x38] sm:$0xff]  }
 0x59f   : > { %4360 = vmatpush3.bf16.msra.mxu1 %v4595_v25 }
 0x5a0   : > { %v3661_v50 = vmax.f32 %v3653_v48, 0.0  ;;  %v3654_v20 = vadd.f32 %v3645_v49, %v3643_v19 }
 0x5a2   : > { %v3669_v52 = vadd.f32 %v3661_v50, %v3639_v16  ;;  %v3662_v53 = vmax.f32 %v3654_v20, 0.0 }
 0x5a4   : > { %v3677_v54 = vmax.f32 %v3669_v52, 0.0  ;;  %v3670_v56 = vadd.f32 %v3662_v53, %v3643_v19 }
 0x5a6   : > { %v3685_v28 = vadd.f32 %v3677_v54, %v3661_v50  ;;  %v3678_v57 = vmax.f32 %v3670_v56, 0.0 }
 0x5a8   : > { %v3686_v59 = vadd.f32 %v3678_v57, %v3662_v53  ;;  %v3693_v61 = vmax.f32 %v3685_v28, 0.0 }
 0x5aa   : > { %v3694_v62 = vmax.f32 %v3686_v59, 0.0 }
 0x5ac   : > { %v3699_v22 = vpack.c.bf16 %v3694_v62, %v3693_v61 }
 0x5ae   : > { %4340 = vmatpush3.bf16.msra.mxu0 %v3699_v22 }
 0x5b1   : > { %4342 = vmatmul.mubr.msk.bf16.vlgmr.msra.gmra.mrb[192].mxu0 %vm3186_vm0, %v3695_v33 }
 0x684   : > { %v3737_v63 = vpop.f32.mrb[192].mxu0 }
 0x685   : > { %v3743_v46 = vmax.f32 %v3737_v63, 0.0  ;;  %v4343_v10 = vpop.f32.mrb[193].mxu0 }
 0x686   : > { %v3740_v2 = vpop.f32.mrb[194].mxu0 }
 0x687   : > { %v3744_v13 = vpack.c.bf16 %v3743_v46, %v3743_v46  ;;  %v4344_v40 = vpop.f32.mrb[195].mxu0 }
 0x689   : > { %4362 = vmatmul.mubr.bf16.vlgmr.msra.gmra.mrb[96].mxu1 %v3744_v13 }
 0x75c   : > { %v3850_v3 = vpop.f32.mrb[96].mxu1 }
 0x75d   : > { %v3851_v23 = vadd.f32 %v4089_v45, %v3850_v3  ;;  %v4363_v4 = vpop.f32.mrb[97].mxu1 }
 0x75e   : > { %v3853_v5 = vpop.f32.mrb[98].mxu1 }
 0x75f   : > { %3856 = vst [vmem:[%s409_s20] sm:$0xf] %v3851_v23  ;;  %v4364_v27 = vpop.f32.mrb[99].mxu1 }
 0x760   : > { %4619 = shalt.err (!%p4616_p3)
}
 0x761   : > { %s4620_s18 = scalar_lea.hbm %s5501_s16, 64  ;;  %s4624_s29 = scalar_lea.hbm %s5555_s12, 128 }
 0x762   : > { %p4621_p4 = scmp.ne.s32.totalorder %s5501_s16, %s4620_s18  ;;  %p4625_p9 = scmp.lt.u32.totalorder %s5501_s16, %s5555_s12 }
 0x763   : > { %p4626_p10 = scmp.lt.u32.totalorder %s4624_s29, %s4620_s18  ;;  %p4628_p12 = scmp.lt.u32.totalorder %s4620_s18, %s5501_s16 }
 0x764   : > { %p4622_p7 = pnand %p4621_p4, %p4777_p5 }
 0x765   : > { %p4627_p11 = por %p4626_p10, %p4625_p9 }
 0x766   : > { %p4623_p8 = pneg %p4622_p7 }
 0x767   : > { %p4629_p13 = por %p4628_p12, %p4627_p11 }
 0x769   : > { %p4630_p0 = pnand %p4629_p13, %p4623_p8 }
 0x76b   : > { %4633 = shalt.err (!%p4630_p0)
}
 0x76c   : > { %4365 = dma.vmem_to_hbm [thread:$0]  (%p4777_p5), %s5503_s26, 64, %s5501_s16, %s3858_s17  }
 0x76d PF: > { %p4371_p1 = scmp.ge.s32.totalorder %s4668_s24, 2  ;;  %s3883_s25 = sand.u32 1, %s4656_s21  }
 0x76e   : > { %s3884_s28 = scalar_lea.sflag [#allocation3], %s3883_s25 }
 0x76f   : > { %p4368_p2 = pnand %p4371_p1, %p4781_p6 }
 0x771   : > { %4651 = dma.done.wait (!%p4368_p2), %s3884_s28, 64  }
 0x772   : > { %4653 = vsyncadd (!%p4368_p2), %s3884_s28, 4294967232  ;;  %s5559_s18 = sld [smem:[#allocation5_spill]]  ;;  %p22_p3 = scmp.ge.s32.totalorder %s4764_s27, 4  }
 0x773   : > { %s5560_s21 = smov %s4660_s22  ;;  %s5561_s22 = smov %s4664_s23 }
 0x774   : > { %s5563_s24 = smov %s4764_s27  ;;  %24 = sbr.rel (!%p22_p3) target bundleno = 3 (0x3), region = 103 }
 0x778   : > { %s5562_s23 = smov %s5559_s18 }
 0x77b   :  { %3889 = vsyncpa [#allocation3], 1 }
 0x77c   :  { %3891 = vsyncpa [#allocation3 + $0x1], 1 }

</bundles_post_ra>
